<compile_context>
chip_gen: v6e
topology: v6e:2x2x1
jax: 0.10.0
libtpu: 0.0.40
codegen_flags: <defaults>
</compile_context>

<pallas_src>
import math
from functools import partial

import jax
import jax.numpy as jnp
from jax import lax
from jax.experimental import pallas as pl
from jax.experimental.pallas import tpu as pltpu


# ---------------------------------------------------------------------------
# Helpers
# ---------------------------------------------------------------------------
def _leaky_relu(x, slope):
    if slope == 0.0:
        return jnp.maximum(x, 0.0)
    return jnp.where(x >= 0.0, x, x * slope)


def _conv3x3_acc(src, w_ref, out_rows):
    """3x3 'same' conv as 9 accumulated shifted matmuls (no im2col).

    src    : (out_rows + 2, W, Cin) bf16 value, already carrying a 1-row halo
             top and bottom; the W halo is synthesised with zero columns.
    w_ref  : (9, Cin, Cout) bf16 VMEM ref, tap-major (t = 3*ky + kx).
    returns: (out_rows * W, Cout) f32 accumulator.
    """
    rows, W, cin = src.shape
    zcol = jnp.zeros_like(src[:, :1, :])
    # W-shift variants built ONCE per stage (2 shifted copies instead of
    # 9 sublane-misaligned tap slices); the H tap slices below are free.
    shifted = (
        jnp.concatenate([zcol, src[:, :W - 1, :]], axis=1),   # kx=0: col w-1
        src,                                                  # kx=1: col w
        jnp.concatenate([src[:, 1:, :], zcol], axis=1),       # kx=2: col w+1
    )
    M = out_rows * W
    acc = None
    for ky in range(3):
        for kx in range(3):
            tap = shifted[kx][ky:ky + out_rows].reshape(M, cin)
            part = jnp.dot(tap, w_ref[3 * ky + kx],
                           preferred_element_type=jnp.float32)
            acc = part if acc is None else acc + part
    return acc


# ---------------------------------------------------------------------------
# Kernel: one (batch element, row strip) per grid step
# ---------------------------------------------------------------------------
def _retinaface_strip_kernel(
        x_ref,                                  # (1, H+6, W, C) bf16 (H-halo padded)
        wA_ref, bA_ref,                         # fused conv3X3 | conv5X5_1
        wB_ref, bB_ref,                         # fused conv5X5_2 | conv7X7_2
        wC_ref, bC_ref,                         # conv7x7_3
        wh1_ref, wh2_ref, wh3_ref, bh_ref,      # fused + lane-padded 1x1 heads
        out_ref,                                # (1, TH, W, P) bf16, lane-dense
        *, H, W, TH, C, leaky_slope):
    C2, C4 = C // 2, C // 4
    s = pl.program_id(1)
    r0 = s * TH                                 # strip start row (image coords)
    if TH % 8 == 0:
        r0 = pl.multiple_of(r0, 8)

    # Strip slab with a 3-row halo on each side (chained 3x3 convs need 3).
    xh = x_ref[0, pl.ds(r0, TH + 6), :, :]                      # (TH+6, W, C)

    # ---- stage A: fused conv3X3 | conv5X5_1 (shared input, one tap pass) ----
    EA = TH + 4
    a = _conv3x3_acc(xh, wA_ref, EA) + bA_ref[...]              # (EA*W, C2+C4) f32
    a = a.reshape(EA, W, C2 + C4)
    br1 = a[2:2 + TH, :, :C2]                                   # conv3X3 (no act)
    # conv5X5_1 activation; rows outside the image must be exact zeros because
    # the next conv zero-pads the *activation*, not the raw input.
    row_a = r0 - 2 + lax.broadcasted_iota(jnp.int32, (EA, 1, 1), 0)
    t5 = jnp.where((row_a >= 0) & (row_a < H),
                   _leaky_relu(a[:, :, C2:], leaky_slope),
                   0.0).astype(jnp.bfloat16)                    # (EA, W, C4)

    # ---- stage B: fused conv5X5_2 | conv7X7_2 over t5 ----
    EB = TH + 2
    b = _conv3x3_acc(t5, wB_ref, EB) + bB_ref[...]              # (EB*W, 2*C4) f32
    b = b.reshape(EB, W, 2 * C4)
    br2 = b[1:1 + TH, :, :C4]                                   # conv5X5_2 (no act)
    row_b = r0 - 1 + lax.broadcasted_iota(jnp.int32, (EB, 1, 1), 0)
    t7 = jnp.where((row_b >= 0) & (row_b < H),
                   _leaky_relu(b[:, :, C4:], leaky_slope),
                   0.0).astype(jnp.bfloat16)                    # (EB, W, C4)

    # ---- stage C: conv7x7_3 over t7 ----
    br3 = (_conv3x3_acc(t7, wC_ref, TH) + bC_ref[...]).reshape(TH, W, C4)

    # ---- relu(concat(br1, br2, br3)) @ [Wcls | Wbox | 0-pad] as 3 partial
    # matmuls against row chunks of the fused head weight; single lane-dense
    # (last dim = 128) store, wrapper slices cls/box back out.
    M = TH * W
    f1 = jnp.maximum(br1, 0.0).reshape(M, C2).astype(jnp.bfloat16)
    f2 = jnp.maximum(br2, 0.0).reshape(M, C4).astype(jnp.bfloat16)
    f3 = jnp.maximum(br3, 0.0).reshape(M, C4).astype(jnp.bfloat16)
    out = (jnp.dot(f1, wh1_ref[...], preferred_element_type=jnp.float32)
           + jnp.dot(f2, wh2_ref[...], preferred_element_type=jnp.float32)
           + jnp.dot(f3, wh3_ref[...], preferred_element_type=jnp.float32)
           + bh_ref[...])                                       # (M, P) f32
    out_ref[...] = out.reshape(1, TH, W, out_ref.shape[-1]).astype(out_ref.dtype)


# ---------------------------------------------------------------------------
# pallas_call wrapper (one compiled kernel per FPN level shape)
# ---------------------------------------------------------------------------
def make_level_fn(N, H, W, C, P, TH, leaky_slope):
    assert C % 4 == 0 and H % TH == 0
    C2, C4 = C // 2, C // 4
    CA, CB = C2 + C4, 2 * C4
    S = H // TH
    Hp = H + 6

    w_map3 = lambda n, s: (0, 0, 0)
    w_map2 = lambda n, s: (0, 0)

    in_specs = [
        # padded image, resident across the strip axis (index map ignores s)
        pl.BlockSpec((1, Hp, W, C), lambda n, s: (n, 0, 0, 0)),
        pl.BlockSpec((9, C, CA), w_map3), pl.BlockSpec((1, CA), w_map2),
        pl.BlockSpec((9, C4, CB), w_map3), pl.BlockSpec((1, CB), w_map2),
        pl.BlockSpec((9, C4, C4), w_map3), pl.BlockSpec((1, C4), w_map2),
        pl.BlockSpec((C2, P), w_map2), pl.BlockSpec((C4, P), w_map2),
        pl.BlockSpec((C4, P), w_map2), pl.BlockSpec((1, P), w_map2),
    ]
    out_specs = pl.BlockSpec((1, TH, W, P), lambda n, s: (n, s, 0, 0))
    out_shape = jax.ShapeDtypeStruct((N, H, W, P), jnp.bfloat16)

    conv_macs = 9 * (C * CA + C4 * CB + C4 * C4) + C * P
    flops = 2 * N * H * W * conv_macs
    bytes_accessed = 2 * (N * Hp * W * C + N * H * W * P + conv_macs)
    cost = pl.CostEstimate(flops=flops, transcendentals=0,
                           bytes_accessed=bytes_accessed)

    return pl.pallas_call(
        partial(_retinaface_strip_kernel, H=H, W=W, TH=TH, C=C,
                leaky_slope=leaky_slope),
        out_shape=out_shape,
        grid_spec=pltpu.PrefetchScalarGridSpec(
            num_scalar_prefetch=0,
            grid=(N, S),
            in_specs=in_specs,
            out_specs=out_specs,
        ),
        compiler_params=pltpu.CompilerParams(
            dimension_semantics=("parallel", "parallel"),
            vmem_limit_bytes=64 * 1024 * 1024,
        ),
        cost_estimate=cost,
    )


def _pick_strip_height(H):
    for th in (32, 16, 8):
        if th < H and H % th == 0:
            return th
    return H


# ---------------------------------------------------------------------------
# Parameter construction + module-like wrapper
# ---------------------------------------------------------------------------
class RetinaFaceHeadPallas:
    def __init__(self, key, num_levels, in_channels, num_anchors, num_classes,
                 prior_prob=0.01):
        C = in_channels
        assert C % 4 == 0
        C2, C4 = C // 2, C // 4
        self.C = C
        self.A_cls = num_anchors * num_classes
        self.A_box = num_anchors * 4
        A_tot = self.A_cls + self.A_box
        # lane-pad the fused head output to 128 so the final store is an
        # unmasked lane-dense vst.
        self.P = max(128, ((A_tot + 127) // 128) * 128)
        # canonical SSH: LeakyReLU(0.1) inside conv_bn when out_channel <= 64.
        self.leaky_slope = 0.1 if C <= 64 else 0.0

        def conv3x3(k, cin, cout, std=0.01):
            # (ky, kx, in, out) -> tap-major (9, in, out); eval-mode BN folded.
            w = jax.random.normal(k, (3, 3, cin, cout), jnp.float32) * std
            return w.reshape(9, cin, cout).astype(jnp.bfloat16)

        keys = jax.random.split(key, num_levels * 5 + 2)
        self.ssh_params = []
        ki = 0
        for _ in range(num_levels):
            w3 = conv3x3(keys[ki + 0], C, C2)     # conv3X3        (no act)
            w51 = conv3x3(keys[ki + 1], C, C4)    # conv5X5_1      (+leaky)
            w52 = conv3x3(keys[ki + 2], C4, C4)   # conv5X5_2      (no act)
            w72 = conv3x3(keys[ki + 3], C4, C4)   # conv7X7_2      (+leaky)
            w73 = conv3x3(keys[ki + 4], C4, C4)   # conv7x7_3      (no act)
            ki += 5
            # fuse convs sharing an input -> one tap pass, wider MXU columns.
            wA = jnp.concatenate([w3, w51], axis=-1)        # (9, C, C2+C4)
            wB = jnp.concatenate([w52, w72], axis=-1)       # (9, C4, 2*C4)
            bA = jnp.zeros((1, C2 + C4), jnp.float32)
            bB = jnp.zeros((1, 2 * C4), jnp.float32)
            bC = jnp.zeros((1, C4), jnp.float32)
            self.ssh_params.append((wA, bA, wB, bB, w73, bC))

        # shared cls_score / bbox_pred 1x1 heads: normal(0, 0.01), fused
        # column-wise [cls | box | 0-pad] and split row-wise into the
        # (C/2 | C/4 | C/4) chunks matching SSH branch order.
        wc = jax.random.normal(keys[ki], (C, self.A_cls), jnp.float32) * 0.01
        wb = jax.random.normal(keys[ki + 1], (C, self.A_box), jnp.float32) * 0.01
        w_fused = jnp.pad(jnp.concatenate([wc, wb], axis=1),
                          ((0, 0), (0, self.P - A_tot))).astype(jnp.bfloat16)
        self.wh1 = w_fused[:C2]
        self.wh2 = w_fused[C2:C2 + C4]
        self.wh3 = w_fused[C2 + C4:]

        bias_value = -math.log((1.0 - prior_prob) / prior_prob)
        self.bh = jnp.concatenate([
            jnp.full((self.A_cls,), bias_value, jnp.float32),
            jnp.zeros((self.P - self.A_cls,), jnp.float32),
        ]).reshape(1, self.P)

        self._fns = {}

    def _fn(self, N, H, W):
        k = (N, H, W)
        if k not in self._fns:
            self._fns[k] = make_level_fn(N, H, W, self.C, self.P,
                                         _pick_strip_height(H),
                                         self.leaky_slope)
        return self._fns[k]

    def __call__(self, features_nchw):
        """features_nchw: list of (N, C, Hi, Wi) arrays (PyTorch layout)."""
        logits, bbox_reg = [], []
        for i, f in enumerate(features_nchw):
            N, C, H, W = f.shape
            assert C == self.C
            # NCHW -> NHWC, bf16 cast, +3-row H halo; one fused layout pass.
            x = jnp.transpose(f, (0, 2, 3, 1)).astype(jnp.bfloat16)
            x = jnp.pad(x, ((0, 0), (3, 3), (0, 0), (0, 0)))
            wA, bA, wB, bB, wC, bC = self.ssh_params[i]
            out = self._fn(N, H, W)(x, wA, bA, wB, bB, wC, bC,
                                    self.wh1, self.wh2, self.wh3, self.bh)
            cls = out[..., :self.A_cls]
            box = out[..., self.A_cls:self.A_cls + self.A_box]
            logits.append(jnp.transpose(cls, (0, 3, 1, 2)).astype(jnp.float32))
            bbox_reg.append(jnp.transpose(box, (0, 3, 1, 2)).astype(jnp.float32))
        return logits, bbox_reg


# ---------------------------------------------------------------------------
# Demo
# ---------------------------------------------------------------------------
if __name__ == "__main__":
    key = jax.random.PRNGKey(0)
    kh, kf1, kf2 = jax.random.split(key, 3)

    N = 2
    C = 32              # in_channels (must be divisible by 4 for SSH)
    num_anchors = 2
    num_classes = 2
    spatial = [16, 8]   # two FPN levels, high -> low resolution

    head = RetinaFaceHeadPallas(kh, num_levels=len(spatial), in_channels=C,
                                num_anchors=num_anchors,
                                num_classes=num_classes, prior_prob=0.01)

    features = [
        jax.random.normal(kf1, (N, C, spatial[0], spatial[0]), jnp.float32),
        jax.random.normal(kf2, (N, C, spatial[1], spatial[1]), jnp.float32),
    ]

    logits, bbox_reg = head(features)
    jax.block_until_ready((logits, bbox_reg))

    for lvl, (lg, bb) in enumerate(zip(logits, bbox_reg)):
        assert lg.shape == (N, num_anchors * num_classes,
                            spatial[lvl], spatial[lvl])
        assert bb.shape == (N, num_anchors * 4, spatial[lvl], spatial[lvl])
        assert bool(jnp.all(jnp.isfinite(lg))) and bool(jnp.all(jnp.isfinite(bb)))

    print("KERNEL_OK")
</pallas_src>

<mosaic_0001>
module attributes {stable_mosaic.version = 11 : i64} {
  func.func @_retinaface_strip_kernel(%arg0: i32, %arg1: i32, %arg2: memref<1x22x16x32xbf16, #tpu.memory_space<vmem>>, %arg3: memref<9x32x24xbf16, #tpu.memory_space<vmem>>, %arg4: memref<1x24xf32, #tpu.memory_space<vmem>>, %arg5: memref<9x8x16xbf16, #tpu.memory_space<vmem>>, %arg6: memref<1x16xf32, #tpu.memory_space<vmem>>, %arg7: memref<9x8x8xbf16, #tpu.memory_space<vmem>>, %arg8: memref<1x8xf32, #tpu.memory_space<vmem>>, %arg9: memref<16x128xbf16, #tpu.memory_space<vmem>>, %arg10: memref<8x128xbf16, #tpu.memory_space<vmem>>, %arg11: memref<8x128xbf16, #tpu.memory_space<vmem>>, %arg12: memref<1x128xf32, #tpu.memory_space<vmem>>, %arg13: memref<1x8x16x128xbf16, #tpu.memory_space<vmem>>) attributes {dimension_semantics = [#tpu.dimension_semantics<parallel>, #tpu.dimension_semantics<parallel>], iteration_bounds = array<i64: 2, 2>, scalar_prefetch = 0 : i64, scratch_operands = 0 : i64, tpu.core_type = #tpu.core_type<tc>, window_params = [{transform_indices = @transform_0, window_bounds = array<i64: 1, 22, 16, 32>}, {pipeline_mode = #tpu.pipeline_mode<synchronous>, transform_indices = @transform_1, window_bounds = array<i64: 9, 32, 24>}, {pipeline_mode = #tpu.pipeline_mode<synchronous>, transform_indices = @transform_2, window_bounds = array<i64: 1, 24>}, {pipeline_mode = #tpu.pipeline_mode<synchronous>, transform_indices = @transform_3, window_bounds = array<i64: 9, 8, 16>}, {pipeline_mode = #tpu.pipeline_mode<synchronous>, transform_indices = @transform_4, window_bounds = array<i64: 1, 16>}, {pipeline_mode = #tpu.pipeline_mode<synchronous>, transform_indices = @transform_5, window_bounds = array<i64: 9, 8, 8>}, {pipeline_mode = #tpu.pipeline_mode<synchronous>, transform_indices = @transform_6, window_bounds = array<i64: 1, 8>}, {pipeline_mode = #tpu.pipeline_mode<synchronous>, transform_indices = @transform_7, window_bounds = array<i64: 16, 128>}, {pipeline_mode = #tpu.pipeline_mode<synchronous>, transform_indices = @transform_8, window_bounds = array<i64: 8, 128>}, {pipeline_mode = #tpu.pipeline_mode<synchronous>, transform_indices = @transform_9, window_bounds = array<i64: 8, 128>}, {pipeline_mode = #tpu.pipeline_mode<synchronous>, transform_indices = @transform_10, window_bounds = array<i64: 1, 128>}, {transform_indices = @transform_11, window_bounds = array<i64: 1, 8, 16, 128>}]} {
    %c8_i32 = arith.constant 8 : i32
    %0 = arith.muli %arg1, %c8_i32 : i32
    %1 = tpu.assume_multiple %0, 8 : i32
    %c0 = arith.constant 0 : index
    %2 = arith.index_cast %1 : i32 to index
    %c0_0 = arith.constant 0 : index
    %c0_1 = arith.constant 0 : index
    %3 = vector.load %arg2[%c0, %2, %c0_0, %c0_1] : memref<1x22x16x32xbf16, #tpu.memory_space<vmem>>, vector<1x14x16x32xbf16>
    %4 = vector.shape_cast %3 : vector<1x14x16x32xbf16> to vector<14x16x32xbf16>
    %cst = arith.constant 0.000000e+00 : bf16
    %5 = vector.broadcast %cst : bf16 to vector<14x1x32xbf16>
    %6 = vector.extract_strided_slice %4 {offsets = [0, 0, 0], sizes = [14, 15, 32], strides = [1, 1, 1]} : vector<14x16x32xbf16> to vector<14x15x32xbf16>
    %7 = tpu.concatenate %5, %6 in 1 : vector<14x1x32xbf16>, vector<14x15x32xbf16> -> vector<14x16x32xbf16>
    %8 = vector.extract_strided_slice %4 {offsets = [0, 1, 0], sizes = [14, 15, 32], strides = [1, 1, 1]} : vector<14x16x32xbf16> to vector<14x15x32xbf16>
    %9 = tpu.concatenate %8, %5 in 1 : vector<14x15x32xbf16>, vector<14x1x32xbf16> -> vector<14x16x32xbf16>
    %10 = vector.extract_strided_slice %7 {offsets = [0, 0, 0], sizes = [12, 16, 32], strides = [1, 1, 1]} : vector<14x16x32xbf16> to vector<12x16x32xbf16>
    %11 = vector.shape_cast %10 : vector<12x16x32xbf16> to vector<192x32xbf16>
    %c0_2 = arith.constant 0 : index
    %c0_3 = arith.constant 0 : index
    %c0_4 = arith.constant 0 : index
    %12 = vector.load %arg3[%c0_2, %c0_3, %c0_4] : memref<9x32x24xbf16, #tpu.memory_space<vmem>>, vector<1x32x24xbf16>
    %13 = vector.shape_cast %12 : vector<1x32x24xbf16> to vector<32x24xbf16>
    %cst_5 = arith.constant dense<0.000000e+00> : vector<192x24xf32>
    %14 = tpu.matmul %11, %13, %cst_5 {dimension_numbers = #tpu.dot_dimension_numbers<[1], [0], [0], [1], [0, 0, 1, 1], [], []>} : vector<192x32xbf16>, vector<32x24xbf16>, vector<192x24xf32> -> vector<192x24xf32>
    %15 = vector.extract_strided_slice %4 {offsets = [0, 0, 0], sizes = [12, 16, 32], strides = [1, 1, 1]} : vector<14x16x32xbf16> to vector<12x16x32xbf16>
    %16 = vector.shape_cast %15 : vector<12x16x32xbf16> to vector<192x32xbf16>
    %c1 = arith.constant 1 : index
    %c0_6 = arith.constant 0 : index
    %c0_7 = arith.constant 0 : index
    %17 = vector.load %arg3[%c1, %c0_6, %c0_7] : memref<9x32x24xbf16, #tpu.memory_space<vmem>>, vector<1x32x24xbf16>
    %18 = vector.shape_cast %17 : vector<1x32x24xbf16> to vector<32x24xbf16>
    %cst_8 = arith.constant dense<0.000000e+00> : vector<192x24xf32>
    %19 = tpu.matmul %16, %18, %cst_8 {dimension_numbers = #tpu.dot_dimension_numbers<[1], [0], [0], [1], [0, 0, 1, 1], [], []>} : vector<192x32xbf16>, vector<32x24xbf16>, vector<192x24xf32> -> vector<192x24xf32>
    %20 = arith.addf %14, %19 : vector<192x24xf32>
    %21 = vector.extract_strided_slice %9 {offsets = [0, 0, 0], sizes = [12, 16, 32], strides = [1, 1, 1]} : vector<14x16x32xbf16> to vector<12x16x32xbf16>
    %22 = vector.shape_cast %21 : vector<12x16x32xbf16> to vector<192x32xbf16>
    %c2 = arith.constant 2 : index
    %c0_9 = arith.constant 0 : index
    %c0_10 = arith.constant 0 : index
    %23 = vector.load %arg3[%c2, %c0_9, %c0_10] : memref<9x32x24xbf16, #tpu.memory_space<vmem>>, vector<1x32x24xbf16>
    %24 = vector.shape_cast %23 : vector<1x32x24xbf16> to vector<32x24xbf16>
    %cst_11 = arith.constant dense<0.000000e+00> : vector<192x24xf32>
    %25 = tpu.matmul %22, %24, %cst_11 {dimension_numbers = #tpu.dot_dimension_numbers<[1], [0], [0], [1], [0, 0, 1, 1], [], []>} : vector<192x32xbf16>, vector<32x24xbf16>, vector<192x24xf32> -> vector<192x24xf32>
    %26 = arith.addf %20, %25 : vector<192x24xf32>
    %27 = vector.extract_strided_slice %7 {offsets = [1, 0, 0], sizes = [12, 16, 32], strides = [1, 1, 1]} : vector<14x16x32xbf16> to vector<12x16x32xbf16>
    %28 = vector.shape_cast %27 : vector<12x16x32xbf16> to vector<192x32xbf16>
    %c3 = arith.constant 3 : index
    %c0_12 = arith.constant 0 : index
    %c0_13 = arith.constant 0 : index
    %29 = vector.load %arg3[%c3, %c0_12, %c0_13] : memref<9x32x24xbf16, #tpu.memory_space<vmem>>, vector<1x32x24xbf16>
    %30 = vector.shape_cast %29 : vector<1x32x24xbf16> to vector<32x24xbf16>
    %cst_14 = arith.constant dense<0.000000e+00> : vector<192x24xf32>
    %31 = tpu.matmul %28, %30, %cst_14 {dimension_numbers = #tpu.dot_dimension_numbers<[1], [0], [0], [1], [0, 0, 1, 1], [], []>} : vector<192x32xbf16>, vector<32x24xbf16>, vector<192x24xf32> -> vector<192x24xf32>
    %32 = arith.addf %26, %31 : vector<192x24xf32>
    %33 = vector.extract_strided_slice %4 {offsets = [1, 0, 0], sizes = [12, 16, 32], strides = [1, 1, 1]} : vector<14x16x32xbf16> to vector<12x16x32xbf16>
    %34 = vector.shape_cast %33 : vector<12x16x32xbf16> to vector<192x32xbf16>
    %c4 = arith.constant 4 : index
    %c0_15 = arith.constant 0 : index
    %c0_16 = arith.constant 0 : index
    %35 = vector.load %arg3[%c4, %c0_15, %c0_16] : memref<9x32x24xbf16, #tpu.memory_space<vmem>>, vector<1x32x24xbf16>
    %36 = vector.shape_cast %35 : vector<1x32x24xbf16> to vector<32x24xbf16>
    %cst_17 = arith.constant dense<0.000000e+00> : vector<192x24xf32>
    %37 = tpu.matmul %34, %36, %cst_17 {dimension_numbers = #tpu.dot_dimension_numbers<[1], [0], [0], [1], [0, 0, 1, 1], [], []>} : vector<192x32xbf16>, vector<32x24xbf16>, vector<192x24xf32> -> vector<192x24xf32>
    %38 = arith.addf %32, %37 : vector<192x24xf32>
    %39 = vector.extract_strided_slice %9 {offsets = [1, 0, 0], sizes = [12, 16, 32], strides = [1, 1, 1]} : vector<14x16x32xbf16> to vector<12x16x32xbf16>
    %40 = vector.shape_cast %39 : vector<12x16x32xbf16> to vector<192x32xbf16>
    %c5 = arith.constant 5 : index
    %c0_18 = arith.constant 0 : index
    %c0_19 = arith.constant 0 : index
    %41 = vector.load %arg3[%c5, %c0_18, %c0_19] : memref<9x32x24xbf16, #tpu.memory_space<vmem>>, vector<1x32x24xbf16>
    %42 = vector.shape_cast %41 : vector<1x32x24xbf16> to vector<32x24xbf16>
    %cst_20 = arith.constant dense<0.000000e+00> : vector<192x24xf32>
    %43 = tpu.matmul %40, %42, %cst_20 {dimension_numbers = #tpu.dot_dimension_numbers<[1], [0], [0], [1], [0, 0, 1, 1], [], []>} : vector<192x32xbf16>, vector<32x24xbf16>, vector<192x24xf32> -> vector<192x24xf32>
    %44 = arith.addf %38, %43 : vector<192x24xf32>
    %45 = vector.extract_strided_slice %7 {offsets = [2, 0, 0], sizes = [12, 16, 32], strides = [1, 1, 1]} : vector<14x16x32xbf16> to vector<12x16x32xbf16>
    %46 = vector.shape_cast %45 : vector<12x16x32xbf16> to vector<192x32xbf16>
    %c6 = arith.constant 6 : index
    %c0_21 = arith.constant 0 : index
    %c0_22 = arith.constant 0 : index
    %47 = vector.load %arg3[%c6, %c0_21, %c0_22] : memref<9x32x24xbf16, #tpu.memory_space<vmem>>, vector<1x32x24xbf16>
    %48 = vector.shape_cast %47 : vector<1x32x24xbf16> to vector<32x24xbf16>
    %cst_23 = arith.constant dense<0.000000e+00> : vector<192x24xf32>
    %49 = tpu.matmul %46, %48, %cst_23 {dimension_numbers = #tpu.dot_dimension_numbers<[1], [0], [0], [1], [0, 0, 1, 1], [], []>} : vector<192x32xbf16>, vector<32x24xbf16>, vector<192x24xf32> -> vector<192x24xf32>
    %50 = arith.addf %44, %49 : vector<192x24xf32>
    %51 = vector.extract_strided_slice %4 {offsets = [2, 0, 0], sizes = [12, 16, 32], strides = [1, 1, 1]} : vector<14x16x32xbf16> to vector<12x16x32xbf16>
    %52 = vector.shape_cast %51 : vector<12x16x32xbf16> to vector<192x32xbf16>
    %c7 = arith.constant 7 : index
    %c0_24 = arith.constant 0 : index
    %c0_25 = arith.constant 0 : index
    %53 = vector.load %arg3[%c7, %c0_24, %c0_25] : memref<9x32x24xbf16, #tpu.memory_space<vmem>>, vector<1x32x24xbf16>
    %54 = vector.shape_cast %53 : vector<1x32x24xbf16> to vector<32x24xbf16>
    %cst_26 = arith.constant dense<0.000000e+00> : vector<192x24xf32>
    %55 = tpu.matmul %52, %54, %cst_26 {dimension_numbers = #tpu.dot_dimension_numbers<[1], [0], [0], [1], [0, 0, 1, 1], [], []>} : vector<192x32xbf16>, vector<32x24xbf16>, vector<192x24xf32> -> vector<192x24xf32>
    %56 = arith.addf %50, %55 : vector<192x24xf32>
    %57 = vector.extract_strided_slice %9 {offsets = [2, 0, 0], sizes = [12, 16, 32], strides = [1, 1, 1]} : vector<14x16x32xbf16> to vector<12x16x32xbf16>
    %58 = vector.shape_cast %57 : vector<12x16x32xbf16> to vector<192x32xbf16>
    %c8 = arith.constant 8 : index
    %c0_27 = arith.constant 0 : index
    %c0_28 = arith.constant 0 : index
    %59 = vector.load %arg3[%c8, %c0_27, %c0_28] : memref<9x32x24xbf16, #tpu.memory_space<vmem>>, vector<1x32x24xbf16>
    %60 = vector.shape_cast %59 : vector<1x32x24xbf16> to vector<32x24xbf16>
    %cst_29 = arith.constant dense<0.000000e+00> : vector<192x24xf32>
    %61 = tpu.matmul %58, %60, %cst_29 {dimension_numbers = #tpu.dot_dimension_numbers<[1], [0], [0], [1], [0, 0, 1, 1], [], []>} : vector<192x32xbf16>, vector<32x24xbf16>, vector<192x24xf32> -> vector<192x24xf32>
    %62 = arith.addf %56, %61 : vector<192x24xf32>
    %c0_30 = arith.constant 0 : index
    %c0_31 = arith.constant 0 : index
    %63 = vector.load %arg4[%c0_30, %c0_31] : memref<1x24xf32, #tpu.memory_space<vmem>>, vector<1x24xf32>
    %64 = vector.broadcast %63 : vector<1x24xf32> to vector<192x24xf32>
    %65 = arith.addf %62, %64 : vector<192x24xf32>
    %66 = vector.shape_cast %65 : vector<192x24xf32> to vector<12x16x24xf32>
    %67 = vector.extract_strided_slice %66 {offsets = [2, 0, 0], sizes = [8, 16, 16], strides = [1, 1, 1]} : vector<12x16x24xf32> to vector<8x16x16xf32>
    %c2_i32 = arith.constant 2 : i32
    %68 = arith.subi %1, %c2_i32 : i32
    %69 = tpu.iota {dimensions = array<i32: 0>} : vector<12x1x1xi32>
    %70 = vector.broadcast %68 : i32 to vector<12x1x1xi32>
    %71 = arith.addi %70, %69 : vector<12x1x1xi32>
    %c0_i32 = arith.constant 0 : i32
    %72 = vector.broadcast %c0_i32 : i32 to vector<12x1x1xi32>
    %73 = arith.cmpi sge, %71, %72 : vector<12x1x1xi32>
    %c16_i32 = arith.constant 16 : i32
    %74 = vector.broadcast %c16_i32 : i32 to vector<12x1x1xi32>
    %75 = arith.cmpi slt, %71, %74 : vector<12x1x1xi32>
    %76 = arith.andi %73, %75 : vector<12x1x1xi1>
    %77 = vector.extract_strided_slice %66 {offsets = [0, 0, 16], sizes = [12, 16, 8], strides = [1, 1, 1]} : vector<12x16x24xf32> to vector<12x16x8xf32>
    %cst_32 = arith.constant 0.000000e+00 : f32
    %78 = vector.broadcast %cst_32 : f32 to vector<12x16x8xf32>
    %79 = arith.cmpf oge, %77, %78 : vector<12x16x8xf32>
    %cst_33 = arith.constant 1.000000e-01 : f32
    %80 = vector.broadcast %cst_33 : f32 to vector<12x16x8xf32>
    %81 = arith.mulf %77, %80 : vector<12x16x8xf32>
    %82 = arith.select %79, %77, %81 : vector<12x16x8xi1>, vector<12x16x8xf32>
    %cst_34 = arith.constant 0.000000e+00 : f32
    %83 = vector.shape_cast %76 : vector<12x1x1xi1> to vector<12x1x1xi1>
    %84 = vector.broadcast %83 : vector<12x1x1xi1> to vector<12x16x8xi1>
    %85 = vector.broadcast %cst_34 : f32 to vector<12x16x8xf32>
    %86 = arith.select %84, %82, %85 : vector<12x16x8xi1>, vector<12x16x8xf32>
    %87 = arith.truncf %86 : vector<12x16x8xf32> to vector<12x16x8xbf16>
    %cst_35 = arith.constant 0.000000e+00 : bf16
    %88 = vector.broadcast %cst_35 : bf16 to vector<12x1x8xbf16>
    %89 = vector.extract_strided_slice %87 {offsets = [0, 0, 0], sizes = [12, 15, 8], strides = [1, 1, 1]} : vector<12x16x8xbf16> to vector<12x15x8xbf16>
    %90 = tpu.concatenate %88, %89 in 1 : vector<12x1x8xbf16>, vector<12x15x8xbf16> -> vector<12x16x8xbf16>
    %91 = vector.extract_strided_slice %87 {offsets = [0, 1, 0], sizes = [12, 15, 8], strides = [1, 1, 1]} : vector<12x16x8xbf16> to vector<12x15x8xbf16>
    %92 = tpu.concatenate %91, %88 in 1 : vector<12x15x8xbf16>, vector<12x1x8xbf16> -> vector<12x16x8xbf16>
    %93 = vector.extract_strided_slice %90 {offsets = [0, 0, 0], sizes = [10, 16, 8], strides = [1, 1, 1]} : vector<12x16x8xbf16> to vector<10x16x8xbf16>
    %94 = vector.shape_cast %93 : vector<10x16x8xbf16> to vector<160x8xbf16>
    %c0_36 = arith.constant 0 : index
    %c0_37 = arith.constant 0 : index
    %c0_38 = arith.constant 0 : index
    %95 = vector.load %arg5[%c0_36, %c0_37, %c0_38] : memref<9x8x16xbf16, #tpu.memory_space<vmem>>, vector<1x8x16xbf16>
    %96 = vector.shape_cast %95 : vector<1x8x16xbf16> to vector<8x16xbf16>
    %cst_39 = arith.constant dense<0.000000e+00> : vector<160x16xf32>
    %97 = tpu.matmul %94, %96, %cst_39 {dimension_numbers = #tpu.dot_dimension_numbers<[1], [0], [0], [1], [0, 0, 1, 1], [], []>} : vector<160x8xbf16>, vector<8x16xbf16>, vector<160x16xf32> -> vector<160x16xf32>
    %98 = vector.extract_strided_slice %87 {offsets = [0, 0, 0], sizes = [10, 16, 8], strides = [1, 1, 1]} : vector<12x16x8xbf16> to vector<10x16x8xbf16>
    %99 = vector.shape_cast %98 : vector<10x16x8xbf16> to vector<160x8xbf16>
    %c1_40 = arith.constant 1 : index
    %c0_41 = arith.constant 0 : index
    %c0_42 = arith.constant 0 : index
    %100 = vector.load %arg5[%c1_40, %c0_41, %c0_42] : memref<9x8x16xbf16, #tpu.memory_space<vmem>>, vector<1x8x16xbf16>
    %101 = vector.shape_cast %100 : vector<1x8x16xbf16> to vector<8x16xbf16>
    %cst_43 = arith.constant dense<0.000000e+00> : vector<160x16xf32>
    %102 = tpu.matmul %99, %101, %cst_43 {dimension_numbers = #tpu.dot_dimension_numbers<[1], [0], [0], [1], [0, 0, 1, 1], [], []>} : vector<160x8xbf16>, vector<8x16xbf16>, vector<160x16xf32> -> vector<160x16xf32>
    %103 = arith.addf %97, %102 : vector<160x16xf32>
    %104 = vector.extract_strided_slice %92 {offsets = [0, 0, 0], sizes = [10, 16, 8], strides = [1, 1, 1]} : vector<12x16x8xbf16> to vector<10x16x8xbf16>
    %105 = vector.shape_cast %104 : vector<10x16x8xbf16> to vector<160x8xbf16>
    %c2_44 = arith.constant 2 : index
    %c0_45 = arith.constant 0 : index
    %c0_46 = arith.constant 0 : index
    %106 = vector.load %arg5[%c2_44, %c0_45, %c0_46] : memref<9x8x16xbf16, #tpu.memory_space<vmem>>, vector<1x8x16xbf16>
    %107 = vector.shape_cast %106 : vector<1x8x16xbf16> to vector<8x16xbf16>
    %cst_47 = arith.constant dense<0.000000e+00> : vector<160x16xf32>
    %108 = tpu.matmul %105, %107, %cst_47 {dimension_numbers = #tpu.dot_dimension_numbers<[1], [0], [0], [1], [0, 0, 1, 1], [], []>} : vector<160x8xbf16>, vector<8x16xbf16>, vector<160x16xf32> -> vector<160x16xf32>
    %109 = arith.addf %103, %108 : vector<160x16xf32>
    %110 = vector.extract_strided_slice %90 {offsets = [1, 0, 0], sizes = [10, 16, 8], strides = [1, 1, 1]} : vector<12x16x8xbf16> to vector<10x16x8xbf16>
    %111 = vector.shape_cast %110 : vector<10x16x8xbf16> to vector<160x8xbf16>
    %c3_48 = arith.constant 3 : index
    %c0_49 = arith.constant 0 : index
    %c0_50 = arith.constant 0 : index
    %112 = vector.load %arg5[%c3_48, %c0_49, %c0_50] : memref<9x8x16xbf16, #tpu.memory_space<vmem>>, vector<1x8x16xbf16>
    %113 = vector.shape_cast %112 : vector<1x8x16xbf16> to vector<8x16xbf16>
    %cst_51 = arith.constant dense<0.000000e+00> : vector<160x16xf32>
    %114 = tpu.matmul %111, %113, %cst_51 {dimension_numbers = #tpu.dot_dimension_numbers<[1], [0], [0], [1], [0, 0, 1, 1], [], []>} : vector<160x8xbf16>, vector<8x16xbf16>, vector<160x16xf32> -> vector<160x16xf32>
    %115 = arith.addf %109, %114 : vector<160x16xf32>
    %116 = vector.extract_strided_slice %87 {offsets = [1, 0, 0], sizes = [10, 16, 8], strides = [1, 1, 1]} : vector<12x16x8xbf16> to vector<10x16x8xbf16>
    %117 = vector.shape_cast %116 : vector<10x16x8xbf16> to vector<160x8xbf16>
    %c4_52 = arith.constant 4 : index
    %c0_53 = arith.constant 0 : index
    %c0_54 = arith.constant 0 : index
    %118 = vector.load %arg5[%c4_52, %c0_53, %c0_54] : memref<9x8x16xbf16, #tpu.memory_space<vmem>>, vector<1x8x16xbf16>
    %119 = vector.shape_cast %118 : vector<1x8x16xbf16> to vector<8x16xbf16>
    %cst_55 = arith.constant dense<0.000000e+00> : vector<160x16xf32>
    %120 = tpu.matmul %117, %119, %cst_55 {dimension_numbers = #tpu.dot_dimension_numbers<[1], [0], [0], [1], [0, 0, 1, 1], [], []>} : vector<160x8xbf16>, vector<8x16xbf16>, vector<160x16xf32> -> vector<160x16xf32>
    %121 = arith.addf %115, %120 : vector<160x16xf32>
    %122 = vector.extract_strided_slice %92 {offsets = [1, 0, 0], sizes = [10, 16, 8], strides = [1, 1, 1]} : vector<12x16x8xbf16> to vector<10x16x8xbf16>
    %123 = vector.shape_cast %122 : vector<10x16x8xbf16> to vector<160x8xbf16>
    %c5_56 = arith.constant 5 : index
    %c0_57 = arith.constant 0 : index
    %c0_58 = arith.constant 0 : index
    %124 = vector.load %arg5[%c5_56, %c0_57, %c0_58] : memref<9x8x16xbf16, #tpu.memory_space<vmem>>, vector<1x8x16xbf16>
    %125 = vector.shape_cast %124 : vector<1x8x16xbf16> to vector<8x16xbf16>
    %cst_59 = arith.constant dense<0.000000e+00> : vector<160x16xf32>
    %126 = tpu.matmul %123, %125, %cst_59 {dimension_numbers = #tpu.dot_dimension_numbers<[1], [0], [0], [1], [0, 0, 1, 1], [], []>} : vector<160x8xbf16>, vector<8x16xbf16>, vector<160x16xf32> -> vector<160x16xf32>
    %127 = arith.addf %121, %126 : vector<160x16xf32>
    %128 = vector.extract_strided_slice %90 {offsets = [2, 0, 0], sizes = [10, 16, 8], strides = [1, 1, 1]} : vector<12x16x8xbf16> to vector<10x16x8xbf16>
    %129 = vector.shape_cast %128 : vector<10x16x8xbf16> to vector<160x8xbf16>
    %c6_60 = arith.constant 6 : index
    %c0_61 = arith.constant 0 : index
    %c0_62 = arith.constant 0 : index
    %130 = vector.load %arg5[%c6_60, %c0_61, %c0_62] : memref<9x8x16xbf16, #tpu.memory_space<vmem>>, vector<1x8x16xbf16>
    %131 = vector.shape_cast %130 : vector<1x8x16xbf16> to vector<8x16xbf16>
    %cst_63 = arith.constant dense<0.000000e+00> : vector<160x16xf32>
    %132 = tpu.matmul %129, %131, %cst_63 {dimension_numbers = #tpu.dot_dimension_numbers<[1], [0], [0], [1], [0, 0, 1, 1], [], []>} : vector<160x8xbf16>, vector<8x16xbf16>, vector<160x16xf32> -> vector<160x16xf32>
    %133 = arith.addf %127, %132 : vector<160x16xf32>
    %134 = vector.extract_strided_slice %87 {offsets = [2, 0, 0], sizes = [10, 16, 8], strides = [1, 1, 1]} : vector<12x16x8xbf16> to vector<10x16x8xbf16>
    %135 = vector.shape_cast %134 : vector<10x16x8xbf16> to vector<160x8xbf16>
    %c7_64 = arith.constant 7 : index
    %c0_65 = arith.constant 0 : index
    %c0_66 = arith.constant 0 : index
    %136 = vector.load %arg5[%c7_64, %c0_65, %c0_66] : memref<9x8x16xbf16, #tpu.memory_space<vmem>>, vector<1x8x16xbf16>
    %137 = vector.shape_cast %136 : vector<1x8x16xbf16> to vector<8x16xbf16>
    %cst_67 = arith.constant dense<0.000000e+00> : vector<160x16xf32>
    %138 = tpu.matmul %135, %137, %cst_67 {dimension_numbers = #tpu.dot_dimension_numbers<[1], [0], [0], [1], [0, 0, 1, 1], [], []>} : vector<160x8xbf16>, vector<8x16xbf16>, vector<160x16xf32> -> vector<160x16xf32>
    %139 = arith.addf %133, %138 : vector<160x16xf32>
    %140 = vector.extract_strided_slice %92 {offsets = [2, 0, 0], sizes = [10, 16, 8], strides = [1, 1, 1]} : vector<12x16x8xbf16> to vector<10x16x8xbf16>
    %141 = vector.shape_cast %140 : vector<10x16x8xbf16> to vector<160x8xbf16>
    %c8_68 = arith.constant 8 : index
    %c0_69 = arith.constant 0 : index
    %c0_70 = arith.constant 0 : index
    %142 = vector.load %arg5[%c8_68, %c0_69, %c0_70] : memref<9x8x16xbf16, #tpu.memory_space<vmem>>, vector<1x8x16xbf16>
    %143 = vector.shape_cast %142 : vector<1x8x16xbf16> to vector<8x16xbf16>
    %cst_71 = arith.constant dense<0.000000e+00> : vector<160x16xf32>
    %144 = tpu.matmul %141, %143, %cst_71 {dimension_numbers = #tpu.dot_dimension_numbers<[1], [0], [0], [1], [0, 0, 1, 1], [], []>} : vector<160x8xbf16>, vector<8x16xbf16>, vector<160x16xf32> -> vector<160x16xf32>
    %145 = arith.addf %139, %144 : vector<160x16xf32>
    %c0_72 = arith.constant 0 : index
    %c0_73 = arith.constant 0 : index
    %146 = vector.load %arg6[%c0_72, %c0_73] : memref<1x16xf32, #tpu.memory_space<vmem>>, vector<1x16xf32>
    %147 = vector.broadcast %146 : vector<1x16xf32> to vector<160x16xf32>
    %148 = arith.addf %145, %147 : vector<160x16xf32>
    %149 = vector.shape_cast %148 : vector<160x16xf32> to vector<10x16x16xf32>
    %150 = vector.extract_strided_slice %149 {offsets = [1, 0, 0], sizes = [8, 16, 8], strides = [1, 1, 1]} : vector<10x16x16xf32> to vector<8x16x8xf32>
    %c1_i32 = arith.constant 1 : i32
    %151 = arith.subi %1, %c1_i32 : i32
    %152 = tpu.iota {dimensions = array<i32: 0>} : vector<10x1x1xi32>
    %153 = vector.broadcast %151 : i32 to vector<10x1x1xi32>
    %154 = arith.addi %153, %152 : vector<10x1x1xi32>
    %c0_i32_74 = arith.constant 0 : i32
    %155 = vector.broadcast %c0_i32_74 : i32 to vector<10x1x1xi32>
    %156 = arith.cmpi sge, %154, %155 : vector<10x1x1xi32>
    %c16_i32_75 = arith.constant 16 : i32
    %157 = vector.broadcast %c16_i32_75 : i32 to vector<10x1x1xi32>
    %158 = arith.cmpi slt, %154, %157 : vector<10x1x1xi32>
    %159 = arith.andi %156, %158 : vector<10x1x1xi1>
    %160 = vector.extract_strided_slice %149 {offsets = [0, 0, 8], sizes = [10, 16, 8], strides = [1, 1, 1]} : vector<10x16x16xf32> to vector<10x16x8xf32>
    %cst_76 = arith.constant 0.000000e+00 : f32
    %161 = vector.broadcast %cst_76 : f32 to vector<10x16x8xf32>
    %162 = arith.cmpf oge, %160, %161 : vector<10x16x8xf32>
    %cst_77 = arith.constant 1.000000e-01 : f32
    %163 = vector.broadcast %cst_77 : f32 to vector<10x16x8xf32>
    %164 = arith.mulf %160, %163 : vector<10x16x8xf32>
    %165 = arith.select %162, %160, %164 : vector<10x16x8xi1>, vector<10x16x8xf32>
    %cst_78 = arith.constant 0.000000e+00 : f32
    %166 = vector.shape_cast %159 : vector<10x1x1xi1> to vector<10x1x1xi1>
    %167 = vector.broadcast %166 : vector<10x1x1xi1> to vector<10x16x8xi1>
    %168 = vector.broadcast %cst_78 : f32 to vector<10x16x8xf32>
    %169 = arith.select %167, %165, %168 : vector<10x16x8xi1>, vector<10x16x8xf32>
    %170 = arith.truncf %169 : vector<10x16x8xf32> to vector<10x16x8xbf16>
    %cst_79 = arith.constant 0.000000e+00 : bf16
    %171 = vector.broadcast %cst_79 : bf16 to vector<10x1x8xbf16>
    %172 = vector.extract_strided_slice %170 {offsets = [0, 0, 0], sizes = [10, 15, 8], strides = [1, 1, 1]} : vector<10x16x8xbf16> to vector<10x15x8xbf16>
    %173 = tpu.concatenate %171, %172 in 1 : vector<10x1x8xbf16>, vector<10x15x8xbf16> -> vector<10x16x8xbf16>
    %174 = vector.extract_strided_slice %170 {offsets = [0, 1, 0], sizes = [10, 15, 8], strides = [1, 1, 1]} : vector<10x16x8xbf16> to vector<10x15x8xbf16>
    %175 = tpu.concatenate %174, %171 in 1 : vector<10x15x8xbf16>, vector<10x1x8xbf16> -> vector<10x16x8xbf16>
    %176 = vector.extract_strided_slice %173 {offsets = [0, 0, 0], sizes = [8, 16, 8], strides = [1, 1, 1]} : vector<10x16x8xbf16> to vector<8x16x8xbf16>
    %177 = vector.shape_cast %176 : vector<8x16x8xbf16> to vector<128x8xbf16>
    %c0_80 = arith.constant 0 : index
    %c0_81 = arith.constant 0 : index
    %c0_82 = arith.constant 0 : index
    %178 = vector.load %arg7[%c0_80, %c0_81, %c0_82] : memref<9x8x8xbf16, #tpu.memory_space<vmem>>, vector<1x8x8xbf16>
    %179 = vector.shape_cast %178 : vector<1x8x8xbf16> to vector<8x8xbf16>
    %cst_83 = arith.constant dense<0.000000e+00> : vector<128x8xf32>
    %180 = tpu.matmul %177, %179, %cst_83 {dimension_numbers = #tpu.dot_dimension_numbers<[1], [0], [0], [1], [0, 0, 1, 1], [], []>} : vector<128x8xbf16>, vector<8x8xbf16>, vector<128x8xf32> -> vector<128x8xf32>
    %181 = vector.extract_strided_slice %170 {offsets = [0, 0, 0], sizes = [8, 16, 8], strides = [1, 1, 1]} : vector<10x16x8xbf16> to vector<8x16x8xbf16>
    %182 = vector.shape_cast %181 : vector<8x16x8xbf16> to vector<128x8xbf16>
    %c1_84 = arith.constant 1 : index
    %c0_85 = arith.constant 0 : index
    %c0_86 = arith.constant 0 : index
    %183 = vector.load %arg7[%c1_84, %c0_85, %c0_86] : memref<9x8x8xbf16, #tpu.memory_space<vmem>>, vector<1x8x8xbf16>
    %184 = vector.shape_cast %183 : vector<1x8x8xbf16> to vector<8x8xbf16>
    %cst_87 = arith.constant dense<0.000000e+00> : vector<128x8xf32>
    %185 = tpu.matmul %182, %184, %cst_87 {dimension_numbers = #tpu.dot_dimension_numbers<[1], [0], [0], [1], [0, 0, 1, 1], [], []>} : vector<128x8xbf16>, vector<8x8xbf16>, vector<128x8xf32> -> vector<128x8xf32>
    %186 = arith.addf %180, %185 : vector<128x8xf32>
    %187 = vector.extract_strided_slice %175 {offsets = [0, 0, 0], sizes = [8, 16, 8], strides = [1, 1, 1]} : vector<10x16x8xbf16> to vector<8x16x8xbf16>
    %188 = vector.shape_cast %187 : vector<8x16x8xbf16> to vector<128x8xbf16>
    %c2_88 = arith.constant 2 : index
    %c0_89 = arith.constant 0 : index
    %c0_90 = arith.constant 0 : index
    %189 = vector.load %arg7[%c2_88, %c0_89, %c0_90] : memref<9x8x8xbf16, #tpu.memory_space<vmem>>, vector<1x8x8xbf16>
    %190 = vector.shape_cast %189 : vector<1x8x8xbf16> to vector<8x8xbf16>
    %cst_91 = arith.constant dense<0.000000e+00> : vector<128x8xf32>
    %191 = tpu.matmul %188, %190, %cst_91 {dimension_numbers = #tpu.dot_dimension_numbers<[1], [0], [0], [1], [0, 0, 1, 1], [], []>} : vector<128x8xbf16>, vector<8x8xbf16>, vector<128x8xf32> -> vector<128x8xf32>
    %192 = arith.addf %186, %191 : vector<128x8xf32>
    %193 = vector.extract_strided_slice %173 {offsets = [1, 0, 0], sizes = [8, 16, 8], strides = [1, 1, 1]} : vector<10x16x8xbf16> to vector<8x16x8xbf16>
    %194 = vector.shape_cast %193 : vector<8x16x8xbf16> to vector<128x8xbf16>
    %c3_92 = arith.constant 3 : index
    %c0_93 = arith.constant 0 : index
    %c0_94 = arith.constant 0 : index
    %195 = vector.load %arg7[%c3_92, %c0_93, %c0_94] : memref<9x8x8xbf16, #tpu.memory_space<vmem>>, vector<1x8x8xbf16>
    %196 = vector.shape_cast %195 : vector<1x8x8xbf16> to vector<8x8xbf16>
    %cst_95 = arith.constant dense<0.000000e+00> : vector<128x8xf32>
    %197 = tpu.matmul %194, %196, %cst_95 {dimension_numbers = #tpu.dot_dimension_numbers<[1], [0], [0], [1], [0, 0, 1, 1], [], []>} : vector<128x8xbf16>, vector<8x8xbf16>, vector<128x8xf32> -> vector<128x8xf32>
    %198 = arith.addf %192, %197 : vector<128x8xf32>
    %199 = vector.extract_strided_slice %170 {offsets = [1, 0, 0], sizes = [8, 16, 8], strides = [1, 1, 1]} : vector<10x16x8xbf16> to vector<8x16x8xbf16>
    %200 = vector.shape_cast %199 : vector<8x16x8xbf16> to vector<128x8xbf16>
    %c4_96 = arith.constant 4 : index
    %c0_97 = arith.constant 0 : index
    %c0_98 = arith.constant 0 : index
    %201 = vector.load %arg7[%c4_96, %c0_97, %c0_98] : memref<9x8x8xbf16, #tpu.memory_space<vmem>>, vector<1x8x8xbf16>
    %202 = vector.shape_cast %201 : vector<1x8x8xbf16> to vector<8x8xbf16>
    %cst_99 = arith.constant dense<0.000000e+00> : vector<128x8xf32>
    %203 = tpu.matmul %200, %202, %cst_99 {dimension_numbers = #tpu.dot_dimension_numbers<[1], [0], [0], [1], [0, 0, 1, 1], [], []>} : vector<128x8xbf16>, vector<8x8xbf16>, vector<128x8xf32> -> vector<128x8xf32>
    %204 = arith.addf %198, %203 : vector<128x8xf32>
    %205 = vector.extract_strided_slice %175 {offsets = [1, 0, 0], sizes = [8, 16, 8], strides = [1, 1, 1]} : vector<10x16x8xbf16> to vector<8x16x8xbf16>
    %206 = vector.shape_cast %205 : vector<8x16x8xbf16> to vector<128x8xbf16>
    %c5_100 = arith.constant 5 : index
    %c0_101 = arith.constant 0 : index
    %c0_102 = arith.constant 0 : index
    %207 = vector.load %arg7[%c5_100, %c0_101, %c0_102] : memref<9x8x8xbf16, #tpu.memory_space<vmem>>, vector<1x8x8xbf16>
    %208 = vector.shape_cast %207 : vector<1x8x8xbf16> to vector<8x8xbf16>
    %cst_103 = arith.constant dense<0.000000e+00> : vector<128x8xf32>
    %209 = tpu.matmul %206, %208, %cst_103 {dimension_numbers = #tpu.dot_dimension_numbers<[1], [0], [0], [1], [0, 0, 1, 1], [], []>} : vector<128x8xbf16>, vector<8x8xbf16>, vector<128x8xf32> -> vector<128x8xf32>
    %210 = arith.addf %204, %209 : vector<128x8xf32>
    %211 = vector.extract_strided_slice %173 {offsets = [2, 0, 0], sizes = [8, 16, 8], strides = [1, 1, 1]} : vector<10x16x8xbf16> to vector<8x16x8xbf16>
    %212 = vector.shape_cast %211 : vector<8x16x8xbf16> to vector<128x8xbf16>
    %c6_104 = arith.constant 6 : index
    %c0_105 = arith.constant 0 : index
    %c0_106 = arith.constant 0 : index
    %213 = vector.load %arg7[%c6_104, %c0_105, %c0_106] : memref<9x8x8xbf16, #tpu.memory_space<vmem>>, vector<1x8x8xbf16>
    %214 = vector.shape_cast %213 : vector<1x8x8xbf16> to vector<8x8xbf16>
    %cst_107 = arith.constant dense<0.000000e+00> : vector<128x8xf32>
    %215 = tpu.matmul %212, %214, %cst_107 {dimension_numbers = #tpu.dot_dimension_numbers<[1], [0], [0], [1], [0, 0, 1, 1], [], []>} : vector<128x8xbf16>, vector<8x8xbf16>, vector<128x8xf32> -> vector<128x8xf32>
    %216 = arith.addf %210, %215 : vector<128x8xf32>
    %217 = vector.extract_strided_slice %170 {offsets = [2, 0, 0], sizes = [8, 16, 8], strides = [1, 1, 1]} : vector<10x16x8xbf16> to vector<8x16x8xbf16>
    %218 = vector.shape_cast %217 : vector<8x16x8xbf16> to vector<128x8xbf16>
    %c7_108 = arith.constant 7 : index
    %c0_109 = arith.constant 0 : index
    %c0_110 = arith.constant 0 : index
    %219 = vector.load %arg7[%c7_108, %c0_109, %c0_110] : memref<9x8x8xbf16, #tpu.memory_space<vmem>>, vector<1x8x8xbf16>
    %220 = vector.shape_cast %219 : vector<1x8x8xbf16> to vector<8x8xbf16>
    %cst_111 = arith.constant dense<0.000000e+00> : vector<128x8xf32>
    %221 = tpu.matmul %218, %220, %cst_111 {dimension_numbers = #tpu.dot_dimension_numbers<[1], [0], [0], [1], [0, 0, 1, 1], [], []>} : vector<128x8xbf16>, vector<8x8xbf16>, vector<128x8xf32> -> vector<128x8xf32>
    %222 = arith.addf %216, %221 : vector<128x8xf32>
    %223 = vector.extract_strided_slice %175 {offsets = [2, 0, 0], sizes = [8, 16, 8], strides = [1, 1, 1]} : vector<10x16x8xbf16> to vector<8x16x8xbf16>
    %224 = vector.shape_cast %223 : vector<8x16x8xbf16> to vector<128x8xbf16>
    %c8_112 = arith.constant 8 : index
    %c0_113 = arith.constant 0 : index
    %c0_114 = arith.constant 0 : index
    %225 = vector.load %arg7[%c8_112, %c0_113, %c0_114] : memref<9x8x8xbf16, #tpu.memory_space<vmem>>, vector<1x8x8xbf16>
    %226 = vector.shape_cast %225 : vector<1x8x8xbf16> to vector<8x8xbf16>
    %cst_115 = arith.constant dense<0.000000e+00> : vector<128x8xf32>
    %227 = tpu.matmul %224, %226, %cst_115 {dimension_numbers = #tpu.dot_dimension_numbers<[1], [0], [0], [1], [0, 0, 1, 1], [], []>} : vector<128x8xbf16>, vector<8x8xbf16>, vector<128x8xf32> -> vector<128x8xf32>
    %228 = arith.addf %222, %227 : vector<128x8xf32>
    %c0_116 = arith.constant 0 : index
    %c0_117 = arith.constant 0 : index
    %229 = vector.load %arg8[%c0_116, %c0_117] : memref<1x8xf32, #tpu.memory_space<vmem>>, vector<1x8xf32>
    %230 = vector.broadcast %229 : vector<1x8xf32> to vector<128x8xf32>
    %231 = arith.addf %228, %230 : vector<128x8xf32>
    %232 = vector.shape_cast %231 : vector<128x8xf32> to vector<8x16x8xf32>
    %cst_118 = arith.constant 0.000000e+00 : f32
    %233 = vector.broadcast %cst_118 : f32 to vector<8x16x16xf32>
    %234 = arith.maximumf %67, %233 : vector<8x16x16xf32>
    %235 = vector.shape_cast %234 : vector<8x16x16xf32> to vector<128x16xf32>
    %236 = arith.truncf %235 : vector<128x16xf32> to vector<128x16xbf16>
    %cst_119 = arith.constant 0.000000e+00 : f32
    %237 = vector.broadcast %cst_119 : f32 to vector<8x16x8xf32>
    %238 = arith.maximumf %150, %237 : vector<8x16x8xf32>
    %239 = vector.shape_cast %238 : vector<8x16x8xf32> to vector<128x8xf32>
    %240 = arith.truncf %239 : vector<128x8xf32> to vector<128x8xbf16>
    %cst_120 = arith.constant 0.000000e+00 : f32
    %241 = vector.broadcast %cst_120 : f32 to vector<8x16x8xf32>
    %242 = arith.maximumf %232, %241 : vector<8x16x8xf32>
    %243 = vector.shape_cast %242 : vector<8x16x8xf32> to vector<128x8xf32>
    %244 = arith.truncf %243 : vector<128x8xf32> to vector<128x8xbf16>
    %c0_121 = arith.constant 0 : index
    %c0_122 = arith.constant 0 : index
    %245 = vector.load %arg9[%c0_121, %c0_122] : memref<16x128xbf16, #tpu.memory_space<vmem>>, vector<16x128xbf16>
    %cst_123 = arith.constant dense<0.000000e+00> : vector<128x128xf32>
    %246 = tpu.matmul %236, %245, %cst_123 {dimension_numbers = #tpu.dot_dimension_numbers<[1], [0], [0], [1], [0, 0, 1, 1], [], []>} : vector<128x16xbf16>, vector<16x128xbf16>, vector<128x128xf32> -> vector<128x128xf32>
    %c0_124 = arith.constant 0 : index
    %c0_125 = arith.constant 0 : index
    %247 = vector.load %arg10[%c0_124, %c0_125] : memref<8x128xbf16, #tpu.memory_space<vmem>>, vector<8x128xbf16>
    %cst_126 = arith.constant dense<0.000000e+00> : vector<128x128xf32>
    %248 = tpu.matmul %240, %247, %cst_126 {dimension_numbers = #tpu.dot_dimension_numbers<[1], [0], [0], [1], [0, 0, 1, 1], [], []>} : vector<128x8xbf16>, vector<8x128xbf16>, vector<128x128xf32> -> vector<128x128xf32>
    %249 = arith.addf %246, %248 : vector<128x128xf32>
    %c0_127 = arith.constant 0 : index
    %c0_128 = arith.constant 0 : index
    %250 = vector.load %arg11[%c0_127, %c0_128] : memref<8x128xbf16, #tpu.memory_space<vmem>>, vector<8x128xbf16>
    %cst_129 = arith.constant dense<0.000000e+00> : vector<128x128xf32>
    %251 = tpu.matmul %244, %250, %cst_129 {dimension_numbers = #tpu.dot_dimension_numbers<[1], [0], [0], [1], [0, 0, 1, 1], [], []>} : vector<128x8xbf16>, vector<8x128xbf16>, vector<128x128xf32> -> vector<128x128xf32>
    %252 = arith.addf %249, %251 : vector<128x128xf32>
    %c0_130 = arith.constant 0 : index
    %c0_131 = arith.constant 0 : index
    %253 = vector.load %arg12[%c0_130, %c0_131] : memref<1x128xf32, #tpu.memory_space<vmem>>, vector<1x128xf32>
    %254 = vector.broadcast %253 : vector<1x128xf32> to vector<128x128xf32>
    %255 = arith.addf %252, %254 : vector<128x128xf32>
    %256 = vector.shape_cast %255 : vector<128x128xf32> to vector<1x8x16x128xf32>
    %257 = arith.truncf %256 : vector<1x8x16x128xf32> to vector<1x8x16x128xbf16>
    %c0_132 = arith.constant 0 : index
    %c0_133 = arith.constant 0 : index
    %c0_134 = arith.constant 0 : index
    %c0_135 = arith.constant 0 : index
    %258 = vector.load %arg13[%c0_132, %c0_133, %c0_134, %c0_135] : memref<1x8x16x128xbf16, #tpu.memory_space<vmem>>, vector<1x8x16x128xbf16>
    tpu.vector_store %arg13[%c0_132, %c0_133, %c0_134, %c0_135], %257 {strides = array<i32>} : memref<1x8x16x128xbf16, #tpu.memory_space<vmem>>, vector<1x8x16x128xbf16>,
    return
  }
  func.func @transform_0(%arg0: i32, %arg1: i32) -> (i32, i32, i32, i32) {
    %c0_i32 = arith.constant 0 : i32
    %c0_i32_0 = arith.constant 0 : i32
    %c0_i32_1 = arith.constant 0 : i32
    %c0_i32_2 = arith.constant 0 : i32
    return %arg0, %c0_i32, %c0_i32_0, %c0_i32_1 : i32, i32, i32, i32
  }
  func.func @transform_1(%arg0: i32, %arg1: i32) -> (i32, i32, i32) {
    %c0_i32 = arith.constant 0 : i32
    %c0_i32_0 = arith.constant 0 : i32
    %c0_i32_1 = arith.constant 0 : i32
    %c0_i32_2 = arith.constant 0 : i32
    return %c0_i32, %c0_i32_0, %c0_i32_1 : i32, i32, i32
  }
  func.func @transform_2(%arg0: i32, %arg1: i32) -> (i32, i32) {
    %c0_i32 = arith.constant 0 : i32
    %c0_i32_0 = arith.constant 0 : i32
    %c0_i32_1 = arith.constant 0 : i32
    return %c0_i32, %c0_i32_0 : i32, i32
  }
  func.func @transform_3(%arg0: i32, %arg1: i32) -> (i32, i32, i32) {
    %c0_i32 = arith.constant 0 : i32
    %c0_i32_0 = arith.constant 0 : i32
    %c0_i32_1 = arith.constant 0 : i32
    %c0_i32_2 = arith.constant 0 : i32
    return %c0_i32, %c0_i32_0, %c0_i32_1 : i32, i32, i32
  }
  func.func @transform_4(%arg0: i32, %arg1: i32) -> (i32, i32) {
    %c0_i32 = arith.constant 0 : i32
    %c0_i32_0 = arith.constant 0 : i32
    %c0_i32_1 = arith.constant 0 : i32
    return %c0_i32, %c0_i32_0 : i32, i32
  }
  func.func @transform_5(%arg0: i32, %arg1: i32) -> (i32, i32, i32) {
    %c0_i32 = arith.constant 0 : i32
    %c0_i32_0 = arith.constant 0 : i32
    %c0_i32_1 = arith.constant 0 : i32
    %c0_i32_2 = arith.constant 0 : i32
    return %c0_i32, %c0_i32_0, %c0_i32_1 : i32, i32, i32
  }
  func.func @transform_6(%arg0: i32, %arg1: i32) -> (i32, i32) {
    %c0_i32 = arith.constant 0 : i32
    %c0_i32_0 = arith.constant 0 : i32
    %c0_i32_1 = arith.constant 0 : i32
    return %c0_i32, %c0_i32_0 : i32, i32
  }
  func.func @transform_7(%arg0: i32, %arg1: i32) -> (i32, i32) {
    %c0_i32 = arith.constant 0 : i32
    %c0_i32_0 = arith.constant 0 : i32
    %c0_i32_1 = arith.constant 0 : i32
    return %c0_i32, %c0_i32_0 : i32, i32
  }
  func.func @transform_8(%arg0: i32, %arg1: i32) -> (i32, i32) {
    %c0_i32 = arith.constant 0 : i32
    %c0_i32_0 = arith.constant 0 : i32
    %c0_i32_1 = arith.constant 0 : i32
    return %c0_i32, %c0_i32_0 : i32, i32
  }
  func.func @transform_9(%arg0: i32, %arg1: i32) -> (i32, i32) {
    %c0_i32 = arith.constant 0 : i32
    %c0_i32_0 = arith.constant 0 : i32
    %c0_i32_1 = arith.constant 0 : i32
    return %c0_i32, %c0_i32_0 : i32, i32
  }
  func.func @transform_10(%arg0: i32, %arg1: i32) -> (i32, i32) {
    %c0_i32 = arith.constant 0 : i32
    %c0_i32_0 = arith.constant 0 : i32
    %c0_i32_1 = arith.constant 0 : i32
    return %c0_i32, %c0_i32_0 : i32, i32
  }
  func.func @transform_11(%arg0: i32, %arg1: i32) -> (i32, i32, i32, i32) {
    %c0_i32 = arith.constant 0 : i32
    %c0_i32_0 = arith.constant 0 : i32
    %c0_i32_1 = arith.constant 0 : i32
    return %arg0, %arg1, %c0_i32, %c0_i32_0 : i32, i32, i32, i32
  }
}

</mosaic_0001>

<bundles_post_ra>
// kernel: tpu_custom_call.1
= control target key start
LH: loop header
LB: loop body
LE: loop exit
PB: predicated region body
PF: predicated region fallthrough
CT: control target
= control target key end

     0   :  { %s11323_s0 = inlined_call_operand.hbm [shape: bf16[2,22,16,32], index: 0, kind: input, shape index: {}]   ;;  %s11324_s1 = inlined_call_operand.vmem [shape: bf16[9,32,24], index: 1, kind: input, shape index: {}]   ;;  %s11325_s2 = inlined_call_operand.vmem [shape: f32[1,24], index: 2, kind: input, shape index: {}]   ;;  %s11326_s3 = inlined_call_operand.vmem [shape: bf16[9,8,16], index: 3, kind: input, shape index: {}]   ;;  %s11327_s4 = inlined_call_operand.vmem [shape: f32[1,16], index: 4, kind: input, shape index: {}]   ;;  %s11328_s5 = inlined_call_operand.vmem [shape: bf16[9,8,8], index: 5, kind: input, shape index: {}]   ;;  %s11329_s6 = inlined_call_operand.vmem [shape: f32[1,8], index: 6, kind: input, shape index: {}]   ;;  %s11330_s7 = inlined_call_operand.vmem [shape: bf16[16,128], index: 7, kind: input, shape index: {}]   ;;  %s11331_s8 = inlined_call_operand.vmem [shape: bf16[8,128], index: 8, kind: input, shape index: {}]   ;;  %s11332_s9 = inlined_call_operand.vmem [shape: bf16[8,128], index: 9, kind: input, shape index: {}]   ;;  %s11333_s10 = inlined_call_operand.vmem [shape: f32[1,128], index: 10, kind: input, shape index: {}]   ;;  %s11334_s11 = inlined_call_operand.hbm [shape: bf16[2,16,16,128], index: 11, kind: output, shape index: {}]  }
   0x1   :  { %11349 = sst [smem:[#allocation57_spill]] %s11329_s6 }
   0x2   :  { %11350 = sst [smem:[#allocation58_spill]] %s11333_s10 }
   0x3   :  { %11351 = sst [smem:[#allocation59_spill]] %s11334_s11 }
   0x4   :  { %16 = vsyncpa [#allocation3], 0 }
   0x5   :  { %18 = vsyncpa [#allocation3 + $0x1], 0 }
   0x6   :  { %19 = vsyncpa [#allocation4], 0 }
   0x7   :  { %21 = vsyncpa [#allocation4 + $0x1], 0  ;;  %s8148_s17 = smov 0   ;;  %s8150_s18 = smov 0  }
   0x8   :  { %s8152_s19 = smov 0   ;;  %s8154_s20 = smov 0  }
   0x9   :  { %s8156_s21 = smov 0   ;;  %s8158_s22 = smov 0  }
   0xa   :  { %s8160_s23 = smov 0   ;;  %s8162_s24 = smov 0  }
   0xb   :  { %s8164_s25 = smov 0   ;;  %s8166_s26 = smov 0  }
   0xc   :  { %s8168_s27 = smov 0  }
   0xd LB: > { %11352 = sst [smem:[#allocation8_spill]] %s8046_s19  ;;  %s6287_s28 = sadd.s32 4294967295, %s8078_s27   ;;  %s8078_s27 = sphi %s8168_s27, %s27_s27   ;;  %s8074_s26 = sphi %s8166_s26, %s11638_s26   ;;  %s8070_s25 = sphi %s8164_s25, %s11632_s25   ;;  %s8066_s24 = sphi %s8162_s24, %s11631_s24   ;;  %s8062_s23 = sphi %s8160_s23, %s11630_s23   ;;  %s8058_s22 = sphi %s8158_s22, %s11629_s22   ;;  %s8054_s21 = sphi %s8156_s21, %s11637_s21   ;;  %s8050_s20 = sphi %s8154_s20, %s11636_s20   ;;  %s8046_s19 = sphi %s8152_s19, %s11627_s19   ;;  %s8042_s18 = sphi %s8150_s18, %s11635_s18   ;;  %s8038_s17 = sphi %s8148_s17, %s11634_s17  }
   0xe   : > { %11353 = sst [smem:[#allocation9_spill]] %s8058_s22  ;;  %s6288_s29 = sadd.s32 4294967294, %s8078_s27  }
   0xf   : > { %11354 = sst [smem:[#allocation10_spill]] %s8066_s24  ;;  %s36_s30 = sadd.s32 1, %s8070_s25 }
  0x10   : > { %11355 = sst [smem:[#allocation11_spill]] %s8070_s25  ;;  %s39_s12 = sadd.s32 1, %s8074_s26 }
  0x11   : > { %11356 = sst [smem:[#allocation12_spill]] %s8074_s26  ;;  %p37_p0 = scmp.ge.s32.totalorder %s36_s30, 2 }
  0x12   : > { %s46_s13 = sadd.s32 1, %s8058_s22  ;;  %p53_p1 = scmp.ne.s32.totalorder %s8058_s22, %s8054_s21 }
  0x13   : > { %p54_p2 = scmp.eq.s32.totalorder %s8078_s27, 0  ;;  %s11640_s30 = smov (%p37_p0, %s36_s30), 0 }
  0x14   : > { %11357 = sst [smem:[#allocation13_spill]] %s11640_s30  ;;  %s11642_s12 = smov (!%p37_p0, %s39_s12), %s8074_s26 }
  0x15   : > { %p8212_p3 = por %p54_p2, %p53_p1  ;;  %p59_p4 = scmp.ne.s32.totalorder %s8054_s21, %s8050_s20 }
  0x16   : > { %p41_p5 = scmp.ge.s32.totalorder %s11642_s12, 2  ;;  %p60_p6 = scmp.eq.s32.totalorder %s6287_s28, 0 }
  0x17   : > { %s280_s15 = ssub.s32 %s8070_s25, %s11640_s30  ;;  %s284_s16 = sadd.s32 1, %s8046_s19 }
  0x18   : > { %s11644_s12 = smov (%p41_p5, %s11642_s12), 0  ;;  %p8222_p7 = por %p60_p6, %p59_p4 }
  0x19   : > { %11359 = sst [smem:[#allocation14_spill]] %s11644_s12  ;;  %p294_p8 = scmp.ne.s32.totalorder %s8046_s19, %s8042_s18 }
  0x1a   : > { %s43_s24 = ssub.s32 %s8074_s26, %s11644_s12  ;;  %p295_p9 = scmp.eq.s32.totalorder %s6287_s28, 3 }
  0x1b   : > { %p44_p10 = scmp.eq.s32.totalorder %s43_s24, 0  ;;  %s281_s20 = sor.u32 %s280_s15, %s43_s24 }
  0x1c   : > { %p282_p11 = scmp.eq.s32.totalorder %s281_s20, 0  ;;  %p8230_p12 = por %p295_p9, %p294_p8 }
  0x1d   : > { %s8235_s25 = scalar_select %p44_p10, %s8058_s22, %s46_s13  }
  0x1e   : > { %s8238_s10 = scalar_select %p282_p11, %s8046_s19, %s284_s16  }
  0x1f   : > { %11362 = sst [smem:[#allocation15_spill]] %s8235_s25  ;;  %p300_p13 = scmp.ne.s32.totalorder %s8042_s18, %s8038_s17 }
  0x20   : > { %11363 = sst [smem:[#allocation16_spill]] %s8238_s10  ;;  %p301_p0 = scmp.eq.s32.totalorder %s6288_s29, 3 }
  0x21   : > { %p7801_p1 = scmp.lt.s32.totalorder %s8078_s27, 4  ;;  %s351_s28 = sand.u32 1, %s8058_s22  }
  0x22   : > { %p8243_p2 = por %p301_p0, %p300_p13  ;;  %s7786_s12 = smul.u32 176, %s351_s28 }
  0x23   : > { %s7787_s24 = smul.u32 2816, %s8074_s26  ;;  %p8251_p4 = pnand %p7801_p1, %p8212_p3 }
  0x24   : > { %s355_s25 = scalar_lea.vmem [#allocation2], %s7786_s12  ;;  %p6292_p5 = scmp.ge.s32.totalorder %s8078_s27, 1 }
  0x25   : > { %s361_s16 = scalar_lea.hbm %s11323_s0, %s7787_s24  ;;  %s362_s29 = sshll.u32 %s355_s25, 4  ;;  %s363_s29 = int_to_ptr.vmem [resolvable:$true] %s362_s29 }
  0x26   : > { %s352_s10 = scalar_lea.sflag [#allocation3], %s351_s28  ;;  %p7932_p6 = pneg %p8251_p4 }
  0x27   : > { %s7943_s22 = scalar_lea.vmem %s363_s29, 2816  ;;  %s8080_s14 = smov [#allocation2]  }
  0x28   : > { %p7944_p8 = scmp.ne.s32.totalorder %s363_s29, %s7943_s22  ;;  %s7948_s26 = sshll.u32 %s8080_s14, 4  ;;  %s7949_s26 = int_to_ptr.vmem [resolvable:$false] %s7948_s26 }
  0x29   : > { %s7950_s19 = scalar_lea.vmem %s7949_s26, 5632  ;;  %p7951_p3 = scmp.lt.s32.totalorder %s363_s29, %s7949_s26 }
  0x2a   : > { %p7946_p9 = pnand %p7944_p8, %p7932_p6  ;;  %p7952_p11 = scmp.lt.s32.totalorder %s7950_s19, %s7943_s22 }
  0x2c   : > { %p7947_p10 = pneg %p7946_p9  ;;  %p7953_p13 = por %p7952_p11, %p7951_p3 }
  0x2e   : > { %p7954_p0 = pnand %p7953_p13, %p7947_p10 }
  0x30   : > { %7957 = shalt.err (!%p7954_p0)
}
  0x31   : > { %s8081_s12 = smov 64   ;;  %s8082_s25 = smov 4  }
  0x32   : > { %7796 = dma.hbm_to_vmem [thread:$0]  (!%p8251_p4), %s361_s16, 2816, %s363_s29, %s352_s10, %s8081_s12, %s8081_s12, %s8082_s25  }
  0x33   : > { %p370_p1 = scmp.lt.s32.totalorder %s8078_s27, 5 }
  0x35   : > { %p371_p6 = pnand %p6292_p5, %p370_p1 }
  0x37   : > { %374 = sbr.rel (%p371_p6) target bundleno = 1663 (0x67f), region = 64 }
  0x3c   : > { %s376_s28 = sand.u32 1, %s8054_s21  }
  0x3d   : > { %s7788_s24 = smul.u32 176, %s376_s28  ;;  %s377_s26 = scalar_lea.sflag [#allocation3], %s376_s28 }
  0x3f   : > { %s380_s19 = scalar_lea.vmem [#allocation2], %s7788_s24 }
  0x40   : > { %8029 = dma.done.wait (%p8222_p7), %s377_s26, 2816  }
  0x41   : > { %8031 = vsyncadd (%p8222_p7), %s377_s26, 4294964480  ;;  %s6702_s22 = sshll.u32 %s8062_s23, 6  ;;  %vm636_vm0 = vsmask.f32 256  ;;  %v7897_v0 = vld [vmem:[%s11324_s1 + $0x18] sm:$0xff]   ;;  %v7898_v1 = vld [vmem:[%s11324_s1 + $0x8] sm:$0xff]  }
  0x42   : > { %s8278_s16 = scalar_lea.vmem %s380_s19, %s6702_s22 [#allocation2]  ;;  %7100 = vmatprep.subr.bf16.mxu0 %v7897_v0  ;;  %v7899_v2 = vld [vmem:[%s11324_s1 + $0x10] sm:$0xff]   ;;  %7128 = vmatprep.subr.bf16.mxu1 %v7898_v1  ;;  %v7900_v3 = vld [vmem:[%s11324_s1] sm:$0xff]   ;;  %vm732_vm1 = vcmask 261120   ;;  %vm635_vm2 = vcmask 1040384   ;;  %v7903_v10 = vld [vmem:[%s11324_s1 + $0x28] sm:$0xff]   ;;  %v11366_v13 = vmov 0 }
  0x43   : > { %7101 = vmatpush3.bf16.msra.mxu0 %v7897_v0  ;;  %7129 = vmatpush3.bf16.msra.mxu1 %v7898_v1  ;;  %v8287_v4 = vld [vmem:[%s8278_s16] sm:$0xff]   ;;  %v8290_v5 = vld [vmem:[%s8278_s16 + $0x8] sm:$0xff]   ;;  %v8302_v11 = vld [vmem:[%s8278_s16 + $0x10] sm:$0xff]   ;;  %vm694_vm4 = vcmask 1047552   ;;  %vm695_vm5 = vsmask.f32 7424 }
  0x44   : > { %7102 = vmatprep.subr.bf16.mxu0 %v7899_v2  ;;  %7130 = vmatprep.subr.bf16.mxu1 %v7900_v3  ;;  %v524_v6 = vshrl.u32 %v8287_v4, 16  ;;  %v527_v7 = vshll.u32 %v8287_v4, 16  ;;  %v531_v8 = vshrl.u32 %v8290_v5, 16  ;;  %v534_v9 = vshll.u32 %v8290_v5, 16  ;;  %vm8307_vm3 = vmand %vm635_vm2, %vm636_vm0  ;;  %v8320_v18 = vld [vmem:[%s8278_s16 + $0x18] sm:$0xff]   ;;  %v8329_v21 = vld [vmem:[%s8278_s16 + $0x20] sm:$0xff]  }
  0x45   : > { %7104 = vmatprep.mubr.msk.bf16.mxu0 %vm732_vm1, %v8287_v4  ;;  %v11367_v13 = vsel %vm8307_vm3, 4294967295, %v11366_v13  ;;  %v538_v15 = vshrl.u32 %v8302_v11, 16  ;;  %v541_v16 = vshll.u32 %v8302_v11, 16  ;;  %v545_v23 = vshrl.u32 %v8320_v18, 16  ;;  %v8336_v25 = vld [vmem:[%s8278_s16 + $0x28] sm:$0xff]   ;;  %v8348_v30 = vld [vmem:[%s8278_s16 + $0x30] sm:$0xff]   ;;  %vm8506_vm6 = vmand %vm694_vm4, %vm695_vm5 }
  0x46   : > { %v526_v12 = vrot.slane %v524_v6, 7  ;;  %11368 = vst [vmem:[#allocation17_spill] sm:$0xff] %v11367_v13  ;;  %v533_v14 = vrot.slane %v531_v8, 7  ;;  %v548_v24 = vshll.u32 %v8320_v18, 16  ;;  %v552_v28 = vshrl.u32 %v8329_v21, 16  ;;  %v7910_v37 = vld [vmem:[%s11324_s1 + $0x20] sm:$0xff]  }
  0x47   : > { %7103 = vmatpush3.bf16.msra.mxu0 %v7899_v2  ;;  %7131 = vmatpush3.bf16.msra.mxu1 %v7900_v3  ;;  %v540_v20 = vrot.slane %v538_v15, 7  ;;  %v555_v29 = vshll.u32 %v8329_v21, 16  ;;  %v547_v31 = vrot.slane %v545_v23, 7  ;;  %v559_v34 = vshrl.u32 %v8336_v25, 16  ;;  %v8375_v40 = vld [vmem:[%s8278_s16 + $0x38] sm:$0xff]   ;;  %v8393_v46 = vld [vmem:[%s8278_s16 + $0x40] sm:$0xff]  }
  0x48   : > { %7156 = vmatprep.subr.bf16.mxu0 %v7903_v10  ;;  %v529_v17 = vor.u32 %v527_v7, %v526_v12  ;;  %v536_v19 = vor.u32 %v534_v9, %v533_v14  ;;  %v554_v33 = vrot.slane %v552_v28, 7  ;;  %v566_v35 = vshrl.u32 %v8348_v30, 16  ;;  %v7915_v49 = vld [vmem:[%s11324_s1 + $0x38] sm:$0xff]   ;;  %v7916_v52 = vld [vmem:[%s11324_s1 + $0x30] sm:$0xff]   ;;  %v8414_v53 = vld [vmem:[%s11324_s1 + $0x48] sm:$0xff]   ;;  %s6294_s26 = sshll.u32 %s8062_s23, 3 }
  0x49   : > { %v543_v27 = vor.u32 %v541_v16, %v540_v20  ;;  %v550_v36 = vor.u32 %v548_v24, %v547_v31  ;;  %v562_v39 = vshll.u32 %v8336_v25, 16  ;;  %v561_v42 = vrot.slane %v559_v34, 7  ;;  %7184 = vmatprep.subr.bf16.mxu1 %v7915_v49  ;;  %v8428_v57 = vld [vmem:[%s8278_s16 + $0x48] sm:$0xff]   ;;  %v8438_v61 = vld [vmem:[%s8278_s16 + $0x50] sm:$0xff]   ;;  %v8444_v62 = vld [vmem:[%s11324_s1 + $0x58] sm:$0xff]   ;;  %s6470_s19 = sadd.s32 4294967294, %s6294_s26 }
  0x4a   : > { %7105 = vmatmul.mubr.msk.bf16.vlgmr.msra.gmra.mxu0 %vm732_vm1, %v8290_v5  ;;  %v638_v22 = vsel %vm8307_vm3, 0, %v529_v17  ;;  %v8341_v26 = vsel %vm8307_vm3, 0, %v536_v19  ;;  %v557_v38 = vor.u32 %v555_v29, %v554_v33  ;;  %v568_v43 = vrot.slane %v566_v35, 7  ;;  %v8470_v17 = vld [vmem:[%s8278_s16 + $0x58] sm:$0xff]   ;;  %s8083_s13 = smov 112   ;;  %s6570_s11 = sadd.s32 4294967295, %s6294_s26 }
  0x4b   : > { %7157 = vmatpush3.bf16.msra.mxu0 %v7903_v10  ;;  %7108 = vmatprep.mubr.msk.bf16.mxu0 %vm732_vm1, %v8302_v11  ;;  %v8356_v32 = vsel %vm8307_vm3, 0, %v543_v27  ;;  %v8379_v41 = vsel %vm8307_vm3, 0, %v550_v36  ;;  %v569_v44 = vshll.u32 %v8348_v30, 16  ;;  %v573_v47 = vshrl.u32 %v8375_v40, 16  ;;  %s8084_s28 = smov 120   ;;  %s11603_s20 = sld [smem:[#allocation57_spill]] }
  0x4c   : > { %7132 = vmatprep.mubr.msk.bf16.mxu1 %vm732_vm1, %v638_v22  ;;  %7158 = vmatprep.subr.bf16.mxu0 %v7910_v37  ;;  %v8390_v45 = vsel %vm8307_vm3, 0, %v557_v38  ;;  %v564_v48 = vor.u32 %v562_v39, %v561_v42  ;;  %v580_v51 = vshrl.u32 %v8393_v46, 16  ;;  %v576_v55 = vshll.u32 %v8375_v40, 16  ;;  %s6719_s25 = sshll.u32 %s8062_s23, 4  ;;  %s11625_s10 = sld [smem:[#allocation59_spill]] }
  0x4d   : > { %7133 = vmatmul.mubr.msk.bf16.vlgmr.msra.gmra.mxu1 %vm732_vm1, %v8341_v26  ;;  %v571_v50 = vor.u32 %v569_v44, %v568_v43  ;;  %v575_v54 = vrot.slane %v573_v47, 7  ;;  %v583_v60 = vshll.u32 %v8393_v46, 16  ;;  %v587_v0 = vshrl.u32 %v8428_v57, 16 }
  0x4e   : > { %7136 = vmatprep.mubr.msk.bf16.mxu1 %vm732_vm1, %v8356_v32  ;;  %7185 = vmatpush3.bf16.msra.mxu1 %v7915_v49  ;;  %v8423_v56 = vsel %vm8307_vm3, 0, %v564_v48  ;;  %v582_v59 = vrot.slane %v580_v51, 7  ;;  %v594_v2 = vshrl.u32 %v8438_v61, 16  ;;  %v590_v3 = vshll.u32 %v8428_v57, 16 }
  0x4f   : > { %7159 = vmatpush3.bf16.msra.mxu0 %v7910_v37  ;;  %7186 = vmatprep.subr.bf16.mxu1 %v7916_v52  ;;  %v8432_v58 = vsel %vm8307_vm3, 0, %v571_v50  ;;  %v578_v63 = vor.u32 %v576_v55, %v575_v54  ;;  %v597_v12 = vshll.u32 %v8438_v61, 16  ;;  %v589_v14 = vrot.slane %v587_v0, 7 }
  0x50   : > { %7212 = vmatprep.subr.bf16.mxu0 %v8414_v53  ;;  %v585_v1 = vor.u32 %v583_v60, %v582_v59  ;;  %v596_v20 = vrot.slane %v594_v2, 7  ;;  %v652_v22 = vrot.slane %v527_v7, 1  ;;  %v601_v31 = vshrl.u32 %v8470_v17, 16 }
  0x51   : > { %v8462_v10 = vsel %vm8307_vm3, 0, %v578_v63  ;;  %v592_v27 = vor.u32 %v590_v3, %v589_v14  ;;  %v604_v37 = vshll.u32 %v8470_v17, 16  ;;  %v11369_v43 = vmov 0  ;;  %v7921_v63 = vld [vmem:[%s11324_s1 + $0x50] sm:$0xff]   ;;  %v7924_v14 = vld [vmem:[%s11324_s1 + $0x78] sm:$0xff]  }
  0x52   : > { %7109 = vmatmul.mubr.msk.bf16.gmra.mxu0 %vm732_vm1, %v8320_v18  ;;  %7187 = vmatpush3.bf16.msra.mxu1 %v7916_v52  ;;  %v8474_v19 = vsel %vm8307_vm3, 0, %v585_v1  ;;  %v599_v33 = vor.u32 %v597_v12, %v596_v20  ;;  %v603_v7 = vrot.slane %v601_v31, 7  ;;  %v653_v42 = vor.u32 %v652_v22, %v524_v6 }
  0x53   : > { %7112 = vmatprep.mubr.msk.bf16.mxu0 %vm732_vm1, %v8329_v21  ;;  %7240 = vmatprep.subr.bf16.mxu1 %v8444_v62  ;;  %v8493_v36 = vsel %vm8307_vm3, 0, %v592_v27  ;;  %v11370_v43 = vsel %vm8506_vm6, 4294967295, %v11369_v43  ;;  %v654_v48 = vrot.slane %v534_v9, 1  ;;  %v656_v6 = vrot.slane %v541_v16, 1 }
  0x54   : > { %v8502_v38 = vsel %vm8307_vm3, 0, %v599_v33  ;;  %11371 = vst [vmem:[#allocation18_spill] sm:$0xff] %v11370_v43  ;;  %v606_v49 = vor.u32 %v604_v37, %v603_v7  ;;  %v697_v4 = vsel %vm8506_vm6, %v653_v42, 0  ;;  %v658_v54 = vrot.slane %v548_v24, 1  ;;  %v8642_v7 = vld [vmem:[%s8278_s16 + $0x60] sm:$0xff]  }
  0x55   : > { %7137 = vmatmul.mubr.msk.bf16.gmra.mxu1 %vm732_vm1, %v8379_v41  ;;  %v655_v9 = vor.u32 %v654_v48, %v531_v8  ;;  %v657_v52 = vor.u32 %v656_v6, %v538_v15  ;;  %v660_v8 = vrot.slane %v555_v29, 1  ;;  %v7918_v15 = vld [vmem:[%s11324_s1 + $0x40] sm:$0xff]   ;;  %v7922_v29 = vld [vmem:[%s11324_s1 + $0x68] sm:$0xff]   ;;  %v664_v1 = vrot.slane %v569_v44, 1 }
  0x56   : > { %7140 = vmatprep.mubr.msk.bf16.mxu1 %vm732_vm1, %v8390_v45  ;;  %v8526_v50 = vsel %vm8307_vm3, 0, %v606_v49  ;;  %v659_v24 = vor.u32 %v658_v54, %v545_v23  ;;  %v662_v23 = vrot.slane %v562_v39, 1  ;;  %v666_v20 = vrot.slane %v576_v55, 1 }
  0x57   : > { %v8537_v16 = vsel %vm8506_vm6, %v655_v9, 0  ;;  %v8545_v59 = vsel %vm8506_vm6, %v657_v52, 0  ;;  %v665_v44 = vor.u32 %v664_v1, %v566_v35  ;;  %v668_v35 = vrot.slane %v583_v60, 1  ;;  %v7923_v9 = vld [vmem:[%s11324_s1 + $0x60] sm:$0xff]   ;;  %v7925_v52 = vld [vmem:[%s11324_s1 + $0x70] sm:$0xff]  }
  0x58   : > { %v663_v39 = vor.u32 %v662_v23, %v559_v34  ;;  %v667_v22 = vor.u32 %v666_v20, %v573_v47  ;;  %v670_v60 = vrot.slane %v590_v3, 1  ;;  %v672_v47 = vrot.slane %v597_v12, 1 }
  0x59   : > { %v8607_v34 = vsel %vm8506_vm6, %v665_v44, 0  ;;  %v669_v55 = vor.u32 %v668_v35, %v580_v51  ;;  %v674_v42 = vrot.slane %v604_v37, 1  ;;  %vm11346_vm7 = vcmask 1043456  }
  0x5a   : > { %7113 = vmatmul.mubr.msk.bf16.gmra.mxu0 %vm732_vm1, %v8336_v25  ;;  %v8623_v27 = vsel %vm8506_vm6, %v667_v22, 0  ;;  %v671_v51 = vor.u32 %v670_v60, %v587_v0  ;;  %v673_v3 = vor.u32 %v672_v47, %v594_v2  ;;  %v608_v0 = vshrl.u32 %v8642_v7, 16 }
  0x5b   : > { %7116 = vmatprep.mubr.msk.bf16.mxu0 %vm732_vm1, %v8348_v30  ;;  %v8631_v33 = vsel %vm8506_vm6, %v669_v55, 0  ;;  %v675_v2 = vor.u32 %v674_v42, %v601_v31 }
  0x5c   : > { %v8650_v12 = vsel %vm8506_vm6, %v671_v51, 0  ;;  %v8659_v48 = vsel %vm8506_vm6, %v673_v3, 0  ;;  %v610_v49 = vrot.slane %v608_v0, 7 }
  0x5d   : > { %7141 = vmatmul.mubr.msk.bf16.gmra.mxu1 %vm732_vm1, %v8423_v56  ;;  %v8672_v37 = vsel %vm8506_vm6, %v675_v2, 0 }
  0x5e   : > { %7144 = vmatprep.mubr.msk.bf16.mxu1 %vm732_vm1, %v8432_v58 }
  0x62   : > { %7117 = vmatmul.mubr.msk.bf16.gmra.mxu0 %vm732_vm1, %v8375_v40 }
  0x63   : > { %7120 = vmatprep.mubr.msk.bf16.mxu0 %vm732_vm1, %v8393_v46 }
  0x65   : > { %7145 = vmatmul.mubr.msk.bf16.gmra.mxu1 %vm732_vm1, %v8462_v10 }
  0x66   : > { %7148 = vmatprep.mubr.msk.bf16.mxu1 %vm732_vm1, %v8474_v19 }
  0x6a   : > { %7121 = vmatmul.mubr.msk.bf16.gmra.mxu0 %vm732_vm1, %v8428_v57 }
  0x6b   : > { %7124 = vmatprep.mubr.msk.bf16.mxu0 %vm732_vm1, %v8438_v61 }
  0x6d   : > { %7149 = vmatmul.mubr.msk.bf16.gmra.mxu1 %vm732_vm1, %v8493_v36 }
  0x6e   : > { %7152 = vmatprep.mubr.msk.bf16.mxu1 %vm732_vm1, %v8502_v38 }
  0x72   : > { %7125 = vmatmul.mubr.msk.bf16.gmra.mxu0 %vm732_vm1, %v8470_v17 }
  0x73   : > { %7160 = vmatprep.mubr.msk.bf16.mxu0 %vm732_vm1, %v697_v4  ;;  %v611_v4 = vshll.u32 %v8642_v7, 16 }
  0x75   : > { %7153 = vmatmul.mubr.msk.bf16.gmra.mxu1 %vm732_vm1, %v8526_v50  ;;  %v613_v6 = vor.u32 %v611_v4, %v610_v49 }
  0x76   : > { %7188 = vmatprep.mubr.msk.bf16.mxu1 %vm732_vm1, %v8341_v26  ;;  %v661_v26 = vor.u32 %v660_v8, %v552_v28 }
  0x77   : > { %v8680_v31 = vsel %vm8307_vm3, 0, %v613_v6 }
  0x78   : > { %v8579_v28 = vsel %vm8506_vm6, %v661_v26, 0 }
  0x7a   : > { %7161 = vmatmul.mubr.msk.bf16.vlgmr.msra.gmra.mxu0 %vm732_vm1, %v8537_v16 }
  0x7b   : > { %7213 = vmatpush3.bf16.msra.mxu0 %v8414_v53  ;;  %7164 = vmatprep.mubr.msk.bf16.mxu0 %vm732_vm1, %v8545_v59  ;;  %v8571_v53 = vsel %vm8506_vm6, %v659_v24, 0 }
  0x7c   : > { %7214 = vmatprep.subr.bf16.mxu0 %v7918_v15 }
  0x7d   : > { %7189 = vmatmul.mubr.msk.bf16.vlgmr.msra.gmra.mxu1 %vm732_vm1, %v8356_v32 }
  0x7e   : > { %7192 = vmatprep.mubr.msk.bf16.mxu1 %vm732_vm1, %v8379_v41  ;;  %7241 = vmatpush3.bf16.msra.mxu1 %v8444_v62  ;;  %v8599_v62 = vsel %vm8506_vm6, %v663_v39, 0 }
  0x7f   : > { %7215 = vmatpush3.bf16.msra.mxu0 %v7918_v15  ;;  %7242 = vmatprep.subr.bf16.mxu1 %v7921_v63  ;;  %v7927_v15 = vld [vmem:[%s11324_s1 + $0x80] sm:$0xff]  }
  0x80   : > { %7268 = vmatprep.subr.bf16.mxu0 %v7922_v29 }
  0x82   : > { %7165 = vmatmul.mubr.msk.bf16.gmra.mxu0 %vm732_vm1, %v8571_v53  ;;  %7243 = vmatpush3.bf16.msra.mxu1 %v7921_v63 }
  0x83   : > { %7168 = vmatprep.mubr.msk.bf16.mxu0 %vm732_vm1, %v8579_v28  ;;  %7296 = vmatprep.subr.bf16.mxu1 %v7924_v14 }
  0x85   : > { %7193 = vmatmul.mubr.msk.bf16.gmra.mxu1 %vm732_vm1, %v8390_v45 }
  0x86   : > { %7196 = vmatprep.mubr.msk.bf16.mxu1 %vm732_vm1, %v8423_v56 }
  0x8a   : > { %7169 = vmatmul.mubr.msk.bf16.gmra.mxu0 %vm732_vm1, %v8599_v62 }
  0x8b   : > { %7172 = vmatprep.mubr.msk.bf16.mxu0 %vm732_vm1, %v8607_v34 }
  0x8d   : > { %7197 = vmatmul.mubr.msk.bf16.gmra.mxu1 %vm732_vm1, %v8432_v58 }
  0x8e   : > { %7200 = vmatprep.mubr.msk.bf16.mxu1 %vm732_vm1, %v8462_v10 }
  0x92   : > { %7173 = vmatmul.mubr.msk.bf16.gmra.mxu0 %vm732_vm1, %v8623_v27 }
  0x93   : > { %7176 = vmatprep.mubr.msk.bf16.mxu0 %vm732_vm1, %v8631_v33 }
  0x95   : > { %7201 = vmatmul.mubr.msk.bf16.gmra.mxu1 %vm732_vm1, %v8474_v19 }
  0x96   : > { %7204 = vmatprep.mubr.msk.bf16.mxu1 %vm732_vm1, %v8493_v36 }
  0x9a   : > { %7177 = vmatmul.mubr.msk.bf16.gmra.mxu0 %vm732_vm1, %v8650_v12 }
  0x9b   : > { %7180 = vmatprep.mubr.msk.bf16.mxu0 %vm732_vm1, %v8659_v48 }
  0x9d   : > { %7205 = vmatmul.mubr.msk.bf16.gmra.mxu1 %vm732_vm1, %v8502_v38 }
  0x9e   : > { %7208 = vmatprep.mubr.msk.bf16.mxu1 %vm732_vm1, %v8526_v50 }
  0xa2   : > { %7181 = vmatmul.mubr.msk.bf16.gmra.mxu0 %vm732_vm1, %v8672_v37 }
  0xa3   : > { %7216 = vmatprep.mubr.msk.bf16.mxu0 %vm732_vm1, %v8290_v5  ;;  %v7926_v5 = vld [vmem:[%s11324_s1 + $0x88] sm:$0xff]  }
  0xa5   : > { %7209 = vmatmul.mubr.msk.bf16.gmra.mxu1 %vm732_vm1, %v8680_v31 }
  0xa6   : > { %7244 = vmatprep.mubr.msk.bf16.mxu1 %vm732_vm1, %v8537_v16  ;;  %v676_v16 = vrot.slane %v611_v4, 1 }
  0xa8   : > { %v677_v54 = vor.u32 %v676_v16, %v608_v0 }
  0xaa   : > { %7217 = vmatmul.mubr.msk.bf16.vlgmr.msra.gmra.mxu0 %vm732_vm1, %v8302_v11  ;;  %v8741_v8 = vsel %vm8506_vm6, %v677_v54, 0 }
  0xab   : > { %7269 = vmatpush3.bf16.msra.mxu0 %v7922_v29  ;;  %7220 = vmatprep.mubr.msk.bf16.mxu0 %vm732_vm1, %v8320_v18 }
  0xac   : > { %7270 = vmatprep.subr.bf16.mxu0 %v7923_v9 }
  0xad   : > { %7245 = vmatmul.mubr.msk.bf16.vlgmr.msra.gmra.mxu1 %vm732_vm1, %v8545_v59 }
  0xae   : > { %7248 = vmatprep.mubr.msk.bf16.mxu1 %vm732_vm1, %v8571_v53  ;;  %7297 = vmatpush3.bf16.msra.mxu1 %v7924_v14 }
  0xaf   : > { %7271 = vmatpush3.bf16.msra.mxu0 %v7923_v9  ;;  %7298 = vmatprep.subr.bf16.mxu1 %v7925_v52 }
  0xb0   : > { %7324 = vmatprep.subr.bf16.mxu0 %v7926_v5 }
  0xb2   : > { %7221 = vmatmul.mubr.msk.bf16.gmra.mxu0 %vm732_vm1, %v8329_v21  ;;  %7299 = vmatpush3.bf16.msra.mxu1 %v7925_v52 }
  0xb3   : > { %7224 = vmatprep.mubr.msk.bf16.mxu0 %vm732_vm1, %v8336_v25 }
  0xb5   : > { %7249 = vmatmul.mubr.msk.bf16.gmra.mxu1 %vm732_vm1, %v8579_v28 }
  0xb6   : > { %7252 = vmatprep.mubr.msk.bf16.mxu1 %vm732_vm1, %v8599_v62 }
  0xba   : > { %7225 = vmatmul.mubr.msk.bf16.gmra.mxu0 %vm732_vm1, %v8348_v30 }
  0xbb   : > { %7228 = vmatprep.mubr.msk.bf16.mxu0 %vm732_vm1, %v8375_v40 }
  0xbd   : > { %7253 = vmatmul.mubr.msk.bf16.gmra.mxu1 %vm732_vm1, %v8607_v34 }
  0xbe   : > { %7256 = vmatprep.mubr.msk.bf16.mxu1 %vm732_vm1, %v8623_v27 }
  0xc2   : > { %7229 = vmatmul.mubr.msk.bf16.gmra.mxu0 %vm732_vm1, %v8393_v46 }
  0xc3   : > { %7232 = vmatprep.mubr.msk.bf16.mxu0 %vm732_vm1, %v8428_v57 }
  0xc5   : > { %7257 = vmatmul.mubr.msk.bf16.gmra.mxu1 %vm732_vm1, %v8631_v33 }
  0xc6   : > { %7260 = vmatprep.mubr.msk.bf16.mxu1 %vm732_vm1, %v8650_v12 }
  0xca   : > { %7233 = vmatmul.mubr.msk.bf16.gmra.mxu0 %vm732_vm1, %v8438_v61 }
  0xcb   : > { %7236 = vmatprep.mubr.msk.bf16.mxu0 %vm732_vm1, %v8470_v17 }
  0xcd   : > { %7261 = vmatmul.mubr.msk.bf16.gmra.mxu1 %vm732_vm1, %v8659_v48 }
  0xce   : > { %7264 = vmatprep.mubr.msk.bf16.mxu1 %vm732_vm1, %v8672_v37 }
  0xd2   : > { %7237 = vmatmul.mubr.msk.bf16.gmra.mxu0 %vm732_vm1, %v8642_v7 }
  0xd3   : > { %7272 = vmatprep.mubr.msk.bf16.mxu0 %vm732_vm1, %v8356_v32 }
  0xd5   : > { %7265 = vmatmul.mubr.msk.bf16.gmra.mxu1 %vm732_vm1, %v8741_v8 }
  0xd6   : > { %7300 = vmatprep.mubr.msk.bf16.mxu1 %vm732_vm1, %v8302_v11  ;;  %v8777_v11 = vld [vmem:[%s8278_s16 + $0x68] sm:$0xff]   ;;  %s11624_s16 = sld [smem:[#allocation10_spill]] }
  0xda   : > { %7273 = vmatmul.mubr.msk.bf16.vlgmr.msra.gmra.mxu0 %vm732_vm1, %v8379_v41 }
  0xdb   : > { %7325 = vmatpush3.bf16.msra.mxu0 %v7926_v5  ;;  %7276 = vmatprep.mubr.msk.bf16.mxu0 %vm732_vm1, %v8390_v45 }
  0xdc   : > { %7326 = vmatprep.subr.bf16.mxu0 %v7927_v15 }
  0xdd   : > { %7301 = vmatmul.mubr.msk.bf16.vlgmr.msra.gmra.mxu1 %vm732_vm1, %v8320_v18  ;;  %v615_v18 = vshrl.u32 %v8777_v11, 16 }
  0xde   : > { %7304 = vmatprep.mubr.msk.bf16.mxu1 %vm732_vm1, %v8329_v21 }
  0xdf   : > { %7327 = vmatpush3.bf16.msra.mxu0 %v7927_v15  ;;  %v617_v21 = vrot.slane %v615_v18, 7 }
  0xe2   : > { %7277 = vmatmul.mubr.msk.bf16.gmra.mxu0 %vm732_vm1, %v8423_v56 }
  0xe3   : > { %7280 = vmatprep.mubr.msk.bf16.mxu0 %vm732_vm1, %v8432_v58 }
  0xe5   : > { %7305 = vmatmul.mubr.msk.bf16.gmra.mxu1 %vm732_vm1, %v8336_v25  ;;  %v618_v25 = vshll.u32 %v8777_v11, 16 }
  0xe6   : > { %7308 = vmatprep.mubr.msk.bf16.mxu1 %vm732_vm1, %v8348_v30 }
  0xe7   : > { %v620_v30 = vor.u32 %v618_v25, %v617_v21 }
  0xe9   : > { %v651_v32 = vsel %vm8307_vm3, 0, %v620_v30 }
  0xea   : > { %7281 = vmatmul.mubr.msk.bf16.gmra.mxu0 %vm732_vm1, %v8462_v10 }
  0xeb   : > { %7284 = vmatprep.mubr.msk.bf16.mxu0 %vm732_vm1, %v8474_v19 }
  0xed   : > { %7309 = vmatmul.mubr.msk.bf16.gmra.mxu1 %vm732_vm1, %v8375_v40 }
  0xee   : > { %7312 = vmatprep.mubr.msk.bf16.mxu1 %vm732_vm1, %v8393_v46 }
  0xf2   : > { %7285 = vmatmul.mubr.msk.bf16.gmra.mxu0 %vm732_vm1, %v8493_v36 }
  0xf3   : > { %7288 = vmatprep.mubr.msk.bf16.mxu0 %vm732_vm1, %v8502_v38 }
  0xf5   : > { %7313 = vmatmul.mubr.msk.bf16.gmra.mxu1 %vm732_vm1, %v8428_v57 }
  0xf6   : > { %7316 = vmatprep.mubr.msk.bf16.mxu1 %vm732_vm1, %v8438_v61 }
  0xfa   : > { %7289 = vmatmul.mubr.msk.bf16.gmra.mxu0 %vm732_vm1, %v8526_v50 }
  0xfb   : > { %7292 = vmatprep.mubr.msk.bf16.mxu0 %vm732_vm1, %v8680_v31 }
  0xfd   : > { %7317 = vmatmul.mubr.msk.bf16.gmra.mxu1 %vm732_vm1, %v8470_v17 }
  0xfe   : > { %7320 = vmatprep.mubr.msk.bf16.mxu1 %vm732_vm1, %v8642_v7  ;;  %v678_v7 = vrot.slane %v618_v25, 1 }
 0x102   : > { %7293 = vmatmul.mubr.msk.bf16.gmra.mxu0 %vm732_vm1, %v651_v32 }
 0x103   : > { %7328 = vmatprep.mubr.msk.bf16.mxu0 %vm732_vm1, %v8545_v59 }
 0x105   : > { %7321 = vmatmul.mubr.msk.bf16.gmra.mxu1 %vm732_vm1, %v8777_v11 }
 0x10a   : > { %v7106_v40 = vpop.f32.mrf.mxu0  ;;  %7329 = vmatmul.mubr.msk.bf16.vlgmr.msra.gmra.mxu0 %vm732_vm1, %v8571_v53 }
 0x10b   : > { %7332 = vmatprep.mubr.msk.bf16.mxu0 %vm732_vm1, %v8579_v28 }
 0x10c   : > { %v791_v41 = vpop.f32.mrf.mxu0 }
 0x10d   : > { %v7134_v45 = vpop.f32.mrf.mxu1 }
 0x10e   : > { %v7107_v46 = vpop.f32.mrf.mxu0  ;;  %v8810_v56 = vadd.f32 %v7134_v45, %v7106_v40 }
 0x10f   : > { %v968_v57 = vpop.f32.mrf.mxu1 }
 0x110   : > { %v8812_v58 = vpop.f32.mrf.mxu0  ;;  %v8814_v61 = vadd.f32 %v968_v57, %v791_v41 }
 0x111   : > { %v7135_v10 = vpop.f32.mrf.mxu1 }
 0x112   : > { %v7110_v17 = vpop.f32.mrf.mxu0  ;;  %7333 = vmatmul.mubr.msk.bf16.gmra.mxu0 %vm732_vm1, %v8599_v62  ;;  %v8818_v19 = vadd.f32 %v7135_v10, %v7107_v46 }
 0x113   : > { %7336 = vmatprep.mubr.msk.bf16.mxu0 %vm732_vm1, %v8607_v34  ;;  %v8822_v36 = vpop.f32.mrf.mxu1 }
 0x114   : > { %v807_v38 = vpop.f32.mrf.mxu0 }
 0x115   : > { %v7138_v50 = vpop.f32.mrf.mxu1 }
 0x116   : > { %v7111_v59 = vpop.f32.mrf.mxu0  ;;  %v8824_v24 = vadd.f32 %v7138_v50, %v7110_v17 }
 0x117   : > { %v984_v26 = vpop.f32.mrf.mxu1 }
 0x118   : > { %v8826_v29 = vpop.f32.mrf.mxu0  ;;  %v8828_v63 = vadd.f32 %v984_v26, %v807_v38 }
 0x119   : > { %v7139_v53 = vpop.f32.mrf.mxu1 }
 0x11a   : > { %v7114_v23 = vpop.f32.mrf.mxu0  ;;  %7337 = vmatmul.mubr.msk.bf16.gmra.mxu0 %vm732_vm1, %v8623_v27  ;;  %v8832_v28 = vadd.f32 %v7139_v53, %v7111_v59 }
 0x11b   : > { %7340 = vmatprep.mubr.msk.bf16.mxu0 %vm732_vm1, %v8631_v33  ;;  %v8836_v1 = vpop.f32.mrf.mxu1 }
 0x11c   : > { %v823_v14 = vpop.f32.mrf.mxu0 }
 0x11d   : > { %v7142_v39 = vpop.f32.mrf.mxu1 }
 0x11e   : > { %v7115_v44 = vpop.f32.mrf.mxu0  ;;  %v8838_v62 = vadd.f32 %v7142_v39, %v7114_v23 }
 0x11f   : > { %v1000_v20 = vpop.f32.mrf.mxu1 }
 0x120   : > { %v8840_v34 = vpop.f32.mrf.mxu0  ;;  %v8842_v35 = vadd.f32 %v1000_v20, %v823_v14 }
 0x121   : > { %v7143_v22 = vpop.f32.mrf.mxu1 }
 0x122   : > { %v7118_v55 = vpop.f32.mrf.mxu0  ;;  %7341 = vmatmul.mubr.msk.bf16.gmra.mxu0 %vm732_vm1, %v8650_v12  ;;  %v8846_v27 = vadd.f32 %v7143_v22, %v7115_v44 }
 0x123   : > { %7344 = vmatprep.mubr.msk.bf16.mxu0 %vm732_vm1, %v8659_v48  ;;  %v8850_v60 = vpop.f32.mrf.mxu1  ;;  %v679_v48 = vor.u32 %v678_v7, %v615_v18 }
 0x124   : > { %v839_v33 = vpop.f32.mrf.mxu0 }
 0x125   : > { %v7146_v47 = vpop.f32.mrf.mxu1  ;;  %v710_v16 = vsel %vm8506_vm6, %v679_v48, 0 }
 0x126   : > { %v7119_v51 = vpop.f32.mrf.mxu0  ;;  %v8852_v3 = vadd.f32 %v7146_v47, %v7118_v55 }
 0x127   : > { %v1016_v42 = vpop.f32.mrf.mxu1 }
 0x128   : > { %v8854_v0 = vpop.f32.mrf.mxu0  ;;  %v8856_v2 = vadd.f32 %v1016_v42, %v839_v33 }
 0x129   : > { %v7147_v49 = vpop.f32.mrf.mxu1 }
 0x12a   : > { %v7122_v12 = vpop.f32.mrf.mxu0  ;;  %7345 = vmatmul.mubr.msk.bf16.gmra.mxu0 %vm732_vm1, %v8672_v37  ;;  %v8860_v4 = vadd.f32 %v7147_v49, %v7119_v51 }
 0x12b   : > { %7348 = vmatprep.mubr.msk.bf16.mxu0 %vm732_vm1, %v8741_v8  ;;  %v8866_v6 = vpop.f32.mrf.mxu1 }
 0x12c   : > { %v855_v31 = vpop.f32.mrf.mxu0 }
 0x12d   : > { %v7150_v9 = vpop.f32.mrf.mxu1 }
 0x12e   : > { %v7123_v5 = vpop.f32.mrf.mxu0  ;;  %v8868_v52 = vadd.f32 %v7150_v9, %v7122_v12 }
 0x12f   : > { %v1032_v54 = vpop.f32.mrf.mxu1 }
 0x130   : > { %v8872_v37 = vpop.f32.mrf.mxu0  ;;  %v8874_v15 = vadd.f32 %v1032_v54, %v855_v31 }
 0x131   : > { %v7151_v21 = vpop.f32.mrf.mxu1 }
 0x132   : > { %v7126_v8 = vpop.f32.mrf.mxu0  ;;  %7349 = vmatmul.mubr.msk.bf16.gmra.mxu0 %vm732_vm1, %v710_v16  ;;  %v8877_v11 = vadd.f32 %v7151_v21, %v7123_v5 }
 0x133   : > { %v8879_v18 = vpop.f32.mrf.mxu1 }
 0x134   : > { %v871_v25 = vpop.f32.mrf.mxu0 }
 0x135   : > { %v7154_v30 = vpop.f32.mrf.mxu1 }
 0x136   : > { %v7127_v32 = vpop.f32.mrf.mxu0  ;;  %v8881_v40 = vadd.f32 %v7154_v30, %v7126_v8 }
 0x137   : > { %v1048_v41 = vpop.f32.mrf.mxu1 }
 0x138   : > { %v8883_v45 = vpop.f32.mrf.mxu0  ;;  %v8885_v46 = vadd.f32 %v1048_v41, %v871_v25 }
 0x139   : > { %v7155_v57 = vpop.f32.mrf.mxu1 }
 0x13a   : > { %v7162_v10 = vpop.f32.mrf.mxu0  ;;  %v8887_v17 = vadd.f32 %v7155_v57, %v7127_v32 }
 0x13b   : > { %v1247_v38 = vadd.f32 %v7162_v10, %v8810_v56  ;;  %v8890_v50 = vpop.f32.mrf.mxu1 }
 0x13c   : > { %v1150_v59 = vpop.f32.mrf.mxu0 }
 0x13d   : > { %v1245_v26 = vadd.f32 %v1150_v59, %v8814_v61  ;;  %v7190_v53 = vpop.f32.mrf.mxu1 }
 0x13e   : > { %v7163_v23 = vpop.f32.mrf.mxu0  ;;  %v8893_v14 = vadd.f32 %v7190_v53, %v1247_v38 }
 0x13f   : > { %v1248_v39 = vadd.f32 %v7163_v23, %v8818_v19  ;;  %v1323_v44 = vpop.f32.mrf.mxu1 }
 0x140   : > { %v8896_v20 = vpop.f32.mrf.mxu0  ;;  %v8898_v22 = vadd.f32 %v1323_v44, %v1245_v26 }
 0x141   : > { %v7191_v55 = vpop.f32.mrf.mxu1 }
 0x142   : > { %v7166_v33 = vpop.f32.mrf.mxu0  ;;  %v8900_v47 = vadd.f32 %v7191_v55, %v1248_v39 }
 0x143   : > { %v1251_v56 = vadd.f32 %v7166_v33, %v8824_v24  ;;  %v8903_v51 = vpop.f32.mrf.mxu1 }
 0x144   : > { %v1166_v61 = vpop.f32.mrf.mxu0 }
 0x145   : > { %v1249_v7 = vadd.f32 %v1166_v61, %v8828_v63  ;;  %v7194_v42 = vpop.f32.mrf.mxu1 }
 0x146   : > { %v7167_v49 = vpop.f32.mrf.mxu0  ;;  %v8906_v12 = vadd.f32 %v7194_v42, %v1251_v56 }
 0x147   : > { %v1252_v19 = vadd.f32 %v7167_v49, %v8832_v28  ;;  %v1339_v48 = vpop.f32.mrf.mxu1 }
 0x148   : > { %v8909_v31 = vpop.f32.mrf.mxu0  ;;  %v8911_v9 = vadd.f32 %v1339_v48, %v1249_v7 }
 0x149   : > { %v7195_v5 = vpop.f32.mrf.mxu1 }
 0x14a   : > { %v7170_v16 = vpop.f32.mrf.mxu0  ;;  %v8913_v54 = vadd.f32 %v7195_v5, %v1252_v19 }
 0x14b   : > { %v1255_v24 = vadd.f32 %v7170_v16, %v8838_v62  ;;  %v8916_v21 = vpop.f32.mrf.mxu1 }
 0x14c   : > { %v1182_v63 = vpop.f32.mrf.mxu0 }
 0x14d   : > { %v1253_v8 = vadd.f32 %v1182_v63, %v8842_v35  ;;  %v7198_v25 = vpop.f32.mrf.mxu1 }
 0x14e   : > { %v7171_v30 = vpop.f32.mrf.mxu0  ;;  %v8919_v32 = vadd.f32 %v7198_v25, %v1255_v24 }
 0x14f   : > { %v1256_v28 = vadd.f32 %v7171_v30, %v8846_v27  ;;  %v1355_v41 = vpop.f32.mrf.mxu1 }
 0x150   : > { %v8922_v57 = vpop.f32.mrf.mxu0  ;;  %v8924_v10 = vadd.f32 %v1355_v41, %v1253_v8 }
 0x151   : > { %v7199_v38 = vpop.f32.mrf.mxu1 }
 0x152   : > { %v7174_v59 = vpop.f32.mrf.mxu0  ;;  %v8926_v26 = vadd.f32 %v7199_v38, %v1256_v28 }
 0x153   : > { %v1259_v62 = vadd.f32 %v7174_v59, %v8852_v3  ;;  %v8929_v53 = vpop.f32.mrf.mxu1 }
 0x154   : > { %v1198_v35 = vpop.f32.mrf.mxu0 }
 0x155   : > { %v1257_v23 = vadd.f32 %v1198_v35, %v8856_v2  ;;  %v7202_v39 = vpop.f32.mrf.mxu1 }
 0x156   : > { %v7175_v44 = vpop.f32.mrf.mxu0  ;;  %v8932_v55 = vadd.f32 %v7202_v39, %v1259_v62 }
 0x157   : > { %v1260_v27 = vadd.f32 %v7175_v44, %v8860_v4  ;;  %v1371_v33 = vpop.f32.mrf.mxu1 }
 0x158   : > { %v8935_v56 = vpop.f32.mrf.mxu0  ;;  %v8937_v61 = vadd.f32 %v1371_v33, %v1257_v23 }
 0x159   : > { %v7203_v7 = vpop.f32.mrf.mxu1 }
 0x15a   : > { %v7178_v42 = vpop.f32.mrf.mxu0  ;;  %v8939_v49 = vadd.f32 %v7203_v7, %v1260_v27 }
 0x15b   : > { %v1263_v3 = vadd.f32 %v7178_v42, %v8868_v52  ;;  %v8942_v19 = vpop.f32.mrf.mxu1 }
 0x15c   : > { %v1214_v2 = vpop.f32.mrf.mxu0 }
 0x15d   : > { %v1261_v48 = vadd.f32 %v1214_v2, %v8874_v15  ;;  %v7206_v5 = vpop.f32.mrf.mxu1 }
 0x15e   : > { %v7179_v16 = vpop.f32.mrf.mxu0  ;;  %v8945_v24 = vadd.f32 %v7206_v5, %v1263_v3 }
 0x15f   : > { %v1264_v4 = vadd.f32 %v7179_v16, %v8877_v11  ;;  %v1387_v63 = vpop.f32.mrf.mxu1 }
 0x160   : > { %v8948_v8 = vpop.f32.mrf.mxu0  ;;  %v8950_v25 = vadd.f32 %v1387_v63, %v1261_v48 }
 0x161   : > { %v7207_v30 = vpop.f32.mrf.mxu1 }
 0x162   : > { %v7182_v28 = vpop.f32.mrf.mxu0  ;;  %v8952_v41 = vadd.f32 %v7207_v30, %v1264_v4 }
 0x163   : > { %v1267_v52 = vadd.f32 %v7182_v28, %v8881_v40  ;;  %v8955_v38 = vpop.f32.mrf.mxu1 }
 0x164   : > { %v1230_v15 = vpop.f32.mrf.mxu0 }
 0x165   : > { %v1265_v59 = vadd.f32 %v1230_v15, %v8885_v46  ;;  %v7210_v62 = vpop.f32.mrf.mxu1 }
 0x166   : > { %v7183_v35 = vpop.f32.mrf.mxu0  ;;  %v8958_v23 = vadd.f32 %v7210_v62, %v1267_v52 }
 0x167   : > { %v1268_v11 = vadd.f32 %v7183_v35, %v8887_v17  ;;  %v1403_v39 = vpop.f32.mrf.mxu1 }
 0x168   : > { %v8961_v44 = vpop.f32.mrf.mxu0  ;;  %v1438_v27 = vadd.f32 %v1403_v39, %v1265_v59 }
 0x169   : > { %v7211_v33 = vpop.f32.mrf.mxu1 }
 0x16a   : > { %v7218_v7 = vpop.f32.mrf.mxu0  ;;  %v8963_v42 = vadd.f32 %v7211_v33, %v1268_v11 }
 0x16b   : > { %v8966_v40 = vadd.f32 %v7218_v7, %v8893_v14  ;;  %v8968_v3 = vpop.f32.mrf.mxu1 }
 0x16c   : > { %v1495_v46 = vpop.f32.mrf.mxu0 }
 0x16d   : > { %v8971_v2 = vadd.f32 %v1495_v46, %v8898_v22  ;;  %v8973_v48 = vpop.f32.mrf.mxu1 }
 0x16e   : > { %v7219_v17 = vpop.f32.mrf.mxu0 }
 0x16f   : > { %v8976_v5 = vadd.f32 %v7219_v17, %v8900_v47  ;;  %v8978_v16 = vpop.f32.mrf.mxu1 }
 0x170   : > { %v8980_v4 = vpop.f32.mrf.mxu0 }
 0x171   : > { %v8982_v63 = vpop.f32.mrf.mxu1 }
 0x172   : > { %v7222_v14 = vpop.f32.mrf.mxu0 }
 0x173   : > { %v8985_v30 = vadd.f32 %v7222_v14, %v8906_v12  ;;  %v8987_v28 = vpop.f32.mrf.mxu1 }
 0x174   : > { %v1511_v22 = vpop.f32.mrf.mxu0 }
 0x175   : > { %v8990_v52 = vadd.f32 %v1511_v22, %v8911_v9  ;;  %v8992_v15 = vpop.f32.mrf.mxu1 }
 0x176   : > { %v7223_v47 = vpop.f32.mrf.mxu0 }
 0x177   : > { %v8995_v59 = vadd.f32 %v7223_v47, %v8913_v54  ;;  %v8997_v62 = vpop.f32.mrf.mxu1 }
 0x178   : > { %v8999_v35 = vpop.f32.mrf.mxu0 }
 0x179   : > { %v9001_v11 = vpop.f32.mrf.mxu1 }
 0x17a   : > { %v7226_v12 = vpop.f32.mrf.mxu0 }
 0x17b   : > { %v9004_v39 = vadd.f32 %v7226_v12, %v8919_v32  ;;  %v9006_v33 = vpop.f32.mrf.mxu1 }
 0x17c   : > { %v1527_v9 = vpop.f32.mrf.mxu0 }
 0x17d   : > { %v9009_v7 = vadd.f32 %v1527_v9, %v8924_v10  ;;  %v9011_v46 = vpop.f32.mrf.mxu1 }
 0x17e   : > { %v7227_v54 = vpop.f32.mrf.mxu0 }
 0x17f   : > { %v9014_v17 = vadd.f32 %v7227_v54, %v8926_v26  ;;  %v9016_v14 = vpop.f32.mrf.mxu1 }
 0x180   : > { %11373 = vst [vmem:[#allocation20_spill] sm:$0xff] %v9016_v14  ;;  %v9018_v22 = vpop.f32.mrf.mxu0 }
 0x181   : > { %11372 = vst [vmem:[#allocation19_spill] sm:$0xff] %v9014_v17  ;;  %v9020_v47 = vpop.f32.mrf.mxu1 }
 0x182   : > { %11374 = vst [vmem:[#allocation21_spill] sm:$0xff] %v9020_v47  ;;  %v7230_v32 = vpop.f32.mrf.mxu0 }
 0x183   : > { %v9023_v12 = vadd.f32 %v7230_v32, %v8932_v55  ;;  %v9025_v13 = vpop.f32.mrf.mxu1 }
 0x184   : > { %v1543_v10 = vpop.f32.mrf.mxu0 }
 0x185   : > { %11375 = vst [vmem:[#allocation22_spill] sm:$0xff] %v9023_v12  ;;  %v9028_v9 = vadd.f32 %v1543_v10, %v8937_v61  ;;  %v9030_v43 = vpop.f32.mrf.mxu1 }
 0x186   : > { %11377 = vst [vmem:[#allocation24_spill] sm:$0xff] %v9030_v43  ;;  %v7231_v26 = vpop.f32.mrf.mxu0 }
 0x187   : > { %11376 = vst [vmem:[#allocation23_spill] sm:$0xff] %v9028_v9  ;;  %v9033_v54 = vadd.f32 %v7231_v26, %v8939_v49  ;;  %v9035_v17 = vpop.f32.mrf.mxu1 }
 0x188   : > { %11379 = vst [vmem:[#allocation26_spill] sm:$0xff] %v9035_v17  ;;  %v9037_v14 = vpop.f32.mrf.mxu0 }
 0x189   : > { %11378 = vst [vmem:[#allocation25_spill] sm:$0xff] %v9033_v54  ;;  %v9039_v47 = vpop.f32.mrf.mxu1 }
 0x18a   : > { %11380 = vst [vmem:[#allocation27_spill] sm:$0xff] %v9039_v47  ;;  %v7234_v55 = vpop.f32.mrf.mxu0 }
 0x18b   : > { %v9042_v32 = vadd.f32 %v7234_v55, %v8945_v24  ;;  %v9044_v12 = vpop.f32.mrf.mxu1 }
 0x18c   : > { %11382 = vst [vmem:[#allocation29_spill] sm:$0xff] %v9044_v12  ;;  %v1559_v61 = vpop.f32.mrf.mxu0 }
 0x18d   : > { %11381 = vst [vmem:[#allocation28_spill] sm:$0xff] %v9042_v32  ;;  %v9047_v10 = vadd.f32 %v1559_v61, %v8950_v25  ;;  %v9049_v9 = vpop.f32.mrf.mxu1 }
 0x18e   : > { %11384 = vst [vmem:[#allocation31_spill] sm:$0xff] %v9049_v9  ;;  %v7235_v49 = vpop.f32.mrf.mxu0 }
 0x18f   : > { %11383 = vst [vmem:[#allocation30_spill] sm:$0xff] %v9047_v10  ;;  %v9052_v26 = vadd.f32 %v7235_v49, %v8952_v41  ;;  %v9054_v54 = vpop.f32.mrf.mxu1 }
 0x190   : > { %11386 = vst [vmem:[#allocation33_spill] sm:$0xff] %v9054_v54  ;;  %v9056_v17 = vpop.f32.mrf.mxu0 }
 0x191   : > { %11385 = vst [vmem:[#allocation32_spill] sm:$0xff] %v9052_v26  ;;  %11387 = vst [vmem:[#allocation34_spill] sm:$0xff] %v9056_v17  ;;  %v9058_v47 = vpop.f32.mrf.mxu1 }
 0x192   : > { %11388 = vst [vmem:[#allocation35_spill] sm:$0xff] %v9058_v47  ;;  %v7238_v24 = vpop.f32.mrf.mxu0 }
 0x193   : > { %v1612_v55 = vadd.f32 %v7238_v24, %v8958_v23  ;;  %v9061_v32 = vpop.f32.mrf.mxu1 }
 0x194   : > { %11389 = vst [vmem:[#allocation36_spill] sm:$0xff] %v9061_v32  ;;  %v1575_v12 = vpop.f32.mrf.mxu0 }
 0x195   : > { %v1610_v25 = vadd.f32 %v1575_v12, %v1438_v27  ;;  %v7266_v61 = vpop.f32.mrf.mxu1 }
 0x196   : > { %v7239_v10 = vpop.f32.mrf.mxu0  ;;  %v9063_v9 = vadd.f32 %v7266_v61, %v1612_v55 }
 0x197   : > { %v1613_v41 = vadd.f32 %v7239_v10, %v8963_v42  ;;  %v1748_v49 = vpop.f32.mrf.mxu1 }
 0x198   : > { %v9066_v26 = vpop.f32.mrf.mxu0  ;;  %v9068_v54 = vadd.f32 %v1748_v49, %v1610_v25 }
 0x199   : > { %11390 = vst [vmem:[#allocation37_spill] sm:$0xff] %v9066_v26  ;;  %v7267_v17 = vpop.f32.mrf.mxu1 }
 0x19a   : > { %v9070_v47 = vpop.f32.mrf.mxu0  ;;  %v9072_v43 = vadd.f32 %v7267_v17, %v1613_v41  ;;  %v6471_v17 = vld [vmem:[%s11326_s3 + $0x4] sm:$0xf] }
 0x19b   : > { %v9074_v23 = vpop.f32.mrf.mxu1  ;;  %7766 = vmatprep.subr.msk.bf16.mxu1 %vm11346_vm7, %v6471_v17  ;;  %v2763_v49 = vsel %vm11346_vm7, %v6471_v17, 0 }
 0x19c   : > { %11391 = vst [vmem:[#allocation38_spill] sm:$0xff] %v9074_v23  ;;  %v9076_v24 = vpop.f32.mrf.mxu0  ;;  %7353 = vmatpush3.bf16.msra.mxu1 %v2763_v49  ;;  %v6492_v49 = vld [vmem:[%s11326_s3 + $0x8] sm:$0xf] }
 0x19d   : > { %v9078_v27 = vpop.f32.mrf.mxu1  ;;  %7768 = vmatprep.subr.msk.bf16.mxu0 %vm11346_vm7, %v6492_v49 }
 0x19e   : > { %v9080_v12 = vpop.f32.mrf.mxu0 }
 0x19f   : > { %v9082_v55 = vpop.f32.mrf.mxu1 }
 0x1a0   : > { %11392 = vst [vmem:[#allocation39_spill] sm:$0xff] %v9082_v55  ;;  %v9084_v42 = vpop.f32.mrf.mxu0 }
 0x1a1   : > { %v9086_v10 = vpop.f32.mrf.mxu1 }
 0x1a2   : > { %11393 = vst [vmem:[#allocation40_spill] sm:$0xff] %v9086_v10  ;;  %v9088_v25 = vpop.f32.mrf.mxu0 }
 0x1a3   : > { %11394 = vst [vmem:[#allocation41_spill] sm:$0xff] %v9088_v25  ;;  %v9095_v41 = vpop.f32.mrf.mxu1 }
 0x1a4   : > { %v9090_v61 = vpop.f32.mrf.mxu0  ;;  %11396 = vst [vmem:[#allocation43_spill] sm:$0xff] %v9095_v41 }
 0x1a5   : > { %11395 = vst [vmem:[#allocation42_spill] sm:$0xff] %v9090_v61  ;;  %v9103_v10 = vpop.f32.mrf.mxu1 }
 0x1a6   : > { %v9099_v23 = vpop.f32.mrf.mxu0  ;;  %11398 = vst [vmem:[#allocation45_spill] sm:$0xff] %v9103_v10 }
 0x1a7   : > { %v9109_v61 = vpop.f32.mrf.mxu1 }
 0x1a8   : > { %v9101_v26 = vpop.f32.mrf.mxu0  ;;  %11401 = vst [vmem:[#allocation48_spill] sm:$0xff] %v9109_v61 }
 0x1a9   : > { %11397 = vst [vmem:[#allocation44_spill] sm:$0xff] %v9101_v26  ;;  %v9115_v17 = vpop.f32.mrf.mxu1 }
 0x1aa   : > { %v9105_v32 = vpop.f32.mrf.mxu0  ;;  %11404 = vst [vmem:[#allocation51_spill] sm:$0xff] %v9115_v17 }
 0x1ab   : > { %11399 = vst [vmem:[#allocation46_spill] sm:$0xff] %v9105_v32  ;;  %v3087_v32 = vsel %vm11346_vm7, %v6492_v49, 0  ;;  %v9126_v61 = vpop.f32.mrf.mxu1 }
 0x1ac   : > { %v9107_v55 = vpop.f32.mrf.mxu0  ;;  %7397 = vmatpush3.bf16.msra.mxu0 %v3087_v32  ;;  %v1004_v32 = vadd.f32 %v8850_v60, %v8840_v34  ;;  %v9156_v34 = vstv %s6470_s19 }
 0x1ad   : > { %11400 = vst [vmem:[#allocation47_spill] sm:$0xff] %v9107_v55  ;;  %v9137_v10 = vpop.f32.mrf.mxu1  ;;  %vm2349_vm10 = vcmp.ge.s32.totalorder %v9156_v34, 0  ;;  %vm2361_vm11 = vcmp.lt.s32.totalorder %v9156_v34, 16 }
 0x1ae   : > { %v9111_v25 = vpop.f32.mrf.mxu0  ;;  %vm9345_vm5 = vmand %vm2349_vm10, %vm2361_vm11 }
 0x1af   : > { %11402 = vst [vmem:[#allocation49_spill] sm:$0xff] %v9111_v25 }
 0x1b0   : > { %v9113_v41 = vpop.f32.mrf.mxu0 }
 0x1b1   : > { %11403 = vst [vmem:[#allocation50_spill] sm:$0xff] %v9113_v41  ;;  %v972_v41 = vadd.f32 %v8822_v36, %v8812_v58  ;;  %v1036_v58 = vadd.f32 %v8879_v18, %v8872_v37 }
 0x1b2   : > { %v9120_v26 = vpop.f32.mrf.mxu0 }
 0x1b3   : > { %11405 = vst [vmem:[#allocation52_spill] sm:$0xff] %v9120_v26  ;;  %v988_v26 = vadd.f32 %v8836_v1, %v8826_v29  ;;  %v1246_v49 = vadd.f32 %v8896_v20, %v972_v41  ;;  %v1052_v29 = vadd.f32 %v8890_v50, %v8883_v45  ;;  %v1254_v1 = vadd.f32 %v8922_v57, %v1004_v32  ;;  %v9160_v41 = vpop.f32.mrf.mxu1 }
 0x1b4   : > { %v9124_v55 = vpop.f32.mrf.mxu0  ;;  %v1262_v20 = vadd.f32 %v8948_v8, %v1036_v58  ;;  %v9168_v45 = vadd.s32 1, %v9156_v34  ;;  %v1763_v58 = vadd.f32 %v8978_v16, %v8971_v2 }
 0x1b5   : > { %11406 = vst [vmem:[#allocation53_spill] sm:$0xff] %v9124_v55  ;;  %v1250_v36 = vadd.f32 %v8909_v31, %v988_v26  ;;  %v1427_v50 = vadd.f32 %v8929_v53, %v1254_v1  ;;  %v9185_v26 = vadd.s32 5, %v9156_v34  ;;  %v9188_v53 = vadd.s32 4, %v9156_v34 }
 0x1b6   : > { %v9128_v25 = vpop.f32.mrf.mxu0  ;;  %vm2350_vm8 = vcmp.ge.s32.totalorder %v9168_v45, 0  ;;  %vm2362_vm9 = vcmp.lt.s32.totalorder %v9168_v45, 16 }
 0x1b7   : > { %11407 = vst [vmem:[#allocation54_spill] sm:$0xff] %v9128_v25  ;;  %v1020_v25 = vadd.f32 %v8866_v6, %v8854_v0  ;;  %v1419_v0 = vadd.f32 %v8903_v51, %v1246_v49  ;;  %v1266_v6 = vadd.f32 %v8961_v44, %v1052_v29  ;;  %v1423_v18 = vadd.f32 %v8916_v21, %v1250_v36  ;;  %v9182_v21 = vpop.f32.mrf.mxu1  ;;  %vm9330_vm4 = vmand %vm2350_vm8, %vm2362_vm9 }
 0x1b8   : > { %v9133_v17 = vpop.f32.mrf.mxu0  ;;  %v9178_v51 = vadd.s32 3, %v9156_v34  ;;  %v1435_v44 = vadd.f32 %v8955_v38, %v1262_v20  ;;  %v9193_v49 = vadd.s32 7, %v9156_v34  ;;  %v1765_v38 = vadd.f32 %v8973_v48, %v8966_v40 }
 0x1b9   : > { %11408 = vst [vmem:[#allocation55_spill] sm:$0xff] %v9133_v17  ;;  %v1258_v60 = vadd.f32 %v8935_v56, %v1020_v25  ;;  %v1591_v31 = vadd.f32 %v8980_v4, %v1419_v0  ;;  %v9175_v56 = vadd.s32 2, %v9156_v34  ;;  %v1439_v4 = vadd.f32 %v8968_v3, %v1266_v6  ;;  %v9218_v48 = vpop.f32.mrf.mxu1 }
 0x1ba   : > { %v9144_v55 = vpop.f32.mrf.mxu0  ;;  %v1595_v25 = vadd.f32 %v8999_v35, %v1423_v18  ;;  %v9206_v3 = vadd.s32 9, %v9156_v34  ;;  %v1766_v35 = vadd.f32 %v8982_v63, %v8976_v5  ;;  %v1599_v1 = vadd.f32 %v9018_v22, %v1427_v50  ;;  %v11416_v50 = vld [vmem:[#allocation34_spill] sm:$0xff] }
 0x1bb   : > { %v1431_v8 = vadd.f32 %v8942_v19, %v1258_v60  ;;  %v9196_v19 = vadd.s32 6, %v9156_v34  ;;  %v1764_v29 = vadd.f32 %v8987_v28, %v1591_v31  ;;  %v9213_v20 = vadd.s32 8, %v9156_v34 }
 0x1bc   : > { %v9154_v17 = vpop.f32.mrf.mxu0  ;;  %v1769_v40 = vadd.f32 %v8992_v15, %v8985_v30  ;;  %v1938_v2 = vadd.f32 %v9070_v47, %v1765_v38  ;;  %v9224_v5 = vadd.s32 11, %v9156_v34  ;;  %v1767_v63 = vadd.f32 %v8997_v62, %v8990_v52  ;;  %v11412_v52 = vld [vmem:[#allocation19_spill] sm:$0xff]  ;;  %v11413_v62 = vld [vmem:[#allocation21_spill] sm:$0xff] }
 0x1bd   : > { %v1770_v28 = vadd.f32 %v9001_v11, %v8995_v59  ;;  %v1768_v22 = vadd.f32 %v9006_v33, %v1595_v25  ;;  %v1603_v30 = vadd.f32 %v9037_v14, %v1431_v8  ;;  %v1773_v47 = vadd.f32 %v9011_v46, %v9004_v39  ;;  %v11414_v11 = vld [vmem:[#allocation22_spill] sm:$0xff]  ;;  %v11415_v33 = vld [vmem:[#allocation24_spill] sm:$0xff]  ;;  %v11418_v39 = vld [vmem:[#allocation23_spill] sm:$0xff]  ;;  %v9257_v25 = vpop.f32.mrf.mxu1 }
 0x1be   : > { %v9164_v37 = vpop.f32.mrf.mxu0  ;;  %v1936_v0 = vadd.f32 %v9076_v24, %v1763_v58  ;;  %v1774_v18 = vadd.f32 %v11413_v62, %v11412_v52  ;;  %v1772_v59 = vadd.f32 %v9025_v13, %v1599_v1  ;;  %v1777_v14 = vadd.f32 %v11415_v33, %v11414_v11  ;;  %v11422_v58 = vld [vmem:[#allocation29_spill] sm:$0xff]  ;;  %v11427_v52 = vld [vmem:[#allocation30_spill] sm:$0xff] }
 0x1bf   : > { %v1607_v31 = vadd.f32 %v11416_v50, %v1435_v44  ;;  %v2110_v46 = vadd.f32 %v9078_v27, %v1938_v2  ;;  %v1939_v24 = vadd.f32 %v9080_v12, %v1766_v35  ;;  %v1937_v13 = vadd.f32 %v9084_v42, %v1764_v29  ;;  %v11420_v44 = vld [vmem:[#allocation25_spill] sm:$0xff]  ;;  %v11424_v27 = vld [vmem:[#allocation42_spill] sm:$0xff]  ;;  %v11425_v35 = vld [vmem:[#allocation28_spill] sm:$0xff] }
 0x1c0   : > { %v9172_v57 = vpop.f32.mrf.mxu0  ;;  %v9266_v1 = vadd.f32 %v11422_v58, %v1603_v30  ;;  %v1940_v2 = vadd.f32 %v11424_v27, %v1767_v63  ;;  %v9273_v42 = vld [vmem:[%s11325_s2] ss:$0 sm:$0xff]  ;;  %v11426_v29 = vld [vmem:[#allocation31_spill] sm:$0xff]  ;;  %vm2352_vm13 = vcmp.ge.s32.totalorder %v9178_v51, 0  ;;  %vm2364_vm14 = vcmp.lt.s32.totalorder %v9178_v51, 16 }
 0x1c1   : > { %v11428_v62 = vld [vmem:[#allocation33_spill] sm:$0xff]  ;;  %v11429_v30 = vld [vmem:[#allocation39_spill] sm:$0xff]  ;;  %vm2351_vm0 = vcmp.ge.s32.totalorder %v9175_v56, 0  ;;  %vm2363_vm1 = vcmp.lt.s32.totalorder %v9175_v56, 16  ;;  %vm2354_vm10 = vcmp.ge.s32.totalorder %v9185_v26, 0  ;;  %vm2366_vm11 = vcmp.lt.s32.totalorder %v9185_v26, 16 }
 0x1c2   : > { %v7294_v32 = vpop.f32.mrf.mxu0  ;;  %v9281_v11 = vadd.f32 %v11428_v62, %v11427_v52  ;;  %v2108_v33 = vadd.f32 %v11429_v30, %v1936_v0  ;;  %v11435_v52 = vld [vmem:[#allocation43_spill] sm:$0xff] }
 0x1c3   : > { %v9203_v36 = vadd.f32 %v7294_v32, %v9063_v9  ;;  %v11410_v9 = vld [vmem:[#allocation20_spill] sm:$0xff]  ;;  %v11421_v32 = vld [vmem:[#allocation27_spill] sm:$0xff]  ;;  %v2109_v62 = vadd.f32 %v11435_v52, %v1937_v13 }
 0x1c4   : > { %v1921_v60 = vpop.f32.mrf.mxu0  ;;  %v9263_v38 = vadd.f32 %v11421_v32, %v11420_v44  ;;  %v11433_v32 = vld [vmem:[#allocation37_spill] sm:$0xff]  ;;  %v11440_v13 = vld [vmem:[#allocation51_spill] sm:$0xff] }
 0x1c5   : > { %v9221_v16 = vadd.f32 %v1921_v60, %v9068_v54  ;;  %v1771_v54 = vadd.f32 %v11410_v9, %v9009_v7  ;;  %v11419_v7 = vld [vmem:[#allocation26_spill] sm:$0xff]  ;;  %v11423_v60 = vld [vmem:[#allocation41_spill] sm:$0xff]  ;;  %v9277_v9 = vadd.f32 %v11426_v29, %v11425_v35  ;;  %v9292_v58 = vadd.f32 %v11433_v32, %v1439_v4  ;;  %v11434_v35 = vld [vmem:[#allocation40_spill] sm:$0xff] }
 0x1c6   : > { %v7295_v15 = vpop.f32.mrf.mxu0  ;;  %v2111_v29 = vadd.f32 %v11434_v35, %v1939_v24  ;;  %v11439_v4 = vld [vmem:[#allocation46_spill] sm:$0xff]  ;;  %v11441_v52 = vld [vmem:[#allocation47_spill] sm:$0xff] }
 0x1c7   : > { %11409 = vst [vmem:[#allocation56_spill] sm:$0xff] %v9221_v16  ;;  %v9238_v6 = vadd.f32 %v7295_v15, %v9072_v43  ;;  %v9252_v43 = vadd.f32 %v11419_v7, %v11418_v39  ;;  %v1942_v15 = vadd.f32 %v11423_v60, %v1769_v40  ;;  %v11430_v40 = vld [vmem:[#allocation32_spill] sm:$0xff]  ;;  %v11431_v39 = vld [vmem:[#allocation35_spill] sm:$0xff]  ;;  %v1943_v60 = vadd.f32 %v9099_v23, %v1770_v28 }
 0x1c8   : > { %v9246_v8 = vpop.f32.mrf.mxu0  ;;  %v9286_v63 = vadd.f32 %v11431_v39, %v11430_v40  ;;  %v11432_v7 = vld [vmem:[#allocation36_spill] sm:$0xff]  ;;  %v1946_v32 = vadd.f32 %v11439_v4, %v1773_v47  ;;  %v1944_v16 = vadd.f32 %v11441_v52, %v1771_v54  ;;  %v11456_v56 = vld [vmem:[#allocation55_spill] sm:$0xff] }
 0x1c9   : > { %11411 = vst [vmem:[#allocation20_spill] sm:$0xff] %v9238_v6  ;;  %11417 = vst [vmem:[#allocation19_spill] sm:$0xff] %v9246_v8  ;;  %v9289_v44 = vadd.f32 %v11432_v7, %v1607_v31  ;;  %v9297_v6 = vpop.f32.mrf.mxu1  ;;  %v11437_v40 = vld [vmem:[#allocation48_spill] sm:$0xff]  ;;  %v2115_v35 = vadd.f32 %v11440_v13, %v1943_v60 }
 0x1ca   : > { %v7330_v12 = vpop.f32.mrf.mxu0  ;;  %v2112_v31 = vadd.f32 %v11437_v40, %v1940_v2  ;;  %v11438_v39 = vld [vmem:[#allocation44_spill] sm:$0xff]  ;;  %v9323_v40 = vld [vmem:[%s11326_s3] sm:$0xf] }
 0x1cb   : > { %v2283_v50 = vadd.f32 %v7330_v12, %v2110_v46  ;;  %v11436_v12 = vld [vmem:[#allocation45_spill] sm:$0xff]  ;;  %v1941_v7 = vadd.f32 %v11438_v39, %v1768_v22  ;;  %v9311_v22 = vpop.f32.mrf.mxu1  ;;  %7767 = vmatprep.subr.msk.bf16.mxu1 %vm11346_vm7, %v9323_v40  ;;  %vm2372_vm7 = vcmp.lt.s32.totalorder %v9224_v5, 16 }
 0x1cc   : > { %v2186_v27 = vpop.f32.mrf.mxu0  ;;  %v2114_v30 = vadd.f32 %v11436_v12, %v1942_v15 }
 0x1cd   : > { %v2314_v0 = vadd.f32 %v9273_v42, %v2283_v50  ;;  %v2281_v46 = vadd.f32 %v2186_v27, %v2108_v33  ;;  %v11442_v50 = vld [vmem:[#allocation49_spill] sm:$0xff]  ;;  %v11443_v27 = vld [vmem:[#allocation50_spill] sm:$0xff]  ;;  %v2113_v54 = vadd.f32 %v9126_v61, %v1941_v7  ;;  %v2116_v61 = vadd.f32 %v9160_v41, %v1944_v16 }
 0x1ce   : > { %v7331_v8 = vpop.f32.mrf.mxu0  ;;  %v1947_v33 = vadd.f32 %v11442_v50, %v1774_v18  ;;  %v1945_v15 = vadd.f32 %v11443_v27, %v1772_v59  ;;  %v2118_v18 = vadd.f32 %v9137_v10, %v1946_v32  ;;  %v11444_v59 = vld [vmem:[#allocation52_spill] sm:$0xff]  ;;  %v9350_v32 = vpop.f32.mrf.mxu1 }
 0x1cf   : > { %vm2387_vm12 = vcmp.ge.f32.partialorder %v2314_v0, 0.0  ;;  %v2411_v23 = vmul.f32 0.1, %v2314_v0  ;;  %v2312_v28 = vadd.f32 %v9273_v42, %v2281_v46  ;;  %v2284_v24 = vadd.f32 %v7331_v8, %v2111_v29 }
 0x1d0   : > { %v2189_v12 = vpop.f32.mrf.mxu0  ;;  %v1950_v60 = vadd.f32 %v11444_v59, %v1777_v14  ;;  %v2119_v14 = vadd.f32 %v9182_v21, %v1947_v33 }
 0x1d1   : > { %vm2385_vm15 = vcmp.ge.f32.partialorder %v2312_v28, 0.0  ;;  %v2409_v47 = vmul.f32 0.1, %v2312_v28  ;;  %v2315_v2 = vadd.f32 %v9273_v42, %v2284_v24  ;;  %v2282_v8 = vadd.f32 %v2189_v12, %v2109_v62 }
 0x1d2   : > { %v7334_v29 = vpop.f32.mrf.mxu0  ;;  %v2435_v46 = vsel %vm2387_vm12, %v2314_v0, %v2411_v23  ;;  %v9339_v0 = vadd.f32 %v9218_v48, %v1945_v15  ;;  %v11449_v48 = vld [vmem:[#allocation53_spill] sm:$0xff]  ;;  %v9356_v24 = vadd.f32 %v9257_v25, %v1950_v60 }
 0x1d3   : > { %vm2388_vm2 = vcmp.ge.f32.partialorder %v2315_v2, 0.0  ;;  %v2412_v62 = vmul.f32 0.1, %v2315_v2  ;;  %v2313_v39 = vadd.f32 %v9273_v42, %v2282_v8  ;;  %v2287_v4 = vadd.f32 %v7334_v29, %v2114_v30 }
 0x1d4   : > { %v2202_v7 = vpop.f32.mrf.mxu0  ;;  %v2433_v30 = vsel %vm2385_vm15, %v2312_v28, %v2409_v47  ;;  %v1948_v16 = vadd.f32 %v11449_v48, %v9252_v43  ;;  %v2483_v50 = vsel %vm9330_vm4, %v2435_v46, 0.0  ;;  %v9370_v47 = vpop.f32.mrf.mxu1  ;;  %vm2353_vm15 = vcmp.ge.s32.totalorder %v9188_v53, 0 }
 0x1d5   : > { %v2410_v23 = vmul.f32 0.1, %v2313_v39  ;;  %v2318_v41 = vadd.f32 %v9273_v42, %v2287_v4  ;;  %v2285_v21 = vadd.f32 %v2202_v7, %v2112_v31  ;;  %vm2386_vm8 = vcmp.ge.f32.partialorder %v2313_v39, 0.0  ;;  %v11452_v7 = vld [vmem:[#allocation54_spill] sm:$0xff] }
 0x1d6   : > { %v7335_v13 = vpop.f32.mrf.mxu0  ;;  %v2436_v52 = vsel %vm2388_vm2, %v2315_v2, %v2412_v62  ;;  %v2481_v31 = vsel %vm9345_vm5, %v2433_v30, 0.0  ;;  %vm2365_vm2 = vcmp.lt.s32.totalorder %v9188_v53, 16  ;;  %v1951_v45 = vadd.f32 %v11452_v7, %v9263_v38 }
 0x1d7   : > { %v9362_v28 = vadd.f32 %v9273_v42, %v2285_v21  ;;  %v2288_v33 = vadd.f32 %v7335_v13, %v2115_v35  ;;  %v2434_v27 = vsel %vm2386_vm8, %v2313_v39, %v2410_v23  ;;  %v2484_v25 = vsel %vm9330_vm4, %v2436_v52, 0.0  ;;  %vm9392_vm4 = vmand %vm2352_vm13, %vm2364_vm14  ;;  %v9410_v21 = vpop.f32.mrf.mxu1 }
 0x1d8   : > { %v2205_v15 = vpop.f32.mrf.mxu0  ;;  %v2482_v43 = vsel %vm9345_vm5, %v2434_v27, 0.0  ;;  %vm2391_vm9 = vcmp.ge.f32.partialorder %v2318_v41, 0.0  ;;  %v2415_v12 = vmul.f32 0.1, %v2318_v41  ;;  %v9375_v35 = vpack.c.bf16 %v2484_v25, %v2483_v50  ;;  %vm9403_vm8 = vmand %vm2351_vm0, %vm2363_vm1 }
 0x1d9   : > { %v2319_v2 = vadd.f32 %v9273_v42, %v2288_v33  ;;  %v2286_v8 = vadd.f32 %v2205_v15, %v2113_v54  ;;  %v9373_v59 = vpack.c.bf16 %v2482_v43, %v2481_v31  ;;  %v5612_v60 = vmax.f32 %v2318_v41, 0.0 }
 0x1da   : > { %v7338_v29 = vpop.f32.mrf.mxu0  ;;  %vm2389_vm12 = vcmp.ge.f32.partialorder %v9362_v28, 0.0  ;;  %v2413_v46 = vmul.f32 0.1, %v9362_v28  ;;  %v2439_v62 = vsel %vm2391_vm9, %v2318_v41, %v2415_v12  ;;  %v2120_v30 = vadd.f32 %v9297_v6, %v1948_v16 }
 0x1db   : > { %v5613_v54 = vmax.f32 %v2319_v2, 0.0  ;;  %v9384_v39 = vadd.f32 %v9273_v42, %v2286_v8  ;;  %v2291_v4 = vadd.f32 %v7338_v29, %v2118_v18  ;;  %2710 = vrot.lane.b32.xlu0 %v9373_v59, %s8083_s13  ;;  %vm2392_vm5 = vcmp.ge.f32.partialorder %v2319_v2, 0.0 }
 0x1dc   : > { %v2218_v23 = vpop.f32.mrf.mxu0  ;;  %v2437_v51 = vsel %vm2389_vm12, %v9362_v28, %v2413_v46  ;;  %v2416_v41 = vmul.f32 0.1, %v2319_v2  ;;  %v1949_v16 = vadd.f32 %v11456_v56, %v9266_v1  ;;  %v2487_v33 = vsel %vm9392_vm4, %v2439_v62, 0.0 }
 0x1dd   : > { %v9412_v48 = vpack.c.bf16 %v5613_v54, %v5612_v60  ;;  %v9415_v6 = vadd.f32 %v9273_v42, %v2291_v4  ;;  %v2289_v38 = vadd.f32 %v2218_v23, %v2116_v61  ;;  %vm2390_vm13 = vcmp.ge.f32.partialorder %v9384_v39, 0.0 }
 0x1de   : > { %v7339_v13 = vpop.f32.mrf.mxu0  ;;  %v2414_v52 = vmul.f32 0.1, %v9384_v39  ;;  %v2440_v50 = vsel %vm2392_vm5, %v2319_v2, %v2416_v41  ;;  %v2485_v61 = vsel %vm9403_vm8, %v2437_v51, 0.0  ;;  %v9437_v2 = vpop.f32.mrf.mxu1  ;;  %vm2356_vm1 = vcmp.ge.s32.totalorder %v9193_v49, 0 }
 0x1df   : > { %11455 = vst [vmem:[#allocation21_spill] sm:$0xff] %v9412_v48  ;;  %v9424_v27 = vadd.f32 %v9273_v42, %v2289_v38  ;;  %v2292_v31 = vadd.f32 %v7339_v13, %v2119_v14  ;;  %2712 = vrot.lane.b32.xlu0 %v9375_v35, %s8083_s13  ;;  %v2488_v1 = vsel %vm9392_vm4, %v2440_v50, 0.0  ;;  %vm2395_vm14 = vcmp.ge.f32.partialorder %v9415_v6, 0.0 }
 0x1e0   : > { %v2221_v15 = vpop.f32.mrf.mxu0  ;;  %v2438_v43 = vsel %vm2390_vm13, %v9384_v39, %v2414_v52  ;;  %v9433_v25 = vpack.c.bf16 %v2488_v1, %v2487_v33  ;;  %v2419_v12 = vmul.f32 0.1, %v9415_v6  ;;  %vm2368_vm9 = vcmp.lt.s32.totalorder %v9193_v49, 16 }
 0x1e1   : > { %v9440_v14 = vadd.f32 %v9273_v42, %v2292_v31  ;;  %v2290_v8 = vadd.f32 %v2221_v15, %v9339_v0  ;;  %v2486_v60 = vsel %vm9403_vm8, %v2438_v43, 0.0  ;;  %vm2393_vm0 = vcmp.ge.f32.partialorder %v9424_v27, 0.0  ;;  %vm9470_vm8 = vmand %vm2354_vm10, %vm2366_vm11 }
 0x1e2   : > { %v2123_v29 = vadd.f32 %v9311_v22, %v1951_v45  ;;  %v1954_v46 = vadd.f32 %v9144_v55, %v9277_v9  ;;  %v7342_v62 = vpop.f32.mrf.mxu0  ;;  %v9451_v54 = vpack.c.bf16 %v2486_v60, %v2485_v61  ;;  %v2417_v4 = vmul.f32 0.1, %v9424_v27  ;;  %vm9488_vm10 = vmand %vm2353_vm15, %vm2365_vm2 }
 0x1e3   : > { %v2121_v0 = vadd.f32 %v9350_v32, %v1949_v16  ;;  %v9456_v10 = vadd.f32 %v9273_v42, %v2290_v8  ;;  %v2295_v7 = vadd.f32 %v7342_v62, %v9356_v24  ;;  %vm2396_vm12 = vcmp.ge.f32.partialorder %v9440_v14, 0.0 }
 0x1e4   : > { %vm2355_vm4 = vcmp.ge.s32.totalorder %v9196_v19, 0  ;;  %vm2367_vm5 = vcmp.lt.s32.totalorder %v9196_v19, 16  ;;  %v1952_v55 = vadd.f32 %v9154_v17, %v9281_v11  ;;  %2714 = vrot.lane.b32.xlu1 %v9451_v54, %s8083_s13  ;;  %v2234_v9 = vpop.f32.mrf.mxu0  ;;  %v2420_v32 = vmul.f32 0.1, %v9440_v14  ;;  %v2080_v11 = vpop.f32.mrf.mxu1 }
 0x1e5   : > { %v2443_v24 = vsel %vm2395_vm14, %v9415_v6, %v2419_v12  ;;  %v2441_v17 = vsel %vm2393_vm0, %v9424_v27, %v2417_v4  ;;  %v9482_v45 = vadd.f32 %v9273_v42, %v2295_v7  ;;  %v2293_v23 = vadd.f32 %v2234_v9, %v2120_v30 }
 0x1e6   : > { %vm2394_vm11 = vcmp.ge.f32.partialorder %v9456_v10, 0.0  ;;  %v2418_v18 = vmul.f32 0.1, %v9456_v10  ;;  %v2126_v51 = vadd.f32 %v9370_v47, %v1954_v46  ;;  %v1955_v41 = vadd.f32 %v9164_v37, %v9286_v63  ;;  %v7343_v38 = vpop.f32.mrf.mxu0  ;;  %v7322_v50 = vpop.f32.mrf.mxu1 }
 0x1e7   : > { %v1953_v30 = vadd.f32 %v9172_v57, %v9289_v44  ;;  %v2444_v53 = vsel %vm2396_vm12, %v9440_v14, %v2420_v32  ;;  %v9503_v56 = vadd.f32 %v9273_v42, %v2293_v23  ;;  %v2296_v16 = vadd.f32 %v7343_v38, %v2123_v29 }
 0x1e8   : > { %v2491_v13 = vsel %vm9470_vm8, %v2443_v24, 0.0  ;;  %v2492_v47 = vsel %vm9470_vm8, %v2444_v53, 0.0  ;;  %2716 = vrot.lane.b32.xlu1 %v9433_v25, %s8083_s13  ;;  %v2237_v37 = vpop.f32.mrf.mxu0  ;;  %v2442_v63 = vsel %vm2394_vm11, %v9456_v10, %v2418_v18  ;;  %v2489_v44 = vsel %vm9488_vm10, %v2441_v17, 0.0  ;;  %v2093_v7 = vpop.f32.mrf.mxu1 }
 0x1e9   : > { %v9511_v57 = vpack.c.bf16 %v2492_v47, %v2491_v13  ;;  %v2423_v52 = vmul.f32 0.1, %v9482_v45  ;;  %v9518_v33 = vadd.f32 %v9273_v42, %v2296_v16  ;;  %v2294_v31 = vadd.f32 %v2237_v37, %v2121_v0 }
 0x1ea   : > { %v2490_v61 = vsel %vm9488_vm10, %v2442_v63, 0.0  ;;  %vm2399_vm15 = vcmp.ge.f32.partialorder %v9482_v45, 0.0  ;;  %v2124_v1 = vadd.f32 %v9410_v21, %v1952_v55  ;;  %v7346_v15 = vpop.f32.mrf.mxu0  ;;  %v2421_v12 = vmul.f32 0.1, %v9503_v56  ;;  %v11461_v21 = vld [vmem:[#allocation38_spill] sm:$0xff]  ;;  %vm9547_vm10 = vmand %vm2356_vm1, %vm2368_vm9  ;;  %v7323_v13 = vpop.f32.mrf.mxu1 }
 0x1eb   : > { %v9524_v43 = vpack.c.bf16 %v2490_v61, %v2489_v44  ;;  %vm2358_vm2 = vcmp.ge.s32.totalorder %v9206_v3, 0  ;;  %vm2370_vm13 = vcmp.lt.s32.totalorder %v9206_v3, 16  ;;  %v9530_v8 = vadd.f32 %v9273_v42, %v2294_v31  ;;  %vm9570_vm1 = vmand %vm2355_vm4, %vm2367_vm5 }
 0x1ec   : > { %v2299_v60 = vadd.f32 %v7346_v15, %v2126_v51  ;;  %vm2400_vm14 = vcmp.ge.f32.partialorder %v9518_v33, 0.0  ;;  %vm2397_vm0 = vcmp.ge.f32.partialorder %v9503_v56, 0.0  ;;  %vm2369_vm8 = vcmp.lt.s32.totalorder %v9213_v20, 16  ;;  %2720 = vrot.lane.b32.xlu1 %v9511_v57, %s8083_s13  ;;  %v2250_v62 = vpop.f32.mrf.mxu0  ;;  %v11466_v51 = vld [vmem:[#allocation56_spill] sm:$0xff] }
 0x1ed   : > { %v1784_v29 = vadd.f32 %v11461_v21, %v9292_v58  ;;  %v2127_v46 = vadd.f32 %v9437_v2, %v1955_v41  ;;  %2718 = vrot.lane.b32.xlu0 %v9524_v43, %s8083_s13  ;;  %v2424_v0 = vmul.f32 0.1, %v9518_v33  ;;  %v2447_v58 = vsel %vm2399_vm15, %v9482_v45, %v2423_v52  ;;  %v11467_v41 = vld [vmem:[#allocation19_spill] sm:$0xff]  ;;  %vm9621_vm15 = vmand %vm2358_vm2, %vm2370_vm13 }
 0x1ee   : > { %vm2360_vm11 = vcmp.ge.s32.totalorder %v9224_v5, 0  ;;  %v2125_v2 = vadd.f32 %v2080_v11, %v1953_v30  ;;  %v2297_v55 = vadd.f32 %v2250_v62, %v2124_v1  ;;  %vm2398_vm12 = vcmp.ge.f32.partialorder %v9530_v8, 0.0  ;;  %v7347_v32 = vpop.f32.mrf.mxu0 }
 0x1ef   : > { %v2422_v49 = vmul.f32 0.1, %v9530_v8  ;;  %v2130_v9 = vadd.f32 %v7322_v50, %v9203_v36  ;;  %v9561_v22 = vadd.f32 %v9273_v42, %v2299_v60  ;;  %v2448_v24 = vsel %vm2400_vm14, %v9518_v33, %v2424_v0  ;;  %vm9647_vm2 = vmand %vm2360_vm11, %vm2372_vm7 }
 0x1f0   : > { %v2445_v36 = vsel %vm2397_vm0, %v9503_v56, %v2421_v12  ;;  %v9578_v11 = vadd.f32 %v9273_v42, %v2297_v55  ;;  %v2300_v23 = vadd.f32 %v7347_v32, %v2127_v46  ;;  %v2495_v26 = vsel %vm9547_vm10, %v2447_v58, 0.0  ;;  %v2253_v38 = vpop.f32.mrf.mxu0  ;;  %v11468_v12 = vld [vmem:[#allocation20_spill] sm:$0xff] }
 0x1f1   : > { %v2496_v18 = vsel %vm9547_vm10, %v2448_v24, 0.0  ;;  %v2128_v19 = vadd.f32 %v2093_v7, %v11466_v51  ;;  %v1957_v30 = vadd.f32 %v11467_v41, %v1784_v29  ;;  %v2446_v16 = vsel %vm2398_vm12, %v9530_v8, %v2422_v49  ;;  %v2096_v51 = vpop.f32.mrf.mxu1 }
 0x1f2   : > { %v9586_v53 = vpack.c.bf16 %v2496_v18, %v2495_v26  ;;  %v9592_v47 = vadd.f32 %v9273_v42, %v2300_v23  ;;  %v2298_v37 = vadd.f32 %v2253_v38, %v2125_v2  ;;  %v2493_v63 = vsel %vm9570_vm1, %v2445_v36, 0.0  ;;  %v7350_v52 = vpop.f32.mrf.mxu0 }
 0x1f3   : > { %v2494_v44 = vsel %vm9570_vm1, %v2446_v16, 0.0  ;;  %vm2403_vm9 = vcmp.ge.f32.partialorder %v9561_v22, 0.0  ;;  %v2427_v31 = vmul.f32 0.1, %v9561_v22  ;;  %v2425_v61 = vmul.f32 0.1, %v9578_v11 }
 0x1f4   : > { %2724 = vrot.lane.b32.xlu1 %v9586_v53, %s8083_s13  ;;  %v9600_v50 = vpack.c.bf16 %v2494_v44, %v2493_v63  ;;  %v9606_v1 = vadd.f32 %v9273_v42, %v2298_v37  ;;  %v2303_v15 = vadd.f32 %v7350_v52, %v2130_v9  ;;  %vm2404_vm4 = vcmp.ge.f32.partialorder %v9592_v47, 0.0  ;;  %v2266_v21 = vpop.f32.mrf.mxu0 }
 0x1f5   : > { %vm2401_vm5 = vcmp.ge.f32.partialorder %v9578_v11, 0.0  ;;  %v2131_v60 = vadd.f32 %v7323_v13, %v11468_v12  ;;  %v2428_v29 = vmul.f32 0.1, %v9592_v47  ;;  %v2525_v46 = vshrl.u32 %v9375_v35, 16 }
 0x1f6   : > { %2722 = vrot.lane.b32.xlu0 %v9600_v50, %s8083_s13  ;;  %v2518_v62 = vshrl.u32 %v9373_v59, 16  ;;  %v2334_v4 = vadd.f32 %v9273_v42, %v2303_v15  ;;  %v2301_v0 = vadd.f32 %v2266_v21, %v2128_v19  ;;  %vm2402_vm14 = vcmp.ge.f32.partialorder %v9606_v1, 0.0  ;;  %v7351_v7 = vpop.f32.mrf.mxu0 }
 0x1f7   : > { %v2426_v2 = vmul.f32 0.1, %v9606_v1  ;;  %v2451_v55 = vsel %vm2403_vm9, %v9561_v22, %v2427_v31  ;;  %v2452_v49 = vsel %vm2404_vm4, %v9592_v47, %v2428_v29  ;;  %vm11471_vm0 = vcmp.ge.s32.totalorder %v9213_v20, 0 }
 0x1f8   : > { %vm9635_vm12 = vmand %vm11471_vm0, %vm2369_vm8  ;;  %v2449_v9 = vsel %vm2401_vm5, %v9578_v11, %v2425_v61  ;;  %v2528_v32 = vshll.u32 %v9375_v35, 16  ;;  %vm2407_vm13 = vcmp.ge.f32.partialorder %v2334_v4, 0.0  ;;  %v2431_v20 = vmul.f32 0.1, %v2334_v4  ;;  %v2269_v44 = vpop.f32.mrf.mxu0 }
 0x1f9   : > { %v9652_v17 = vadd.f32 %v9273_v42, %v2301_v0  ;;  %v2304_v36 = vadd.f32 %v7351_v7, %v2131_v60  ;;  %v2500_v23 = vsel %vm9621_vm15, %v2452_v49, 0.0  ;;  %v2450_v26 = vsel %vm2402_vm14, %v9606_v1, %v2426_v2 }
 0x1fa   : > { %v2527_v35 = vrot.slane %v2525_v46, 7  ;;  %v2521_v18 = vshll.u32 %v9373_v59, 16  ;;  %v2455_v5 = vsel %vm2407_vm13, %v2334_v4, %v2431_v20  ;;  %v2499_v41 = vsel %vm9621_vm15, %v2451_v55, 0.0  ;;  %v9685_v55 = vld [vmem:[%s11326_s3 + $0x10] sm:$0xf] }
 0x1fb   : > { %v2335_v19 = vadd.f32 %v9273_v42, %v2304_v36  ;;  %v2520_v38 = vrot.slane %v2518_v62, 7  ;;  %v2503_v16 = vsel %vm9647_vm2, %v2455_v5, 0.0  ;;  %v9663_v13 = vpack.c.bf16 %v2500_v23, %v2499_v41 }
 0x1fc   : > { %v2497_v37 = vsel %vm9635_vm12, %v2449_v9, 0.0  ;;  %v2498_v63 = vsel %vm9635_vm12, %v2450_v26, 0.0  ;;  %v2651_v31 = vrot.slane %v2528_v32, 1  ;;  %v2129_v61 = vadd.f32 %v2096_v51, %v1957_v30 }
 0x1fd   : > { %vm2408_vm7 = vcmp.ge.f32.partialorder %v2335_v19, 0.0  ;;  %v2432_v59 = vmul.f32 0.1, %v2335_v19  ;;  %v9669_v52 = vpack.c.bf16 %v2498_v63, %v2497_v37  ;;  %2728 = vrot.lane.b32.xlu1 %v9663_v13, %s8083_s13  ;;  %v2649_v15 = vrot.slane %v2521_v18, 1 }
 0x1fe   : > { %v2530_v60 = vor.u32 %v2528_v32, %v2527_v35  ;;  %v2302_v29 = vadd.f32 %v2269_v44, %v2129_v61  ;;  %v2523_v4 = vor.u32 %v2521_v18, %v2520_v38  ;;  %v2539_v0 = vshrl.u32 %v9433_v25, 16 }
 0x1ff   : > { %v2456_v12 = vsel %vm2408_vm7, %v2335_v19, %v2432_v59  ;;  %2726 = vrot.lane.b32.xlu0 %v9669_v52, %s8083_s13  ;;  %v2652_v2 = vor.u32 %v2651_v31, %v2525_v46  ;;  %v2542_v30 = vshll.u32 %v9433_v25, 16  ;;  %v2532_v7 = vshrl.u32 %v9451_v54, 16 }
 0x200   : > { %v2504_v21 = vsel %vm9647_vm2, %v2456_v12, 0.0  ;;  %v2650_v49 = vor.u32 %v2649_v15, %v2518_v62  ;;  %v2535_v3 = vshll.u32 %v9451_v54, 16  ;;  %v2347_v9 = vadd.s32 10, %v9156_v34 }
 0x201   : > { %v9678_v58 = vpack.c.bf16 %v2504_v21, %v2503_v16  ;;  %2603 = vrot.lane.b32.xlu1 %v2530_v60, %s8083_s13  ;;  %vm11476_vm8 = vcmask 1043456   ;;  %v2333_v25 = vadd.f32 %v9273_v42, %v2302_v29  ;;  %v2541_v46 = vrot.slane %v2539_v0, 7 }
 0x202   : > { %7770 = vmatprep.subr.msk.bf16.mxu0 %vm11476_vm8, %v9685_v55  ;;  %v2686_v24 = vsel %vm8506_vm6, %v2652_v2, 0  ;;  %v2534_v20 = vrot.slane %v2532_v7, 7  ;;  %v2655_v36 = vrot.slane %v2542_v30, 1  ;;  %v2685_v54 = vsel %vm8506_vm6, %v2650_v49, 0  ;;  %vm11487_vm15 = vmmov %vm11476_vm8 }
 0x203   : > { %2601 = vrot.lane.b32.xlu0 %v2523_v4, %s8083_s13  ;;  %v2653_v62 = vrot.slane %v2535_v3, 1  ;;  %vm2359_vm10 = vcmp.ge.s32.totalorder %v2347_v9, 0  ;;  %vm2371_vm11 = vcmp.lt.s32.totalorder %v2347_v9, 16  ;;  %v2429_v34 = vmul.f32 0.1, %v9652_v17  ;;  %vm11488_vm14 = vmmov %vm11476_vm8 }
 0x204   : > { %v2553_v42 = vshrl.u32 %v9511_v57, 16  ;;  %v2556_v23 = vshll.u32 %v9511_v57, 16  ;;  %vm2405_vm1 = vcmp.ge.f32.partialorder %v9652_v17, 0.0  ;;  %v2430_v26 = vmul.f32 0.1, %v2333_v25  ;;  %vm9705_vm9 = vmand %vm2359_vm10, %vm2371_vm11 }
 0x205   : > { %3038 = vrot.lane.b32.xlu1 %v2686_v24, %s8083_s13  ;;  %v2544_v35 = vor.u32 %v2542_v30, %v2541_v46  ;;  %v2546_v18 = vshrl.u32 %v9524_v43, 16  ;;  %v2537_v51 = vor.u32 %v2535_v3, %v2534_v20  ;;  %v2656_v5 = vor.u32 %v2655_v36, %v2539_v0  ;;  %vm11490_vm0 = vmmov %vm11476_vm8 }
 0x206   : > { %v5610_v41 = vmax.f32 %v9362_v28, 0.0  ;;  %v5616_v38 = vmax.f32 %v9415_v6, 0.0  ;;  %v2654_v16 = vor.u32 %v2653_v62, %v2532_v7  ;;  %v2549_v57 = vshll.u32 %v9524_v43, 16  ;;  %vm11491_vm12 = vmmov %vm11490_vm0 }
 0x207   : > { %3036 = vrot.lane.b32.xlu0 %v2685_v54, %s8083_s13  ;;  %vm2406_vm4 = vcmp.ge.f32.partialorder %v2333_v25, 0.0  ;;  %v5617_v37 = vmax.f32 %v9440_v14, 0.0  ;;  %v2555_v63 = vrot.slane %v2553_v42, 7  ;;  %v2659_v59 = vrot.slane %v2556_v23, 1  ;;  %vm11492_vm2 = vmmov %vm11490_vm0 }
 0x208   : > { %v2453_v44 = vsel %vm2405_vm1, %v9652_v17, %v2429_v34  ;;  %v5620_v28 = vmax.f32 %v9482_v45, 0.0  ;;  %v2548_v31 = vrot.slane %v2546_v18, 7  ;;  %v2454_v6 = vsel %vm2406_vm4, %v2333_v25, %v2430_v26  ;;  %vm11493_vm13 = vmmov %vm11490_vm0 }
 0x209   : > { %2607 = vrot.lane.b32.xlu1 %v2544_v35, %s8083_s13  ;;  %v2501_v61 = vsel %vm9705_vm9, %v2453_v44, 0.0  ;;  %v5621_v43 = vmax.f32 %v9518_v33, 0.0  ;;  %v5624_v15 = vmax.f32 %v9561_v22, 0.0  ;;  %v2688_v14 = vsel %vm8506_vm6, %v2656_v5, 0  ;;  %vm11494_vm7 = vmmov %vm11490_vm0 }
 0x20a   : > { %v2502_v12 = vsel %vm9705_vm9, %v2454_v6, 0.0  ;;  %v5625_v60 = vmax.f32 %v9592_v47, 0.0  ;;  %v2687_v45 = vsel %vm8506_vm6, %v2654_v16, 0  ;;  %v2657_v17 = vrot.slane %v2549_v57, 1  ;;  %vm11495_vm8 = vmmov %vm11490_vm0 }
 0x20b   : > { %2605 = vrot.lane.b32.xlu0 %v2537_v51, %s8083_s13  ;;  %v9731_v21 = vpack.c.bf16 %v2502_v12, %v2501_v61  ;;  %v2558_v33 = vor.u32 %v2556_v23, %v2555_v63  ;;  %v2660_v22 = vor.u32 %v2659_v59, %v2553_v42  ;;  %v2567_v29 = vshrl.u32 %v9586_v53, 16  ;;  %vm11496_vm10 = vmmov %vm11490_vm0 }
 0x20c   : > { %v5611_v4 = vmax.f32 %v9384_v39, 0.0  ;;  %v2551_v0 = vor.u32 %v2549_v57, %v2548_v31  ;;  %v2570_v2 = vshll.u32 %v9586_v53, 16  ;;  %v5614_v47 = vmax.f32 %v9424_v27, 0.0  ;;  %vm11497_vm11 = vmmov %vm11490_vm0 }
 0x20d   : > { %3042 = vrot.lane.b32.xlu1 %v2688_v14, %s8083_s13  ;;  %v5615_v30 = vmax.f32 %v9456_v10, 0.0  ;;  %v2560_v7 = vshrl.u32 %v9600_v50, 16  ;;  %v2563_v49 = vshll.u32 %v9600_v50, 16  ;;  %v9743_v9 = vpack.c.bf16 %v5617_v37, %v5616_v38  ;;  %vm11498_vm1 = vmmov %vm11490_vm0 }
 0x20e   : > { %v9741_v3 = vpack.c.bf16 %v5611_v4, %v5610_v41  ;;  %v2658_v25 = vor.u32 %v2657_v17, %v2546_v18  ;;  %v5618_v39 = vmax.f32 %v9503_v56, 0.0  ;;  %v5619_v53 = vmax.f32 %v9530_v8, 0.0  ;;  %vm11499_vm9 = vmmov %vm11490_vm0 }
 0x20f   : > { %3040 = vrot.lane.b32.xlu0 %v2687_v45, %s8083_s13  ;;  %11481 = vst [vmem:[#allocation24_spill] sm:$0xff] %v9743_v9  ;;  %v9746_v46 = vpack.c.bf16 %v5615_v30, %v5614_v47  ;;  %v9751_v27 = vpack.c.bf16 %v5621_v43, %v5620_v28  ;;  %v5622_v10 = vmax.f32 %v9578_v11, 0.0  ;;  %v5623_v50 = vmax.f32 %v9606_v1, 0.0  ;;  %v6503_v47 = vld [vmem:[%s11326_s3 + $0xc] sm:$0xf]  ;;  %vm11504_vm4 = vmmov %vm11490_vm0 }
 0x210   : > { %11480 = vst [vmem:[#allocation22_spill] sm:$0xff] %v9741_v3  ;;  %v2569_v24 = vrot.slane %v2567_v29, 7  ;;  %v9755_v20 = vpack.c.bf16 %v5619_v53, %v5618_v39  ;;  %v9757_v36 = vpack.c.bf16 %v5625_v60, %v5624_v15  ;;  %v2690_v54 = vsel %vm8506_vm6, %v2660_v22, 0 }
 0x211   : > { %2611 = vrot.lane.b32.xlu1 %v2558_v33, %s8083_s13  ;;  %11482 = vst [vmem:[#allocation34_spill] sm:$0xff] %v9746_v46  ;;  %11483 = vst [vmem:[#allocation23_spill] sm:$0xff] %v9751_v27  ;;  %v2562_v62 = vrot.slane %v2560_v7, 7  ;;  %v2663_v56 = vrot.slane %v2570_v2, 1  ;;  %v9761_v34 = vpack.c.bf16 %v5623_v50, %v5622_v10  ;;  %v2689_v8 = vsel %vm8506_vm6, %v2658_v25, 0 }
 0x212   : > { %11484 = vst [vmem:[#allocation26_spill] sm:$0xff] %v9755_v20  ;;  %11485 = vst [vmem:[#allocation25_spill] sm:$0xff] %v9757_v36  ;;  %v2661_v11 = vrot.slane %v2563_v49, 1  ;;  %v2572_v1 = vor.u32 %v2570_v2, %v2569_v24  ;;  %v2581_v42 = vshrl.u32 %v9663_v13, 16  ;;  %v2584_v35 = vshll.u32 %v9663_v13, 16 }
 0x213   : > { %2609 = vrot.lane.b32.xlu0 %v2551_v0, %s8083_s13  ;;  %11486 = vst [vmem:[#allocation27_spill] sm:$0xff] %v9761_v34  ;;  %v2565_v23 = vor.u32 %v2563_v49, %v2562_v62  ;;  %v2664_v26 = vor.u32 %v2663_v56, %v2567_v29  ;;  %v2574_v18 = vshrl.u32 %v9669_v52, 16  ;;  %v2577_v5 = vshll.u32 %v9669_v52, 16 }
 0x214   : > { %v2662_v51 = vor.u32 %v2661_v11, %v2560_v7  ;;  %v2583_v19 = vrot.slane %v2581_v42, 7  ;;  %v2667_v16 = vrot.slane %v2584_v35, 1  ;;  %v2588_v52 = vshrl.u32 %v9731_v21, 16  ;;  %v6536_v11 = vld [vmem:[%s11326_s3 + $0x18] sm:$0xf] }
 0x215   : > { %3046 = vrot.lane.b32.xlu1 %v2690_v54, %s8083_s13  ;;  %v2692_v41 = vsel %vm8506_vm6, %v2664_v26, 0  ;;  %v2576_v38 = vrot.slane %v2574_v18, 7  ;;  %v2665_v57 = vrot.slane %v2577_v5, 1  ;;  %v2591_v28 = vshll.u32 %v9731_v21, 16 }
 0x216   : > { %v2691_v13 = vsel %vm8506_vm6, %v2662_v51, 0  ;;  %v2586_v37 = vor.u32 %v2584_v35, %v2583_v19  ;;  %v2668_v59 = vor.u32 %v2667_v16, %v2581_v42  ;;  %v2595_v31 = vshrl.u32 %v9678_v58, 16 }
 0x217   : > { %3044 = vrot.lane.b32.xlu0 %v2689_v8, %s8083_s13  ;;  %v2579_v63 = vor.u32 %v2577_v5, %v2576_v38  ;;  %v2666_v44 = vor.u32 %v2665_v57, %v2574_v18  ;;  %v2590_v61 = vrot.slane %v2588_v52, 7  ;;  %v2598_v43 = vshll.u32 %v9678_v58, 16 }
 0x218   : > { %v2694_v6 = vsel %vm8506_vm6, %v2668_v59, 0  ;;  %v2669_v14 = vrot.slane %v2591_v28, 1  ;;  %v2597_v12 = vrot.slane %v2595_v31, 7  ;;  %vm2730_vm5 = vcmask 64512  }
 0x219   : > { %2615 = vrot.lane.b32.xlu1 %v2572_v1, %s8083_s13  ;;  %v2693_v15 = vsel %vm8506_vm6, %v2666_v44, 0  ;;  %v2593_v60 = vor.u32 %v2591_v28, %v2590_v61  ;;  %v2671_v45 = vrot.slane %v2598_v43, 1  ;;  %v2909_v0 = vsel %vm11487_vm15, %v9323_v40, 0  ;;  %vm11505_vm15 = vmmov %vm11490_vm0 }
 0x21a   : > { %v2670_v17 = vor.u32 %v2669_v14, %v2588_v52  ;;  %v2600_v33 = vor.u32 %v2598_v43, %v2597_v12  ;;  %v3372_v8 = vsel %vm11490_vm0, %v9685_v55, 0  ;;  %v3228_v1 = vsel %vm11491_vm12, %v6503_v47, 0  ;;  %v6525_v55 = vld [vmem:[%s11326_s3 + $0x14] sm:$0xf] }
 0x21b   : > { %2613 = vrot.lane.b32.xlu0 %v2565_v23, %s8083_s13  ;;  %v2672_v22 = vor.u32 %v2671_v45, %v2595_v31  ;;  %v3657_v12 = vsel %vm11494_vm7, %v6536_v11, 0  ;;  %v3516_v45 = vsel %vm11495_vm8, %v6525_v55, 0 }
 0x21c   : > { %v2695_v29 = vsel %vm8506_vm6, %v2670_v17, 0  ;;  %v6547_v17 = vld [vmem:[%s11326_s3 + $0x1c] sm:$0xf] }
 0x21d   : > { %3050 = vrot.lane.b32.xlu1 %v2692_v41, %s8083_s13  ;;  %v2696_v4 = vsel %vm8506_vm6, %v2672_v22, 0 }
 0x21f   : > { %3048 = vrot.lane.b32.xlu0 %v2691_v13, %s8083_s13 }
 0x221   : > { %2619 = vrot.lane.b32.xlu1 %v2586_v37, %s8083_s13 }
 0x223   : > { %2617 = vrot.lane.b32.xlu0 %v2579_v63, %s8083_s13 }
 0x225   : > { %3054 = vrot.lane.b32.xlu1 %v2694_v6, %s8083_s13 }
 0x227   : > { %3052 = vrot.lane.b32.xlu0 %v2693_v15, %s8083_s13 }
 0x229   : > { %3366 = vrot.lane.b32.xlu1 %v9731_v21, %s8083_s13 }
 0x22b   : > { %2621 = vrot.lane.b32.xlu0 %v2593_v60, %s8083_s13  ;;  %v6558_v60 = vld [vmem:[%s11326_s3 + $0x20] sm:$0xf] }
 0x22d   : > { %2623 = vrot.lane.b32.xlu1 %v2600_v33, %s8083_s13 }
 0x22f   : > { %3510 = vrot.lane.b32.xlu0 %v2695_v29, %s8083_s13 }
 0x231   : > { %3939 = vrot.lane.b32.xlu1 %v2696_v4, %s8083_s13  ;;  %v3945_v4 = vsel %vm11498_vm1, %v6558_v60, 0 }
 0x233   : > { %3795 = vrot.lane.b32.xlu0 %v9678_v58, %s8083_s13  ;;  %s416_s13 = sand.u32 1, %s8042_s18  }
 0x234   : > { %s6293_s26 = sshll.u32 %s416_s13, 6  ;;  %s11263_s29 = scalar_lea.sflag [#allocation4], %s416_s13 }
 0x235   : > { %s11224_s12 = scalar_lea.vmem [#allocation5], %s6293_s26 }
 0x236   : > { %s6198_s19 = sshll.u32 %s11224_s12, 4  ;;  %s11257_s19 = int_to_ptr.vmem [resolvable:$true] %s6198_s19 }
 0x237   : > { %s7958_s14 = scalar_lea.vmem %s11257_s19, 1024 }
 0x238   : > { %p7959_p7 = scmp.ne.s32.totalorder %s11257_s19, %s7958_s14 }
 0x23a   : > { %p7960_p4 = pnand %p7959_p7, %p8230_p12 }
 0x23c   : > { %p7961_p5 = pneg %p7960_p4 }
 0x24d   : > { %v2711_v21 = vpop.permute.xlu0 %2710 }
 0x24e   : > { %7354 = vmatprep.mubr.msk.bf16.mxu1 %vm2730_vm5, %v2711_v21  ;;  %v3801_v21 = vsel %vm11499_vm9, %v6547_v17, 0 }
 0x251   : > { %v9806_v2 = vpop.permute.xlu0 %2712 }
 0x252   : > { %7355 = vmatmul.mubr.msk.bf16.vlgmr.msra.gmra.mxu1 %vm2730_vm5, %v9806_v2 }
 0x253   : > { %7375 = vmatpush3.bf16.msra.mxu1 %v2909_v0 }
 0x254   : > { %7769 = vmatprep.subr.msk.bf16.mxu1 %vm11488_vm14, %v6503_v47  ;;  %vm11506_vm14 = vmmov %vm11490_vm0 }
 0x256   : > { %v9814_v58 = vpop.permute.xlu1 %2714 }
 0x257   : > { %7358 = vmatprep.mubr.msk.bf16.mxu1 %vm2730_vm5, %v9814_v58 }
 0x25a   : > { %v9818_v30 = vpop.permute.xlu1 %2716 }
 0x25b   : > { %7359 = vmatmul.mubr.msk.bf16.gmra.mxu1 %vm2730_vm5, %v9818_v30 }
 0x25e   : > { %v9826_v7 = vpop.permute.xlu1 %2720 }
 0x25f   : > { %v9822_v40 = vpop.permute.xlu0 %2718 }
 0x260   : > { %7362 = vmatprep.mubr.msk.bf16.mxu1 %vm2730_vm5, %v9822_v40 }
 0x263   : > { %7363 = vmatmul.mubr.msk.bf16.gmra.mxu1 %vm2730_vm5, %v9826_v7 }
 0x266   : > { %v9834_v25 = vpop.permute.xlu1 %2724 }
 0x268   : > { %v9830_v49 = vpop.permute.xlu0 %2722 }
 0x269   : > { %7366 = vmatprep.mubr.msk.bf16.mxu1 %vm2730_vm5, %v9830_v49 }
 0x26b   : > { %7367 = vmatmul.mubr.msk.bf16.gmra.mxu1 %vm2730_vm5, %v9834_v25 }
 0x26f   : > { %v9838_v39 = vpop.permute.xlu1 %2728 }
 0x271   : > { %v9840_v53 = vpop.permute.xlu0 %2726 }
 0x272   : > { %7370 = vmatprep.mubr.msk.bf16.mxu1 %vm2730_vm5, %v9840_v53 }
 0x273   : > { %v2604_v10 = vpop.permute.xlu1 %2603  ;;  %7371 = vmatmul.mubr.msk.bf16.gmra.mxu1 %vm2730_vm5, %v9838_v39 }
 0x274   : > { %v2638_v42 = vsel %vm8307_vm3, 0, %v2604_v10 }
 0x275   : > { %v2602_v50 = vpop.permute.xlu0 %2601 }
 0x276   : > { %v2637_v54 = vsel %vm8307_vm3, 0, %v2602_v50 }
 0x277   : > { %7376 = vmatprep.mubr.msk.bf16.mxu1 %vm2730_vm5, %v2637_v54  ;;  %v9849_v62 = vpop.permute.xlu1 %3038 }
 0x279   : > { %v3037_v56 = vpop.permute.xlu0 %3036 }
 0x27a   : > { %7398 = vmatprep.mubr.msk.bf16.mxu0 %vm2730_vm5, %v3037_v56 }
 0x27b   : > { %7399 = vmatmul.mubr.msk.bf16.vlgmr.msra.gmra.mxu0 %vm2730_vm5, %v9849_v62  ;;  %v2608_v23 = vpop.permute.xlu1 %2607  ;;  %7377 = vmatmul.mubr.msk.bf16.vlgmr.msra.gmra.mxu1 %vm2730_vm5, %v2638_v42 }
 0x27c   : > { %7441 = vmatpush3.bf16.msra.mxu0 %v3372_v8  ;;  %7419 = vmatpush3.bf16.msra.mxu1 %v3228_v1  ;;  %v9884_v5 = vsel %vm8307_vm3, 0, %v2608_v23 }
 0x27d   : > { %v2606_v26 = vpop.permute.xlu0 %2605  ;;  %7772 = vmatprep.subr.msk.bf16.mxu0 %vm11492_vm2, %v6536_v11  ;;  %7771 = vmatprep.subr.msk.bf16.mxu1 %vm11493_vm13, %v6525_v55 }
 0x27e   : > { %v9869_v35 = vsel %vm8307_vm3, 0, %v2606_v26 }
 0x27f   : > { %7380 = vmatprep.mubr.msk.bf16.mxu1 %vm2730_vm5, %v9869_v35  ;;  %v9874_v18 = vpop.permute.xlu1 %3042 }
 0x281   : > { %v9876_v51 = vpop.permute.xlu0 %3040 }
 0x282   : > { %7402 = vmatprep.mubr.msk.bf16.mxu0 %vm2730_vm5, %v9876_v51 }
 0x283   : > { %7403 = vmatmul.mubr.msk.bf16.gmra.mxu0 %vm2730_vm5, %v9874_v18  ;;  %v2612_v19 = vpop.permute.xlu1 %2611  ;;  %7381 = vmatmul.mubr.msk.bf16.gmra.mxu1 %vm2730_vm5, %v9884_v5 }
 0x284   : > { %v9904_v57 = vsel %vm8307_vm3, 0, %v2612_v19 }
 0x285   : > { %v2610_v41 = vpop.permute.xlu0 %2609 }
 0x286   : > { %v9890_v38 = vsel %vm8307_vm3, 0, %v2610_v41 }
 0x287   : > { %7384 = vmatprep.mubr.msk.bf16.mxu1 %vm2730_vm5, %v9890_v38  ;;  %v9894_v16 = vpop.permute.xlu1 %3046 }
 0x289   : > { %v9896_v13 = vpop.permute.xlu0 %3044 }
 0x28a   : > { %7406 = vmatprep.mubr.msk.bf16.mxu0 %vm2730_vm5, %v9896_v13 }
 0x28b   : > { %7407 = vmatmul.mubr.msk.bf16.gmra.mxu0 %vm2730_vm5, %v9894_v16  ;;  %v2616_v37 = vpop.permute.xlu1 %2615  ;;  %7385 = vmatmul.mubr.msk.bf16.gmra.mxu1 %vm2730_vm5, %v9904_v57 }
 0x28c   : > { %v2644_v28 = vsel %vm8307_vm3, 0, %v2616_v37 }
 0x28d   : > { %v2614_v63 = vpop.permute.xlu0 %2613 }
 0x28e   : > { %v2643_v59 = vsel %vm8307_vm3, 0, %v2614_v63 }
 0x28f   : > { %7388 = vmatprep.mubr.msk.bf16.mxu1 %vm2730_vm5, %v2643_v59  ;;  %v9911_v52 = vpop.permute.xlu1 %3050 }
 0x291   : > { %v9913_v44 = vpop.permute.xlu0 %3048 }
 0x292   : > { %7410 = vmatprep.mubr.msk.bf16.mxu0 %vm2730_vm5, %v9913_v44 }
 0x293   : > { %7411 = vmatmul.mubr.msk.bf16.gmra.mxu0 %vm2730_vm5, %v9911_v52  ;;  %v2620_v31 = vpop.permute.xlu1 %2619  ;;  %7389 = vmatmul.mubr.msk.bf16.gmra.mxu1 %vm2730_vm5, %v2644_v28 }
 0x294   : > { %v2646_v14 = vsel %vm8307_vm3, 0, %v2620_v31 }
 0x295   : > { %v2618_v6 = vpop.permute.xlu0 %2617 }
 0x296   : > { %v2645_v61 = vsel %vm8307_vm3, 0, %v2618_v6 }
 0x297   : > { %7392 = vmatprep.mubr.msk.bf16.mxu1 %vm2730_vm5, %v2645_v61  ;;  %v9927_v15 = vpop.permute.xlu1 %3054 }
 0x299   : > { %v9925_v43 = vpop.permute.xlu0 %3052 }
 0x29a   : > { %7414 = vmatprep.mubr.msk.bf16.mxu0 %vm2730_vm5, %v9925_v43 }
 0x29b   : > { %7415 = vmatmul.mubr.msk.bf16.gmra.mxu0 %vm2730_vm5, %v9927_v15  ;;  %7393 = vmatmul.mubr.msk.bf16.gmra.mxu1 %vm2730_vm5, %v2646_v14  ;;  %v3367_v22 = vpop.permute.xlu1 %3366 }
 0x29c   : > { %7442 = vmatprep.mubr.msk.bf16.mxu0 %vm2730_vm5, %v9806_v2  ;;  %7420 = vmatprep.mubr.msk.bf16.mxu1 %vm2730_vm5, %v2638_v42 }
 0x29d   : > { %v2622_v33 = vpop.permute.xlu0 %2621 }
 0x29e   : > { %v2647_v29 = vsel %vm8307_vm3, 0, %v2622_v33 }
 0x29f   : > { %v2624_v0 = vpop.permute.xlu1 %2623 }
 0x2a0   : > { %v2648_v2 = vsel %vm8307_vm3, 0, %v2624_v0 }
 0x2a1   : > { %v3511_v47 = vpop.permute.xlu0 %3510 }
 0x2a3   : > { %7443 = vmatmul.mubr.msk.bf16.vlgmr.msra.gmra.mxu0 %vm2730_vm5, %v9814_v58  ;;  %7421 = vmatmul.mubr.msk.bf16.vlgmr.msra.gmra.mxu1 %vm2730_vm5, %v9869_v35 }
 0x2a4   : > { %7446 = vmatprep.mubr.msk.bf16.mxu0 %vm2730_vm5, %v9818_v30  ;;  %7485 = vmatpush3.bf16.msra.mxu0 %v3657_v12 }
 0x2a5   : > { %7774 = vmatprep.subr.msk.bf16.mxu0 %vm11496_vm10, %v6558_v60  ;;  %7424 = vmatprep.mubr.msk.bf16.mxu1 %vm2730_vm5, %v9884_v5 }
 0x2a6   : > { %7463 = vmatpush3.bf16.msra.mxu1 %v3516_v45 }
 0x2a7   : > { %7773 = vmatprep.subr.msk.bf16.mxu1 %vm11497_vm11, %v6547_v17 }
 0x2ab   : > { %7447 = vmatmul.mubr.msk.bf16.gmra.mxu0 %vm2730_vm5, %v9822_v40  ;;  %7425 = vmatmul.mubr.msk.bf16.gmra.mxu1 %vm2730_vm5, %v9890_v38 }
 0x2ac   : > { %7450 = vmatprep.mubr.msk.bf16.mxu0 %vm2730_vm5, %v9826_v7  ;;  %7428 = vmatprep.mubr.msk.bf16.mxu1 %vm2730_vm5, %v9904_v57 }
 0x2b3   : > { %7451 = vmatmul.mubr.msk.bf16.gmra.mxu0 %vm2730_vm5, %v9830_v49  ;;  %7429 = vmatmul.mubr.msk.bf16.gmra.mxu1 %vm2730_vm5, %v2643_v59 }
 0x2b4   : > { %7454 = vmatprep.mubr.msk.bf16.mxu0 %vm2730_vm5, %v9834_v25  ;;  %7432 = vmatprep.mubr.msk.bf16.mxu1 %vm2730_vm5, %v2644_v28 }
 0x2bb   : > { %7455 = vmatmul.mubr.msk.bf16.gmra.mxu0 %vm2730_vm5, %v9840_v53  ;;  %7433 = vmatmul.mubr.msk.bf16.gmra.mxu1 %vm2730_vm5, %v2645_v61 }
 0x2bc   : > { %7458 = vmatprep.mubr.msk.bf16.mxu0 %vm2730_vm5, %v9838_v39  ;;  %7436 = vmatprep.mubr.msk.bf16.mxu1 %vm2730_vm5, %v2646_v14 }
 0x2c3   : > { %7459 = vmatmul.mubr.msk.bf16.gmra.mxu0 %vm2730_vm5, %v3367_v22  ;;  %7437 = vmatmul.mubr.msk.bf16.gmra.mxu1 %vm2730_vm5, %v2647_v29 }
 0x2c4   : > { %7486 = vmatprep.mubr.msk.bf16.mxu0 %vm2730_vm5, %v9869_v35  ;;  %7464 = vmatprep.mubr.msk.bf16.mxu1 %vm2730_vm5, %v9849_v62 }
 0x2cb   : > { %7487 = vmatmul.mubr.msk.bf16.vlgmr.msra.gmra.mxu0 %vm2730_vm5, %v9884_v5  ;;  %7465 = vmatmul.mubr.msk.bf16.vlgmr.msra.gmra.mxu1 %vm2730_vm5, %v9876_v51 }
 0x2cc   : > { %7490 = vmatprep.mubr.msk.bf16.mxu0 %vm2730_vm5, %v9890_v38  ;;  %7529 = vmatpush3.bf16.msra.mxu0 %v3945_v4 }
 0x2cd   : > { %7468 = vmatprep.mubr.msk.bf16.mxu1 %vm2730_vm5, %v9874_v18  ;;  %7507 = vmatpush3.bf16.msra.mxu1 %v3801_v21 }
 0x2d3   : > { %7491 = vmatmul.mubr.msk.bf16.gmra.mxu0 %vm2730_vm5, %v9904_v57  ;;  %7469 = vmatmul.mubr.msk.bf16.gmra.mxu1 %vm2730_vm5, %v9896_v13 }
 0x2d4   : > { %7494 = vmatprep.mubr.msk.bf16.mxu0 %vm2730_vm5, %v2643_v59  ;;  %7472 = vmatprep.mubr.msk.bf16.mxu1 %vm2730_vm5, %v9894_v16 }
 0x2db   : > { %7495 = vmatmul.mubr.msk.bf16.gmra.mxu0 %vm2730_vm5, %v2644_v28  ;;  %7473 = vmatmul.mubr.msk.bf16.gmra.mxu1 %vm2730_vm5, %v9913_v44 }
 0x2dc   : > { %7498 = vmatprep.mubr.msk.bf16.mxu0 %vm2730_vm5, %v2645_v61  ;;  %7476 = vmatprep.mubr.msk.bf16.mxu1 %vm2730_vm5, %v9911_v52 }
 0x2e3   : > { %7499 = vmatmul.mubr.msk.bf16.gmra.mxu0 %vm2730_vm5, %v2646_v14  ;;  %7477 = vmatmul.mubr.msk.bf16.gmra.mxu1 %vm2730_vm5, %v9925_v43 }
 0x2e4   : > { %7502 = vmatprep.mubr.msk.bf16.mxu0 %vm2730_vm5, %v2647_v29  ;;  %7480 = vmatprep.mubr.msk.bf16.mxu1 %vm2730_vm5, %v9927_v15 }
 0x2eb   : > { %7503 = vmatmul.mubr.msk.bf16.gmra.mxu0 %vm2730_vm5, %v2648_v2  ;;  %7481 = vmatmul.mubr.msk.bf16.gmra.mxu1 %vm2730_vm5, %v3511_v47 }
 0x2ec   : > { %7530 = vmatprep.mubr.msk.bf16.mxu0 %vm2730_vm5, %v9876_v51  ;;  %7508 = vmatprep.mubr.msk.bf16.mxu1 %vm2730_vm5, %v9814_v58  ;;  %v3940_v58 = vpop.permute.xlu1 %3939 }
 0x2f3   : > { %7531 = vmatmul.mubr.msk.bf16.vlgmr.msra.gmra.mxu0 %vm2730_vm5, %v9874_v18  ;;  %7509 = vmatmul.mubr.msk.bf16.vlgmr.msra.gmra.mxu1 %vm2730_vm5, %v9818_v30  ;;  %v3796_v30 = vpop.permute.xlu0 %3795 }
 0x2f4   : > { %7534 = vmatprep.mubr.msk.bf16.mxu0 %vm2730_vm5, %v9896_v13  ;;  %7512 = vmatprep.mubr.msk.bf16.mxu1 %vm2730_vm5, %v9822_v40 }
 0x2fb   : > { %7535 = vmatmul.mubr.msk.bf16.gmra.mxu0 %vm2730_vm5, %v9894_v16  ;;  %7513 = vmatmul.mubr.msk.bf16.gmra.mxu1 %vm2730_vm5, %v9826_v7 }
 0x2fc   : > { %7538 = vmatprep.mubr.msk.bf16.mxu0 %vm2730_vm5, %v9913_v44  ;;  %7516 = vmatprep.mubr.msk.bf16.mxu1 %vm2730_vm5, %v9830_v49 }
 0x303   : > { %7539 = vmatmul.mubr.msk.bf16.gmra.mxu0 %vm2730_vm5, %v9911_v52  ;;  %7517 = vmatmul.mubr.msk.bf16.gmra.mxu1 %vm2730_vm5, %v9834_v25 }
 0x304   : > { %7542 = vmatprep.mubr.msk.bf16.mxu0 %vm2730_vm5, %v9925_v43  ;;  %7520 = vmatprep.mubr.msk.bf16.mxu1 %vm2730_vm5, %v9840_v53 }
 0x30b   : > { %7543 = vmatmul.mubr.msk.bf16.gmra.mxu0 %vm2730_vm5, %v9927_v15  ;;  %7521 = vmatmul.mubr.msk.bf16.gmra.mxu1 %vm2730_vm5, %v9838_v39 }
 0x30c   : > { %7546 = vmatprep.mubr.msk.bf16.mxu0 %vm2730_vm5, %v3511_v47  ;;  %7524 = vmatprep.mubr.msk.bf16.mxu1 %vm2730_vm5, %v3367_v22 }
 0x312   : > { %v7356_v40 = vpop.f32.mrf.mxu1 }
 0x313   : > { %7547 = vmatmul.mubr.msk.bf16.gmra.mxu0 %vm2730_vm5, %v3940_v58  ;;  %7525 = vmatmul.mubr.msk.bf16.gmra.mxu1 %vm2730_vm5, %v3796_v30 }
 0x314   : > { %v2799_v7 = vpop.f32.mrf.mxu1 }
 0x316   : > { %v7357_v49 = vpop.f32.mrf.mxu1 }
 0x318   : > { %v10054_v25 = vpop.f32.mrf.mxu1 }
 0x31b   : > { %v7360_v53 = vpop.f32.mrf.mxu1 }
 0x31d   : > { %v2815_v10 = vpop.f32.mrf.mxu1 }
 0x31f   : > { %v7361_v50 = vpop.f32.mrf.mxu1 }
 0x321   : > { %v10056_v54 = vpop.f32.mrf.mxu1 }
 0x323   : > { %v7364_v62 = vpop.f32.mrf.mxu1 }
 0x325   : > { %v2831_v39 = vpop.f32.mrf.mxu1 }
 0x327   : > { %v7365_v56 = vpop.f32.mrf.mxu1 }
 0x329   : > { %v10058_v8 = vpop.f32.mrf.mxu1 }
 0x32b   : > { %v7368_v11 = vpop.f32.mrf.mxu1 }
 0x32d   : > { %v2847_v1 = vpop.f32.mrf.mxu1 }
 0x32f   : > { %v7369_v42 = vpop.f32.mrf.mxu1 }
 0x331   : > { %v10060_v23 = vpop.f32.mrf.mxu1 }
 0x333   : > { %v10062_v55 = vpop.f32.mrf.mxu1 }
 0x335   : > { %v10064_v26 = vpop.f32.mrf.mxu1 }
 0x337   : > { %v10066_v35 = vpop.f32.mrf.mxu1 }
 0x339   : > { %v10068_v51 = vpop.f32.mrf.mxu1 }
 0x33b   : > { %v7400_v18 = vpop.f32.mrf.mxu0  ;;  %v7378_v19 = vpop.f32.mrf.mxu1 }
 0x33c   : > { %v2954_v41 = vadd.f32 %v7378_v19, %v7356_v40 }
 0x33d   : > { %v3123_v5 = vpop.f32.mrf.mxu0  ;;  %v2945_v16 = vpop.f32.mrf.mxu1 }
 0x33e   : > { %v2946_v13 = vadd.f32 %v2945_v16, %v2799_v7  ;;  %v10070_v57 = vadd.f32 %v7400_v18, %v2954_v41 }
 0x33f   : > { %v7401_v38 = vpop.f32.mrf.mxu0  ;;  %v7379_v63 = vpop.f32.mrf.mxu1 }
 0x340   : > { %v2957_v59 = vadd.f32 %v7379_v63, %v7357_v49  ;;  %v10074_v52 = vadd.f32 %v3123_v5, %v2946_v13 }
 0x341   : > { %v10072_v37 = vpop.f32.mrf.mxu0  ;;  %v10076_v28 = vpop.f32.mrf.mxu1 }
 0x342   : > { %v10078_v31 = vadd.f32 %v7401_v38, %v2957_v59 }
 0x343   : > { %v7404_v44 = vpop.f32.mrf.mxu0  ;;  %v7382_v61 = vpop.f32.mrf.mxu1 }
 0x344   : > { %v2970_v43 = vadd.f32 %v7382_v61, %v7360_v53 }
 0x345   : > { %v3139_v6 = vpop.f32.mrf.mxu0  ;;  %v2961_v14 = vpop.f32.mrf.mxu1 }
 0x346   : > { %v2962_v12 = vadd.f32 %v2961_v14, %v2815_v10  ;;  %v10080_v60 = vadd.f32 %v7404_v44, %v2970_v43 }
 0x347   : > { %v7405_v15 = vpop.f32.mrf.mxu0  ;;  %v7383_v17 = vpop.f32.mrf.mxu1 }
 0x348   : > { %v2973_v33 = vadd.f32 %v7383_v17, %v7361_v50  ;;  %v10084_v22 = vadd.f32 %v3139_v6, %v2962_v12 }
 0x349   : > { %v10082_v45 = vpop.f32.mrf.mxu0  ;;  %v10086_v4 = vpop.f32.mrf.mxu1 }
 0x34a   : > { %v10088_v21 = vadd.f32 %v7405_v15, %v2973_v33 }
 0x34b   : > { %v7408_v29 = vpop.f32.mrf.mxu0  ;;  %v7386_v2 = vpop.f32.mrf.mxu1 }
 0x34c   : > { %v2986_v47 = vadd.f32 %v7386_v2, %v7364_v62 }
 0x34d   : > { %v3155_v0 = vpop.f32.mrf.mxu0  ;;  %v2977_v30 = vpop.f32.mrf.mxu1 }
 0x34e   : > { %v2978_v40 = vadd.f32 %v2977_v30, %v2831_v39  ;;  %v10090_v7 = vadd.f32 %v7408_v29, %v2986_v47 }
 0x34f   : > { %v7409_v58 = vpop.f32.mrf.mxu0  ;;  %v7387_v53 = vpop.f32.mrf.mxu1 }
 0x350   : > { %v2989_v10 = vadd.f32 %v7387_v53, %v7365_v56  ;;  %v10094_v50 = vadd.f32 %v3155_v0, %v2978_v40 }
 0x351   : > { %v10092_v49 = vpop.f32.mrf.mxu0  ;;  %v10096_v5 = vpop.f32.mrf.mxu1 }
 0x352   : > { %v10098_v19 = vadd.f32 %v7409_v58, %v2989_v10 }
 0x353   : > { %v7412_v18 = vpop.f32.mrf.mxu0  ;;  %v7390_v38 = vpop.f32.mrf.mxu1 }
 0x354   : > { %v3002_v16 = vadd.f32 %v7390_v38, %v7368_v11 }
 0x355   : > { %v3171_v41 = vpop.f32.mrf.mxu0  ;;  %v2993_v13 = vpop.f32.mrf.mxu1 }
 0x356   : > { %v2994_v63 = vadd.f32 %v2993_v13, %v2847_v1  ;;  %v10100_v39 = vadd.f32 %v7412_v18, %v3002_v16 }
 0x357   : > { %v7413_v62 = vpop.f32.mrf.mxu0  ;;  %v7391_v44 = vpop.f32.mrf.mxu1 }
 0x358   : > { %v3005_v6 = vadd.f32 %v7391_v44, %v7369_v42  ;;  %v10104_v56 = vadd.f32 %v3171_v41, %v2994_v63 }
 0x359   : > { %v10102_v59 = vpop.f32.mrf.mxu0  ;;  %v10106_v43 = vpop.f32.mrf.mxu1 }
 0x35a   : > { %v10108_v15 = vadd.f32 %v7413_v62, %v3005_v6 }
 0x35b   : > { %v7416_v61 = vpop.f32.mrf.mxu0  ;;  %v7394_v12 = vpop.f32.mrf.mxu1 }
 0x35c   : > { %v3018_v11 = vadd.f32 %v7394_v12, %v10062_v55 }
 0x35d   : > { %v3187_v14 = vpop.f32.mrf.mxu0  ;;  %v3009_v33 = vpop.f32.mrf.mxu1 }
 0x35e   : > { %v3010_v1 = vadd.f32 %v3009_v33, %v10064_v26  ;;  %v10112_v29 = vadd.f32 %v7416_v61, %v3018_v11 }
 0x35f   : > { %v7417_v17 = vpop.f32.mrf.mxu0  ;;  %v7395_v42 = vpop.f32.mrf.mxu1 }
 0x360   : > { %v3021_v2 = vadd.f32 %v7395_v42, %v10066_v35  ;;  %v10117_v47 = vadd.f32 %v3187_v14, %v3010_v1 }
 0x361   : > { %v10114_v0 = vpop.f32.mrf.mxu0  ;;  %v10119_v30 = vpop.f32.mrf.mxu1 }
 0x362   : > { %v10121_v40 = vadd.f32 %v7417_v17, %v3021_v2 }
 0x363   : > { %v7444_v58 = vpop.f32.mrf.mxu0  ;;  %v7422_v55 = vpop.f32.mrf.mxu1 }
 0x364   : > { %v3345_v10 = vadd.f32 %v7422_v55, %v10070_v57 }
 0x365   : > { %v3408_v53 = vpop.f32.mrf.mxu0  ;;  %v3264_v26 = vpop.f32.mrf.mxu1 }
 0x366   : > { %v3343_v41 = vadd.f32 %v3264_v26, %v10074_v52  ;;  %v10125_v38 = vadd.f32 %v7444_v58, %v3345_v10 }
 0x367   : > { %v7445_v18 = vpop.f32.mrf.mxu0  ;;  %v7423_v35 = vpop.f32.mrf.mxu1 }
 0x368   : > { %v3346_v62 = vadd.f32 %v7423_v35, %v10078_v31  ;;  %v10130_v13 = vadd.f32 %v3408_v53, %v3343_v41 }
 0x369   : > { %v10127_v16 = vpop.f32.mrf.mxu0  ;;  %v10132_v44 = vpop.f32.mrf.mxu1 }
 0x36a   : > { %v10134_v6 = vadd.f32 %v7445_v18, %v3346_v62 }
 0x36b   : > { %v7448_v63 = vpop.f32.mrf.mxu0  ;;  %v7426_v57 = vpop.f32.mrf.mxu1 }
 0x36c   : > { %v3349_v14 = vadd.f32 %v7426_v57, %v10080_v60 }
 0x36d   : > { %v3424_v61 = vpop.f32.mrf.mxu0  ;;  %v3280_v52 = vpop.f32.mrf.mxu1 }
 0x36e   : > { %v3347_v11 = vadd.f32 %v3280_v52, %v10084_v22  ;;  %v10138_v17 = vadd.f32 %v7448_v63, %v3349_v14 }
 0x36f   : > { %v7449_v12 = vpop.f32.mrf.mxu0  ;;  %v7427_v31 = vpop.f32.mrf.mxu1 }
 0x370   : > { %v3350_v1 = vadd.f32 %v7427_v31, %v10088_v21  ;;  %v10143_v42 = vadd.f32 %v3424_v61, %v3347_v11 }
 0x371   : > { %v10140_v33 = vpop.f32.mrf.mxu0  ;;  %v10145_v58 = vpop.f32.mrf.mxu1 }
 0x372   : > { %v10147_v53 = vadd.f32 %v7449_v12, %v3350_v1 }
 0x373   : > { %v7452_v2 = vpop.f32.mrf.mxu0  ;;  %v7430_v60 = vpop.f32.mrf.mxu1 }
 0x374   : > { %v3353_v10 = vadd.f32 %v7430_v60, %v10090_v7 }
 0x375   : > { %v3440_v55 = vpop.f32.mrf.mxu0  ;;  %v3296_v22 = vpop.f32.mrf.mxu1 }
 0x376   : > { %v3351_v26 = vadd.f32 %v3296_v22, %v10094_v50  ;;  %v10151_v41 = vadd.f32 %v7452_v2, %v3353_v10 }
 0x377   : > { %v7453_v18 = vpop.f32.mrf.mxu0  ;;  %v7431_v21 = vpop.f32.mrf.mxu1 }
 0x378   : > { %v3354_v62 = vadd.f32 %v7431_v21, %v10098_v19  ;;  %v10156_v63 = vadd.f32 %v3440_v55, %v3351_v26 }
 0x379   : > { %v10153_v35 = vpop.f32.mrf.mxu0  ;;  %v10158_v57 = vpop.f32.mrf.mxu1 }
 0x37a   : > { %v10160_v14 = vadd.f32 %v7453_v18, %v3354_v62 }
 0x37b   : > { %v7456_v61 = vpop.f32.mrf.mxu0  ;;  %v7434_v7 = vpop.f32.mrf.mxu1 }
 0x37c   : > { %v3357_v52 = vadd.f32 %v7434_v7, %v10100_v39 }
 0x37d   : > { %v3456_v12 = vpop.f32.mrf.mxu0  ;;  %v3312_v50 = vpop.f32.mrf.mxu1 }
 0x37e   : > { %v3355_v31 = vadd.f32 %v3312_v50, %v10104_v56  ;;  %v10164_v1 = vadd.f32 %v7456_v61, %v3357_v52 }
 0x37f   : > { %v7457_v11 = vpop.f32.mrf.mxu0  ;;  %v7435_v19 = vpop.f32.mrf.mxu1 }
 0x380   : > { %v3358_v55 = vadd.f32 %v7435_v19, %v10108_v15  ;;  %v10169_v60 = vadd.f32 %v3456_v12, %v3355_v31 }
 0x381   : > { %v10166_v2 = vpop.f32.mrf.mxu0  ;;  %v10171_v18 = vpop.f32.mrf.mxu1 }
 0x382   : > { %11500 = vst [vmem:[#allocation29_spill] sm:$0xff] %v10169_v60  ;;  %v10173_v22 = vadd.f32 %v7457_v11, %v3358_v55 }
 0x383   : > { %v7460_v10 = vpop.f32.mrf.mxu0  ;;  %v7438_v39 = vpop.f32.mrf.mxu1 }
 0x384   : > { %11501 = vst [vmem:[#allocation41_spill] sm:$0xff] %v10173_v22  ;;  %v3361_v21 = vadd.f32 %v7438_v39, %v10112_v29 }
 0x385   : > { %v3472_v26 = vpop.f32.mrf.mxu0  ;;  %v3328_v56 = vpop.f32.mrf.mxu1 }
 0x386   : > { %v3359_v61 = vadd.f32 %v3328_v56, %v10117_v47  ;;  %v3505_v7 = vadd.f32 %v7460_v10, %v3361_v21  ;;  %v6571_v10 = vld [vmem:[%s11328_s5 + $0x4] sm:$0xf] }
 0x387   : > { %v7461_v62 = vpop.f32.mrf.mxu0  ;;  %v7439_v50 = vpop.f32.mrf.mxu1  ;;  %7775 = vmatprep.subr.msk.bf16.mxu1 %vm11504_vm4, %v6571_v10  ;;  %vm11536_vm4 = vmmov %vm11490_vm0 }
 0x388   : > { %v3362_v15 = vadd.f32 %v7439_v50, %v10121_v40  ;;  %v10180_v12 = vadd.f32 %v3472_v26, %v3359_v61  ;;  %v4408_v40 = vld [vmem:[%s11328_s5] sm:$0xf]  ;;  %v4460_v26 = vsel %vm11505_vm15, %v6571_v10, 0 }
 0x389   : > { %v10177_v52 = vpop.f32.mrf.mxu0  ;;  %v10184_v11 = vpop.f32.mrf.mxu1  ;;  %7776 = vmatprep.subr.msk.bf16.mxu0 %vm11506_vm14, %v4408_v40  ;;  %v4584_v21 = vsel %vm11490_vm0, %v4408_v40, 0  ;;  %7551 = vmatpush3.bf16.msra.mxu1 %v4460_v26 }
 0x38a   : > { %11502 = vst [vmem:[#allocation42_spill] sm:$0xff] %v10177_v52  ;;  %11503 = vst [vmem:[#allocation28_spill] sm:$0xff] %v10184_v11  ;;  %v10186_v19 = vadd.f32 %v7461_v62, %v3362_v15  ;;  %7569 = vmatpush3.bf16.msra.mxu0 %v4584_v21 }
 0x38b   : > { %v10182_v31 = vpop.f32.mrf.mxu0  ;;  %v7466_v29 = vpop.f32.mrf.mxu1 }
 0x38d   : > { %v10188_v55 = vpop.f32.mrf.mxu0  ;;  %v10192_v47 = vpop.f32.mrf.mxu1 }
 0x38f   : > { %v10190_v39 = vpop.f32.mrf.mxu0  ;;  %v7467_v56 = vpop.f32.mrf.mxu1 }
 0x391   : > { %v10204_v62 = vpop.f32.mrf.mxu0  ;;  %v3555_v50 = vpop.f32.mrf.mxu1 }
 0x393   : > { %v10206_v61 = vpop.f32.mrf.mxu0  ;;  %v10210_v36 = vpop.f32.mrf.mxu1 }
 0x395   : > { %v10208_v15 = vpop.f32.mrf.mxu0  ;;  %v10214_v27 = vpop.f32.mrf.mxu1 }
 0x397   : > { %v10212_v34 = vpop.f32.mrf.mxu0  ;;  %v10218_v20 = vpop.f32.mrf.mxu1 }
 0x398   : > { %11507 = vst [vmem:[#allocation31_spill] sm:$0xff] %v10212_v34  ;;  %v2997_v34 = vadd.f32 %v10106_v43, %v10060_v23 }
 0x399   : > { %v10216_v10 = vpop.f32.mrf.mxu0  ;;  %v10222_v26 = vpop.f32.mrf.mxu1 }
 0x39a   : > { %11508 = vst [vmem:[#allocation30_spill] sm:$0xff] %v10216_v10 }
 0x39b   : > { %v10220_v40 = vpop.f32.mrf.mxu0  ;;  %v10226_v9 = vpop.f32.mrf.mxu1 }
 0x39c   : > { %11509 = vst [vmem:[#allocation33_spill] sm:$0xff] %v10220_v40 }
 0x39d   : > { %v10224_v21 = vpop.f32.mrf.mxu0  ;;  %v10230_v48 = vpop.f32.mrf.mxu1 }
 0x39e   : > { %11510 = vst [vmem:[#allocation39_spill] sm:$0xff] %v10224_v21  ;;  %v2949_v21 = vadd.f32 %v10076_v28, %v10054_v25 }
 0x39f   : > { %v10228_v46 = vpop.f32.mrf.mxu0  ;;  %v10234_v24 = vpop.f32.mrf.mxu1 }
 0x3a0   : > { %11511 = vst [vmem:[#allocation32_spill] sm:$0xff] %v10228_v46  ;;  %v3203_v25 = vadd.f32 %v10072_v37, %v2949_v21 }
 0x3a1   : > { %v10232_v3 = vpop.f32.mrf.mxu0  ;;  %v10238_v52 = vpop.f32.mrf.mxu1 }
 0x3a2   : > { %11512 = vst [vmem:[#allocation35_spill] sm:$0xff] %v10232_v3  ;;  %v2965_v3 = vadd.f32 %v10086_v4, %v10056_v54  ;;  %v3344_v60 = vadd.f32 %v10132_v44, %v3203_v25 }
 0x3a3   : > { %v10236_v32 = vpop.f32.mrf.mxu0  ;;  %v10242_v40 = vpop.f32.mrf.mxu1 }
 0x3a4   : > { %11513 = vst [vmem:[#allocation36_spill] sm:$0xff] %v10236_v32  ;;  %11515 = vst [vmem:[#allocation40_spill] sm:$0xff] %v10242_v40  ;;  %v3207_v54 = vadd.f32 %v10082_v45, %v2965_v3  ;;  %v3633_v45 = vadd.f32 %v7466_v29, %v10125_v38  ;;  %v3631_v38 = vadd.f32 %v10192_v47, %v10130_v13 }
 0x3a5   : > { %v10240_v11 = vpop.f32.mrf.mxu0  ;;  %v10248_v46 = vpop.f32.mrf.mxu1 }
 0x3a6   : > { %11514 = vst [vmem:[#allocation37_spill] sm:$0xff] %v10240_v11  ;;  %11517 = vst [vmem:[#allocation45_spill] sm:$0xff] %v10248_v46  ;;  %v2981_v11 = vadd.f32 %v10096_v5, %v10058_v8  ;;  %v10265_v46 = vstv %s6570_s11  ;;  %v3348_v37 = vadd.f32 %v10145_v58, %v3207_v54  ;;  %v3215_v5 = vadd.f32 %v10102_v59, %v2997_v34  ;;  %s11623_s11 = sld [smem:[#allocation58_spill]] }
 0x3a7   : > { %v10246_v22 = vpop.f32.mrf.mxu0  ;;  %v10256_v32 = vpop.f32.mrf.mxu1  ;;  %v10271_v8 = vadd.s32 1, %v10265_v46  ;;  %v10274_v23 = vadd.s32 3, %v10265_v46  ;;  %v10279_v44 = vadd.s32 2, %v10265_v46  ;;  %v10282_v3 = vadd.s32 5, %v10265_v46 }
 0x3a8   : > { %11516 = vst [vmem:[#allocation43_spill] sm:$0xff] %v10246_v22  ;;  %11519 = vst [vmem:[#allocation44_spill] sm:$0xff] %v10256_v32  ;;  %v3211_v32 = vadd.f32 %v10092_v49, %v2981_v11  ;;  %v10289_v11 = vadd.s32 4, %v10265_v46  ;;  %v3013_v34 = vadd.f32 %v10119_v30, %v10068_v51  ;;  %v3356_v58 = vadd.f32 %v10171_v18, %v3215_v5 }
 0x3a9   : > { %v10254_v10 = vpop.f32.mrf.mxu0  ;;  %v10263_v22 = vpop.f32.mrf.mxu1  ;;  %v3492_v51 = vadd.f32 %v10140_v33, %v3348_v37  ;;  %vm4119_vm12 = vcmp.ge.s32.totalorder %v10271_v8, 0  ;;  %vm4129_vm2 = vcmp.lt.s32.totalorder %v10271_v8, 16  ;;  %v10313_v13 = vadd.s32 6, %v10265_v46 }
 0x3aa   : > { %11518 = vst [vmem:[#allocation48_spill] sm:$0xff] %v10254_v10  ;;  %v3352_v59 = vadd.f32 %v10158_v57, %v3211_v32  ;;  %v3635_v57 = vadd.f32 %v10214_v27, %v10143_v42  ;;  %v3774_v33 = vadd.f32 %v10182_v31, %v3633_v45  ;;  %v10323_v18 = vadd.f32 %v10114_v0, %v3013_v34  ;;  %v11524_v34 = vld [vmem:[#allocation30_spill] sm:$0xff]  ;;  %vm10387_vm1 = vmand %vm4119_vm12, %vm4129_vm2 }
 0x3ab   : > { %v7504_v28 = vpop.f32.mrf.mxu0  ;;  %v7482_v10 = vpop.f32.mrf.mxu1  ;;  %v3772_v27 = vadd.f32 %v10188_v55, %v3631_v38  ;;  %v3641_v0 = vadd.f32 %v10226_v9, %v10151_v41  ;;  %v3639_v31 = vadd.f32 %v10230_v48, %v10156_v63  ;;  %vm4118_vm13 = vcmp.ge.s32.totalorder %v10265_v46, 0  ;;  %v11521_v63 = vld [vmem:[#allocation29_spill] sm:$0xff] }
 0x3ac   : > { %v3649_v40 = vadd.f32 %v7482_v10, %v3505_v7  ;;  %v3488_v10 = vadd.f32 %v10127_v16, %v3344_v60  ;;  %v10310_v16 = vadd.s32 7, %v10265_v46  ;;  %v3496_v47 = vadd.f32 %v10153_v35, %v3352_v59 }
 0x3ad   : > { %v3757_v4 = vpop.f32.mrf.mxu0  ;;  %v3616_v21 = vpop.f32.mrf.mxu1  ;;  %v3776_v9 = vadd.f32 %v10208_v15, %v3635_v57  ;;  %vm4128_vm7 = vcmp.lt.s32.totalorder %v10265_v46, 16  ;;  %vm4121_vm8 = vcmp.ge.s32.totalorder %v10274_v23, 0  ;;  %vm4131_vm10 = vcmp.lt.s32.totalorder %v10274_v23, 16 }
 0x3ae   : > { %v3647_v49 = vadd.f32 %v3616_v21, %v10180_v12  ;;  %v10286_v7 = vadd.f32 %v7504_v28, %v3649_v40  ;;  %v3634_v12 = vadd.f32 %v7467_v56, %v10134_v6  ;;  %v3632_v28 = vadd.f32 %v3555_v50, %v3488_v10  ;;  %v11523_v21 = vld [vmem:[#allocation31_spill] sm:$0xff]  ;;  %vm10414_vm12 = vmand %vm4118_vm13, %vm4128_vm7 }
 0x3af   : > { %v7505_v43 = vpop.f32.mrf.mxu0  ;;  %v7483_v54 = vpop.f32.mrf.mxu1  ;;  %v3637_v6 = vadd.f32 %v10210_v36, %v10138_v17  ;;  %v3500_v56 = vadd.f32 %v10166_v2, %v3356_v58  ;;  %v3636_v36 = vadd.f32 %v10222_v26, %v3492_v51  ;;  %v3640_v48 = vadd.f32 %v10238_v52, %v3496_v47  ;;  %v11525_v58 = vld [vmem:[#allocation41_spill] sm:$0xff]  ;;  %v11526_v10 = vld [vmem:[#allocation44_spill] sm:$0xff]  ;;  %vm10440_vm7 = vmand %vm4121_vm8, %vm4131_vm10 }
 0x3b0   : > { %v3650_v29 = vadd.f32 %v7483_v54, %v10186_v19  ;;  %v10302_v40 = vadd.f32 %v3757_v4, %v3647_v49  ;;  %v3638_v19 = vadd.f32 %v10218_v20, %v10147_v53  ;;  %v3775_v42 = vadd.f32 %v10190_v39, %v3634_v12  ;;  %v10341_v53 = vld [vmem:[%s11327_s4] ss:$0 sm:$0xff]  ;;  %v11529_v51 = vld [vmem:[#allocation32_spill] sm:$0xff] }
 0x3b1   : > { %v10296_v25 = vpop.f32.mrf.mxu0  ;;  %v10305_v30 = vpop.f32.mrf.mxu1  ;;  %v3642_v20 = vadd.f32 %v10234_v24, %v10160_v14  ;;  %v3773_v55 = vadd.f32 %v10204_v62, %v3632_v28  ;;  %v3778_v37 = vadd.f32 %v10206_v61, %v3637_v6  ;;  %v11520_v24 = vld [vmem:[#allocation40_spill] sm:$0xff]  ;;  %v11522_v14 = vld [vmem:[#allocation45_spill] sm:$0xff]  ;;  %v3777_v59 = vadd.f32 %v11524_v34, %v3636_v36 }
 0x3b2   : > { %v10320_v60 = vadd.f32 %v7505_v43, %v3650_v29  ;;  %v3645_v41 = vadd.f32 %v11520_v24, %v10164_v1  ;;  %v3643_v5 = vadd.f32 %v11522_v14, %v11521_v63  ;;  %v3779_v45 = vadd.f32 %v11523_v21, %v3638_v19  ;;  %v11527_v12 = vld [vmem:[#allocation33_spill] sm:$0xff]  ;;  %v11528_v29 = vld [vmem:[#allocation39_spill] sm:$0xff] }
 0x3b3   : > { %v7532_v32 = vpop.f32.mrf.mxu0  ;;  %v7510_v4 = vpop.f32.mrf.mxu1  ;;  %v3646_v54 = vadd.f32 %v11526_v10, %v11525_v58  ;;  %v10359_v1 = vadd.f32 %v11527_v12, %v3641_v0  ;;  %v10362_v28 = vadd.f32 %v11528_v29, %v3639_v31  ;;  %v10380_v31 = vadd.f32 %v10263_v22, %v3500_v56 }
 0x3b4   : > { %v3918_v17 = vadd.f32 %v7510_v4, %v3774_v33  ;;  %v11530_v4 = vld [vmem:[#allocation35_spill] sm:$0xff]  ;;  %vm4120_vm14 = vcmp.ge.s32.totalorder %v10279_v44, 0  ;;  %vm4130_vm0 = vcmp.lt.s32.totalorder %v10279_v44, 16  ;;  %vm4122_vm10 = vcmp.ge.s32.totalorder %v10289_v11, 0 }
 0x3b5   : > { %v3981_v50 = vpop.f32.mrf.mxu0  ;;  %v3837_v2 = vpop.f32.mrf.mxu1  ;;  %v10371_v36 = vadd.f32 %v11530_v4, %v3640_v48 }
 0x3b6   : > { %v4062_v26 = vadd.f32 %v7532_v32, %v3918_v17  ;;  %v3916_v39 = vadd.f32 %v3837_v2, %v3772_v27  ;;  %v10365_v32 = vadd.f32 %v11529_v51, %v3642_v20  ;;  %v11531_v17 = vld [vmem:[#allocation36_spill] sm:$0xff] }
 0x3b7   : > { %v7533_v35 = vpop.f32.mrf.mxu0  ;;  %v7511_v62 = vpop.f32.mrf.mxu1  ;;  %v10374_v27 = vadd.f32 %v11531_v17, %v3645_v41 }
 0x3b8   : > { %v4089_v61 = vadd.f32 %v10341_v53, %v4062_v26  ;;  %v4060_v49 = vadd.f32 %v3981_v50, %v3916_v39  ;;  %v3919_v15 = vadd.f32 %v7511_v62, %v3775_v42  ;;  %v11532_v42 = vld [vmem:[#allocation37_spill] sm:$0xff]  ;;  %v10394_v26 = vld [vmem:[%s11328_s5 + $0x8] sm:$0xf] }
 0x3b9   : > { %v3984_v43 = vpop.f32.mrf.mxu0  ;;  %v3840_v38 = vpop.f32.mrf.mxu1  ;;  %v10377_v0 = vadd.f32 %v11532_v42, %v3643_v5  ;;  %7777 = vmatprep.subr.msk.bf16.mxu1 %vm11536_vm4, %v10394_v26  ;;  %vm4133_vm4 = vcmp.lt.s32.totalorder %v10282_v3, 16 }
 0x3ba   : > { %v4087_v6 = vadd.f32 %v10341_v53, %v4060_v49  ;;  %v4063_v57 = vadd.f32 %v7533_v35, %v3919_v15  ;;  %v3917_v33 = vadd.f32 %v3840_v38, %v3773_v55  ;;  %vm4150_vm11 = vcmp.ge.f32.partialorder %v4089_v61, 0.0 }
 0x3bb   : > { %v7536_v52 = vpop.f32.mrf.mxu0  ;;  %v7514_v47 = vpop.f32.mrf.mxu1  ;;  %v4170_v50 = vmul.f32 0.1, %v4089_v61  ;;  %v5634_v21 = vmax.f32 %v4089_v61, 0.0 }
 0x3bc   : > { %v4090_v20 = vadd.f32 %v10341_v53, %v4063_v57  ;;  %v4061_v35 = vadd.f32 %v3984_v43, %v3917_v33  ;;  %v3922_v2 = vadd.f32 %v7514_v47, %v3778_v37  ;;  %v4168_v39 = vmul.f32 0.1, %v4087_v6  ;;  %v11535_v37 = vld [vmem:[#allocation43_spill] sm:$0xff] }
 0x3bd   : > { %v3997_v19 = vpop.f32.mrf.mxu0  ;;  %v3853_v56 = vpop.f32.mrf.mxu1  ;;  %v4190_v48 = vsel %vm4150_vm11, %v4089_v61, %v4170_v50  ;;  %vm4148_vm9 = vcmp.ge.f32.partialorder %v4087_v6, 0.0  ;;  %v10398_v24 = vadd.f32 %v11535_v37, %v3646_v54  ;;  %vm4123_vm11 = vcmp.ge.s32.totalorder %v10282_v3, 0 }
 0x3be   : > { %v4088_v8 = vadd.f32 %v10341_v53, %v4061_v35  ;;  %v4066_v41 = vadd.f32 %v7536_v52, %v3922_v2  ;;  %v3920_v63 = vadd.f32 %v3853_v56, %v3776_v9  ;;  %vm4151_vm15 = vcmp.ge.f32.partialorder %v4090_v20, 0.0 }
 0x3bf   : > { %v7537_v22 = vpop.f32.mrf.mxu0  ;;  %v7515_v5 = vpop.f32.mrf.mxu1  ;;  %v4171_v43 = vmul.f32 0.1, %v4090_v20  ;;  %v4230_v62 = vsel %vm10387_vm1, %v4190_v48, 0.0  ;;  %v5635_v49 = vmax.f32 %v4090_v20, 0.0  ;;  %v4188_v61 = vsel %vm4148_vm9, %v4087_v6, %v4168_v39 }
 0x3c0   : > { %v4169_v15 = vmul.f32 0.1, %v4088_v8  ;;  %v10408_v34 = vadd.f32 %v10341_v53, %v4066_v41  ;;  %v4064_v58 = vadd.f32 %v3997_v19, %v3920_v63  ;;  %v3923_v10 = vadd.f32 %v7515_v5, %v3779_v45 }
 0x3c1   : > { %v4000_v14 = vpop.f32.mrf.mxu0  ;;  %v3856_v54 = vpop.f32.mrf.mxu1  ;;  %v4191_v52 = vsel %vm4151_vm15, %v4090_v20, %v4171_v43  ;;  %vm4149_vm2 = vcmp.ge.f32.partialorder %v4088_v8, 0.0  ;;  %v10419_v12 = vpack.c.bf16 %v5635_v49, %v5634_v21  ;;  %v4228_v42 = vsel %vm10414_vm12, %v4188_v61, 0.0  ;;  %vm10470_vm15 = vmand %vm4120_vm14, %vm4130_vm0 }
 0x3c2   : > { %v4091_v29 = vadd.f32 %v10341_v53, %v4064_v58  ;;  %v4067_v51 = vadd.f32 %v7537_v22, %v3923_v10  ;;  %v3921_v45 = vadd.f32 %v3856_v54, %v3777_v59  ;;  %v4231_v57 = vsel %vm10387_vm1, %v4191_v52, 0.0  ;;  %vm10499_vm0 = vmand %vm4123_vm11, %vm4133_vm4 }
 0x3c3   : > { %v7540_v9 = vpop.f32.mrf.mxu0  ;;  %v7518_v19 = vpop.f32.mrf.mxu1  ;;  %v10426_v47 = vpack.c.bf16 %v4231_v57, %v4230_v62  ;;  %v4189_v50 = vsel %vm4149_vm2, %v4088_v8, %v4169_v15  ;;  %vm4154_vm13 = vcmp.ge.f32.partialorder %v10408_v34, 0.0  ;;  %v4174_v6 = vmul.f32 0.1, %v10408_v34 }
 0x3c4   : > { %v10431_v4 = vadd.f32 %v10341_v53, %v4067_v51  ;;  %v4065_v59 = vadd.f32 %v4000_v14, %v3921_v45  ;;  %v3926_v17 = vadd.f32 %v7518_v19, %v10359_v1  ;;  %v4229_v1 = vsel %vm10414_vm12, %v4189_v50, 0.0 }
 0x3c5   : > { %v4013_v33 = vpop.f32.mrf.mxu0  ;;  %4421 = vrot.lane.b32.xlu1 %v10426_v47, %s8084_s28  ;;  %v3869_v2 = vpop.f32.mrf.mxu1  ;;  %v4194_v55 = vsel %vm4154_vm13, %v10408_v34, %v4174_v6  ;;  %vm4152_vm1 = vcmp.ge.f32.partialorder %v4091_v29, 0.0  ;;  %v4172_v39 = vmul.f32 0.1, %v4091_v29  ;;  %v10451_v48 = vpack.c.bf16 %v4229_v1, %v4228_v42 }
 0x3c6   : > { %v4092_v22 = vadd.f32 %v10341_v53, %v4065_v59  ;;  %v4070_v23 = vadd.f32 %v7540_v9, %v3926_v17  ;;  %v3924_v56 = vadd.f32 %v3869_v2, %v10362_v28  ;;  %v5636_v37 = vmax.f32 %v4091_v29, 0.0 }
 0x3c7   : > { %v7541_v35 = vpop.f32.mrf.mxu0  ;;  %v7519_v41 = vpop.f32.mrf.mxu1  ;;  %vm4155_vm8 = vcmp.ge.f32.partialorder %v10431_v4, 0.0  ;;  %v4175_v63 = vmul.f32 0.1, %v10431_v4  ;;  %v4234_v14 = vsel %vm10440_vm7, %v4194_v55, 0.0  ;;  %vm4132_vm9 = vcmp.lt.s32.totalorder %v10289_v11, 16  ;;  %4419 = vrot.lane.b32.xlu0 %v10451_v48, %s8084_s28 }
 0x3c8   : > { %v5637_v5 = vmax.f32 %v4092_v22, 0.0  ;;  %v10460_v43 = vadd.f32 %v10341_v53, %v4070_v23  ;;  %v4068_v28 = vadd.f32 %v4013_v33, %v3924_v56  ;;  %v3927_v62 = vadd.f32 %v7519_v41, %v10365_v32  ;;  %vm10541_vm13 = vmand %vm4122_vm10, %vm4132_vm9 }
 0x3c9   : > { %v4016_v8 = vpop.f32.mrf.mxu0  ;;  %v3872_v49 = vpop.f32.mrf.mxu1  ;;  %v4195_v15 = vsel %vm4155_vm8, %v10431_v4, %v4175_v63  ;;  %vm4153_vm12 = vcmp.ge.f32.partialorder %v4092_v22, 0.0  ;;  %v4173_v10 = vmul.f32 0.1, %v4092_v22  ;;  %v4192_v9 = vsel %vm4152_vm1, %v4091_v29, %v4172_v39  ;;  %v11545_v39 = vld [vmem:[#allocation48_spill] sm:$0xff] }
 0x3ca   : > { %v10475_v54 = vpack.c.bf16 %v5637_v5, %v5636_v37  ;;  %v10478_v32 = vadd.f32 %v10341_v53, %v4068_v28  ;;  %v4071_v52 = vadd.f32 %v7541_v35, %v3927_v62  ;;  %v3925_v38 = vadd.f32 %v3872_v49, %v10371_v36 }
 0x3cb   : > { %v7544_v21 = vpop.f32.mrf.mxu0  ;;  %v7522_v51 = vpop.f32.mrf.mxu1  ;;  %v4235_v44 = vsel %vm10440_vm7, %v4195_v15, 0.0  ;;  %v4193_v45 = vsel %vm4153_vm12, %v4092_v22, %v4173_v10  ;;  %vm4158_vm14 = vcmp.ge.f32.partialorder %v10460_v43, 0.0  ;;  %v4178_v57 = vmul.f32 0.1, %v10460_v43 }
 0x3cc   : > { %v10486_v29 = vadd.f32 %v10341_v53, %v4071_v52  ;;  %v4069_v33 = vadd.f32 %v4016_v8, %v3925_v38  ;;  %v3930_v19 = vadd.f32 %v7522_v51, %v10374_v27  ;;  %v4232_v50 = vsel %vm10470_vm15, %v4192_v9, 0.0  ;;  %v11548_v52 = vld [vmem:[#allocation28_spill] sm:$0xff] }
 0x3cd   : > { %v4029_v61 = vpop.f32.mrf.mxu0  ;;  %v10491_v6 = vpack.c.bf16 %v4235_v44, %v4234_v14  ;;  %v3885_v59 = vpop.f32.mrf.mxu1  ;;  %v4233_v17 = vsel %vm10470_vm15, %v4193_v45, 0.0  ;;  %v4198_v27 = vsel %vm4158_vm14, %v10460_v43, %v4178_v57  ;;  %vm4156_vm2 = vcmp.ge.f32.partialorder %v10478_v32, 0.0 }
 0x3ce   : > { %v10506_v20 = vadd.f32 %v10341_v53, %v4069_v33  ;;  %v4074_v35 = vadd.f32 %v7544_v21, %v3930_v19  ;;  %v3928_v2 = vadd.f32 %v3885_v59, %v10377_v0  ;;  %v10509_v1 = vpack.c.bf16 %v4233_v17, %v4232_v50  ;;  %v11549_v17 = vld [vmem:[#allocation42_spill] sm:$0xff] }
 0x3cf   : > { %v7545_v36 = vpop.f32.mrf.mxu0  ;;  %4425 = vrot.lane.b32.xlu1 %v10491_v6, %s8084_s28  ;;  %v7523_v55 = vpop.f32.mrf.mxu1  ;;  %v3785_v22 = vadd.f32 %v11545_v39, %v10380_v31  ;;  %vm4159_vm11 = vcmp.ge.f32.partialorder %v10486_v29, 0.0  ;;  %v4179_v23 = vmul.f32 0.1, %v10486_v29  ;;  %v4176_v56 = vmul.f32 0.1, %v10478_v32 }
 0x3d0   : > { %v10519_v37 = vadd.f32 %v10341_v53, %v4074_v35  ;;  %v4072_v0 = vadd.f32 %v4029_v61, %v3928_v2  ;;  %4423 = vrot.lane.b32.xlu0 %v10509_v1, %s8084_s28  ;;  %v3931_v8 = vadd.f32 %v7523_v55, %v10398_v24  ;;  %v4238_v41 = vsel %vm10499_vm0, %v4198_v27, 0.0 }
 0x3d1   : > { %v4032_v3 = vpop.f32.mrf.mxu0  ;;  %v3888_v63 = vpop.f32.mrf.mxu1  ;;  %v4199_v31 = vsel %vm4159_vm11, %v10486_v29, %v4179_v23  ;;  %vm4157_vm4 = vcmp.ge.f32.partialorder %v10506_v20, 0.0  ;;  %v4177_v14 = vmul.f32 0.1, %v10506_v20  ;;  %v4196_v5 = vsel %vm4156_vm2, %v10478_v32, %v4176_v56  ;;  %v10604_v23 = vld [vmem:[%s11328_s5 + $0xc] sm:$0xf] }
 0x3d2   : > { %v10533_v28 = vadd.f32 %v10341_v53, %v4072_v0  ;;  %v4075_v62 = vadd.f32 %v7545_v36, %v3931_v8  ;;  %v3929_v21 = vadd.f32 %v3888_v63, %v3785_v22  ;;  %v4239_v24 = vsel %vm10499_vm0, %v4199_v31, 0.0 }
 0x3d3   : > { %v7548_v15 = vpop.f32.mrf.mxu0  ;;  %v7526_v58 = vpop.f32.mrf.mxu1  ;;  %v10545_v10 = vpack.c.bf16 %v4239_v24, %v4238_v41  ;;  %v4197_v9 = vsel %vm4157_vm4, %v10506_v20, %v4177_v14  ;;  %vm4125_vm7 = vcmp.ge.s32.totalorder %v10310_v16, 0  ;;  %v3360_v38 = vadd.f32 %v11548_v52, %v10323_v18 }
 0x3d4   : > { %v10552_v61 = vadd.f32 %v10341_v53, %v4075_v62  ;;  %v4073_v51 = vadd.f32 %v4032_v3, %v3929_v21  ;;  %vm4135_vm1 = vcmp.lt.s32.totalorder %v10310_v16, 16  ;;  %v4236_v44 = vsel %vm10541_vm13, %v4196_v5, 0.0 }
 0x3d5   : > { %4429 = vrot.lane.b32.xlu1 %v10545_v10, %s8084_s28  ;;  %v3901_v11 = vpop.f32.mrf.mxu1  ;;  %v4237_v45 = vsel %vm10541_vm13, %v4197_v9, 0.0  ;;  %vm4162_vm8 = vcmp.ge.f32.partialorder %v10519_v37, 0.0  ;;  %v4182_v18 = vmul.f32 0.1, %v10519_v37  ;;  %vm4124_vm10 = vcmp.ge.s32.totalorder %v10313_v13, 0  ;;  %v4045_v50 = vpop.f32.mrf.mxu0  ;;  %vm10582_vm14 = vmand %vm4125_vm7, %vm4135_vm1 }
 0x3d6   : > { %v10564_v57 = vadd.f32 %v10341_v53, %v4073_v51  ;;  %v10566_v33 = vpack.c.bf16 %v4237_v45, %v4236_v44  ;;  %v4180_v19 = vmul.f32 0.1, %v10533_v28  ;;  %vm4163_vm9 = vcmp.ge.f32.partialorder %v10552_v61, 0.0 }
 0x3d7   : > { %v7527_v36 = vpop.f32.mrf.mxu1  ;;  %v4183_v59 = vmul.f32 0.1, %v10552_v61  ;;  %vm4134_vm15 = vcmp.lt.s32.totalorder %v10313_v13, 16  ;;  %vm4160_vm12 = vcmp.ge.f32.partialorder %v10533_v28, 0.0  ;;  %v3504_v42 = vadd.f32 %v11549_v17, %v3360_v38  ;;  %v7549_v56 = vpop.f32.mrf.mxu0 }
 0x3d8   : > { %4427 = vrot.lane.b32.xlu0 %v10566_v33, %s8084_s28  ;;  %v3935_v27 = vadd.f32 %v7527_v36, %v10320_v60  ;;  %v4202_v2 = vsel %vm4162_vm8, %v10519_v37, %v4182_v18  ;;  %vm4161_vm0 = vcmp.ge.f32.partialorder %v10564_v57, 0.0  ;;  %v4181_v55 = vmul.f32 0.1, %v10564_v57  ;;  %vm10596_vm2 = vmand %vm4124_vm10, %vm4134_vm15 }
 0x3d9   : > { %v4203_v3 = vsel %vm4163_vm9, %v10552_v61, %v4183_v59  ;;  %v3648_v60 = vadd.f32 %v10305_v30, %v3504_v42  ;;  %v3934_v39 = vadd.f32 %v7526_v58, %v10286_v7  ;;  %v4200_v22 = vsel %vm4160_vm12, %v10533_v28, %v4180_v19  ;;  %v3904_v41 = vpop.f32.mrf.mxu1  ;;  %v4048_v17 = vpop.f32.mrf.mxu0 }
 0x3da   : > { %v4242_v0 = vsel %vm10582_vm14, %v4202_v2, 0.0  ;;  %v4243_v7 = vsel %vm10582_vm14, %v4203_v3, 0.0  ;;  %v4201_v30 = vsel %vm4161_vm0, %v10564_v57, %v4181_v55  ;;  %vm11554_vm11 = vcmask 1043456  }
 0x3db   : > { %7778 = vmatprep.subr.msk.bf16.mxu0 %vm11554_vm11, %v10604_v23  ;;  %v4079_v13 = vadd.f32 %v7549_v56, %v3935_v27  ;;  %v10613_v8 = vpack.c.bf16 %v4243_v7, %v4242_v0  ;;  %v4240_v63 = vsel %vm10596_vm2, %v4200_v22, 0.0  ;;  %v4241_v31 = vsel %vm10596_vm2, %v4201_v30, 0.0  ;;  %vm11560_vm0 = vmmov %vm11554_vm11 }
 0x3dc   : > { %v4266_v14 = vshrl.u32 %v10426_v47, 16  ;;  %v4078_v5 = vadd.f32 %v7548_v15, %v3934_v39  ;;  %v3789_v62 = vadd.f32 %v10296_v25, %v3648_v60  ;;  %v10623_v21 = vpack.c.bf16 %v4241_v31, %v4240_v63  ;;  %vm11563_vm2 = vmmov %vm11560_vm0 }
 0x3dd   : > { %4433 = vrot.lane.b32.xlu1 %v10613_v8, %s8084_s28  ;;  %v4269_v24 = vshll.u32 %v10426_v47, 16  ;;  %v3932_v49 = vadd.f32 %v3901_v11, %v10302_v40  ;;  %v4259_v9 = vshrl.u32 %v10451_v48, 16  ;;  %v4262_v52 = vshll.u32 %v10451_v48, 16  ;;  %vm11564_vm11 = vmmov %vm11560_vm0 }
 0x3de   : > { %v4268_v58 = vrot.slane %v4266_v14, 7  ;;  %v4106_v38 = vadd.f32 %v10341_v53, %v4079_v13  ;;  %v3933_v51 = vadd.f32 %v3904_v41, %v3789_v62  ;;  %4431 = vrot.lane.b32.xlu0 %v10623_v21, %s8084_s28  ;;  %v4280_v45 = vshrl.u32 %v10491_v6, 16 }
 0x3df   : > { %v4370_v25 = vrot.slane %v4269_v24, 1  ;;  %v4261_v44 = vrot.slane %v4259_v9, 7  ;;  %v4283_v47 = vshll.u32 %v10491_v6, 16  ;;  %v4105_v40 = vadd.f32 %v10341_v53, %v4078_v5 }
 0x3e0   : > { %v4271_v15 = vor.u32 %v4269_v24, %v4268_v58  ;;  %v4117_v11 = vadd.s32 9, %v10265_v46  ;;  %v4368_v19 = vrot.slane %v4262_v52, 1  ;;  %v4076_v48 = vadd.f32 %v4045_v50, %v3932_v49 }
 0x3e1   : > { %v4371_v18 = vor.u32 %v4370_v25, %v4266_v14  ;;  %v4264_v36 = vor.u32 %v4262_v52, %v4261_v44  ;;  %v4273_v59 = vshrl.u32 %v10509_v1, 16  ;;  %v4187_v42 = vmul.f32 0.1, %v4106_v38 }
 0x3e2   : > { %4330 = vrot.lane.b32.xlu1 %v4271_v15, %s8084_s28  ;;  %v4369_v27 = vor.u32 %v4368_v19, %v4259_v9  ;;  %v4276_v35 = vshll.u32 %v10509_v1, 16  ;;  %v10640_v2 = vadd.s32 8, %v10265_v46  ;;  %vm4167_vm4 = vcmp.ge.f32.partialorder %v4106_v38, 0.0 }
 0x3e3   : > { %v4077_v6 = vadd.f32 %v4048_v17, %v3933_v51  ;;  %4328 = vrot.lane.b32.xlu0 %v4264_v36, %s8084_s28  ;;  %v4282_v3 = vrot.slane %v4280_v45, 7  ;;  %v4374_v55 = vrot.slane %v4283_v47, 1  ;;  %vm4127_vm13 = vcmp.ge.s32.totalorder %v4117_v11, 0 }
 0x3e4   : > { %v4186_v50 = vmul.f32 0.1, %v4105_v40  ;;  %v4399_v39 = vsel %vm8506_vm6, %v4371_v18, 0  ;;  %v4294_v16 = vshrl.u32 %v10545_v10, 16  ;;  %vm4137_vm7 = vcmp.lt.s32.totalorder %v4117_v11, 16 }
 0x3e5   : > { %vm4166_vm1 = vcmp.ge.f32.partialorder %v4105_v40, 0.0  ;;  %v10647_v1 = vadd.f32 %v10341_v53, %v4076_v48  ;;  %v4275_v46 = vrot.slane %v4273_v59, 7  ;;  %v4207_v22 = vsel %vm4167_vm4, %v4106_v38, %v4187_v42  ;;  %vm10661_vm9 = vmand %vm4127_vm13, %vm4137_vm7 }
 0x3e6   : > { %4695 = vrot.lane.b32.xlu1 %v4399_v39, %s8084_s28  ;;  %v4398_v56 = vsel %vm8506_vm6, %v4369_v27, 0  ;;  %v4372_v0 = vrot.slane %v4276_v35, 1  ;;  %v4297_v7 = vshll.u32 %v10545_v10, 16  ;;  %vm4126_vm8 = vcmp.ge.s32.totalorder %v10640_v2, 0  ;;  %vm11565_vm4 = vmmov %vm11560_vm0 }
 0x3e7   : > { %vm4136_vm10 = vcmp.lt.s32.totalorder %v10640_v2, 16  ;;  %v5640_v30 = vmax.f32 %v10478_v32, 0.0  ;;  %v4104_v13 = vadd.f32 %v10341_v53, %v4077_v6  ;;  %4693 = vrot.lane.b32.xlu0 %v4398_v56, %s8084_s28  ;;  %v4285_v41 = vor.u32 %v4283_v47, %v4282_v3  ;;  %vm11566_vm13 = vmmov %vm11560_vm0 }
 0x3e8   : > { %v4375_v63 = vor.u32 %v4374_v55, %v4280_v45  ;;  %v5641_v31 = vmax.f32 %v10506_v20, 0.0  ;;  %v4206_v10 = vsel %vm4166_vm1, %v4105_v40, %v4186_v50  ;;  %v4296_v5 = vrot.slane %v4294_v16, 7  ;;  %vm10704_vm14 = vmand %vm4126_vm8, %vm4136_vm10 }
 0x3e9   : > { %v4287_v62 = vshrl.u32 %v10566_v33, 16  ;;  %v5644_v32 = vmax.f32 %v10533_v28, 0.0  ;;  %v4247_v53 = vsel %vm10661_vm9, %v4207_v22, 0.0  ;;  %v4278_v24 = vor.u32 %v4276_v35, %v4275_v46  ;;  %vm11567_vm7 = vmmov %vm11560_vm0 }
 0x3ea   : > { %4334 = vrot.lane.b32.xlu1 %v4285_v41, %s8084_s28  ;;  %v4290_v20 = vshll.u32 %v10566_v33, 16  ;;  %v5645_v49 = vmax.f32 %v10564_v57, 0.0  ;;  %v5648_v58 = vmax.f32 %v10647_v1, 0.0  ;;  %v4373_v9 = vor.u32 %v4372_v0, %v4273_v59  ;;  %vm11568_vm1 = vmmov %vm11560_vm0 }
 0x3eb   : > { %v4378_v52 = vrot.slane %v4297_v7, 1  ;;  %v4246_v38 = vsel %vm10661_vm9, %v4206_v10, 0.0  ;;  %v5649_v51 = vmax.f32 %v4104_v13, 0.0  ;;  %4332 = vrot.lane.b32.xlu0 %v4278_v24, %s8084_s28  ;;  %v4401_v28 = vsel %vm8506_vm6, %v4375_v63, 0  ;;  %vm11569_vm8 = vmmov %vm11560_vm0 }
 0x3ec   : > { %v4185_v25 = vmul.f32 0.1, %v4104_v13  ;;  %v4299_v15 = vor.u32 %v4297_v7, %v4296_v5  ;;  %v4289_v44 = vrot.slane %v4287_v62, 7  ;;  %vm4165_vm15 = vcmp.ge.f32.partialorder %v4104_v13, 0.0  ;;  %vm11570_vm10 = vmmov %vm11560_vm0 }
 0x3ed   : > { %v10679_v33 = vpack.c.bf16 %v4247_v53, %v4246_v38  ;;  %v4376_v57 = vrot.slane %v4290_v20, 1  ;;  %v4308_v45 = vshrl.u32 %v10613_v8, 16  ;;  %v4311_v47 = vshll.u32 %v10613_v8, 16  ;;  %vm11571_vm9 = vmmov %vm11560_vm0 }
 0x3ee   : > { %4699 = vrot.lane.b32.xlu1 %v4401_v28, %s8084_s28  ;;  %v4184_v40 = vmul.f32 0.1, %v10647_v1  ;;  %v4400_v11 = vsel %vm8506_vm6, %v4373_v9, 0  ;;  %v4379_v18 = vor.u32 %v4378_v52, %v4294_v16  ;;  %v4301_v19 = vshrl.u32 %v10623_v21, 16 }
 0x3ef   : > { %vm4164_vm12 = vcmp.ge.f32.partialorder %v10647_v1, 0.0  ;;  %4697 = vrot.lane.b32.xlu0 %v4400_v11, %s8084_s28  ;;  %v4205_v48 = vsel %vm4165_vm15, %v4104_v13, %v4185_v25  ;;  %v5638_v36 = vmax.f32 %v10408_v34, 0.0  ;;  %v5639_v59 = vmax.f32 %v10431_v4, 0.0  ;;  %vm11572_vm15 = vmmov %vm11560_vm0 }
 0x3f0   : > { %v10692_v17 = vpack.c.bf16 %v5641_v31, %v5640_v30  ;;  %v4304_v8 = vshll.u32 %v10623_v21, 16  ;;  %v5642_v42 = vmax.f32 %v10460_v43, 0.0  ;;  %v5643_v27 = vmax.f32 %v10486_v29, 0.0 }
 0x3f1   : > { %v10697_v35 = vpack.c.bf16 %v5645_v49, %v5644_v32  ;;  %v4292_v6 = vor.u32 %v4290_v20, %v4289_v44  ;;  %v4377_v3 = vor.u32 %v4376_v57, %v4287_v62  ;;  %v4204_v4 = vsel %vm4164_vm12, %v10647_v1, %v4184_v40  ;;  %v6606_v44 = vld [vmem:[%s11328_s5 + $0x10] sm:$0xf]  ;;  %vm11573_vm12 = vmmov %vm11560_vm0 }
 0x3f2   : > { %4338 = vrot.lane.b32.xlu1 %v4299_v15, %s8084_s28  ;;  %v10709_v21 = vpack.c.bf16 %v5639_v59, %v5638_v36  ;;  %v4245_v43 = vsel %vm10704_vm14, %v4205_v48, 0.0  ;;  %v10713_v29 = vpack.c.bf16 %v5643_v27, %v5642_v42  ;;  %v5646_v55 = vmax.f32 %v10519_v37, 0.0 }
 0x3f3   : > { %v5647_v50 = vmax.f32 %v10552_v61, 0.0  ;;  %4336 = vrot.lane.b32.xlu0 %v4292_v6, %s8084_s28  ;;  %v4310_v2 = vrot.slane %v4308_v45, 7  ;;  %v10718_v39 = vpack.c.bf16 %v5649_v51, %v5648_v58  ;;  %v4403_v16 = vsel %vm8506_vm6, %v4379_v18, 0 }
 0x3f4   : > { %v4382_v1 = vrot.slane %v4311_v47, 1  ;;  %v4244_v46 = vsel %vm10704_vm14, %v4204_v4, 0.0  ;;  %v4303_v56 = vrot.slane %v4301_v19, 7  ;;  %v4402_v61 = vsel %vm8506_vm6, %v4377_v3, 0  ;;  %vm11574_vm14 = vmmov %vm11560_vm0 }
 0x3f5   : > { %v10724_v22 = vpack.c.bf16 %v5647_v50, %v5646_v55  ;;  %v4256_v37 = vpack.c.bf16 %v4245_v43, %v4244_v46  ;;  %v4380_v0 = vrot.slane %v4304_v8, 1  ;;  %v4313_v7 = vor.u32 %v4311_v47, %v4310_v2 }
 0x3f6   : > { %4703 = vrot.lane.b32.xlu1 %v4403_v16, %s8084_s28  ;;  %v4383_v30 = vor.u32 %v4382_v1, %v4308_v45  ;;  %v4306_v13 = vor.u32 %v4304_v8, %v4303_v56  ;;  %v4322_v14 = vshrl.u32 %v10679_v33, 16  ;;  %v4325_v5 = vshll.u32 %v10679_v33, 16  ;;  %v6615_v8 = vld [vmem:[%s11328_s5 + $0x14] sm:$0xf] }
 0x3f7   : > { %4701 = vrot.lane.b32.xlu0 %v4402_v61, %s8084_s28  ;;  %v4315_v41 = vshrl.u32 %v4256_v37, 16  ;;  %v4381_v63 = vor.u32 %v4380_v0, %v4301_v19  ;;  %v4318_v31 = vshll.u32 %v4256_v37, 16  ;;  %v4734_v25 = vsel %vm11560_vm0, %v10394_v26, 0 }
 0x3f8   : > { %v4405_v10 = vsel %vm8506_vm6, %v4383_v30, 0  ;;  %v4324_v24 = vrot.slane %v4322_v14, 7  ;;  %v4386_v20 = vrot.slane %v4325_v5, 1  ;;  %v4855_v48 = vsel %vm11563_vm2, %v10604_v23, 0  ;;  %v6624_v23 = vld [vmem:[%s11328_s5 + $0x18] sm:$0xf] }
 0x3f9   : > { %v4317_v62 = vrot.slane %v4315_v41, 7  ;;  %v4404_v32 = vsel %vm8506_vm6, %v4381_v63, 0  ;;  %v4384_v53 = vrot.slane %v4318_v31, 1  ;;  %v4979_v27 = vsel %vm11564_vm11, %v6606_v44, 0  ;;  %v6633_v63 = vld [vmem:[%s11328_s5 + $0x1c] sm:$0xf] }
 0x3fa   : > { %4342 = vrot.lane.b32.xlu1 %v4313_v7, %s8084_s28  ;;  %v4327_v9 = vor.u32 %v4325_v5, %v4324_v24  ;;  %v4387_v52 = vor.u32 %v4386_v20, %v4322_v14  ;;  %v6642_v14 = vld [vmem:[%s11328_s5 + $0x20] sm:$0xf] }
 0x3fb   : > { %4340 = vrot.lane.b32.xlu0 %v4306_v13, %s8084_s28  ;;  %v4320_v49 = vor.u32 %v4318_v31, %v4317_v62  ;;  %v4385_v58 = vor.u32 %v4384_v53, %v4315_v41  ;;  %v5103_v41 = vsel %vm11567_vm7, %v6615_v8, 0  ;;  %v5224_v31 = vsel %vm11568_vm1, %v6624_v23, 0  ;;  %v5684_v53 = vld [vmem:[%s11331_s8] sm:$0xf] }
 0x3fc   : > { %v4407_v51 = vsel %vm8506_vm6, %v4387_v52, 0  ;;  %v5472_v24 = vsel %vm11572_vm15, %v6642_v14, 0  ;;  %v7929_v20 = vld [vmem:[%s11330_s7] sm:$0xff]   ;;  %v5710_v52 = vsel %vm11574_vm14, %v5684_v53, 0 }
 0x3fd   : > { %v4406_v38 = vsel %vm8506_vm6, %v4385_v58, 0  ;;  %vm11561_vm6 = vmmov %vm11560_vm0 }
 0x3fe   : > { %4707 = vrot.lane.b32.xlu1 %v4405_v10, %s8084_s28 }
 0x3ff   : > { %4705 = vrot.lane.b32.xlu0 %v4404_v32, %s8084_s28  ;;  %v5348_v32 = vsel %vm11571_vm9, %v6633_v63, 0 }
 0x402   : > { %4973 = vrot.lane.b32.xlu1 %v4256_v37, %s8084_s28 }
 0x403   : > { %4344 = vrot.lane.b32.xlu0 %v4320_v49, %s8084_s28 }
 0x406   : > { %4346 = vrot.lane.b32.xlu1 %v4327_v9, %s8084_s28 }
 0x407   : > { %5097 = vrot.lane.b32.xlu0 %v4406_v38, %s8084_s28 }
 0x40a   : > { %5466 = vrot.lane.b32.xlu1 %v4407_v51, %s8084_s28 }
 0x40b   : > { %5342 = vrot.lane.b32.xlu0 %v10679_v33, %s8084_s28  ;;  %s6697_s28 = sshll.u32 %s11624_s16, 5 }
 0x40c   : > { %s6195_s24 = sadd.s32 %s6719_s25, %s6697_s28 }
 0x40d   : > { %s6698_s23 = sshll.u32 %s6195_s24, 6 }
 0x437   : > { %v10753_v15 = vpop.permute.xlu1 %4421 }
 0x439   : > { %v4420_v28 = vpop.permute.xlu0 %4419 }
 0x43a   : > { %7552 = vmatprep.mubr.msk.bf16.mxu1 %vm2730_vm5, %v4420_v28  ;;  %v11575_v28 = vld [vmem:[#allocation22_spill] sm:$0xff] }
 0x43b   : > { %7553 = vmatmul.mubr.msk.bf16.vlgmr.msra.gmra.mxu1 %vm2730_vm5, %v10753_v15 }
 0x43c   : > { %7587 = vmatpush3.bf16.msra.mxu1 %v4734_v25  ;;  %v11576_v25 = vld [vmem:[#allocation21_spill] sm:$0xff] }
 0x43d   : > { %7779 = vmatprep.subr.msk.bf16.mxu1 %vm11561_vm6, %v6606_v44  ;;  %v11579_v44 = vld [vmem:[#allocation26_spill] sm:$0xff]  ;;  %vm11582_vm6 = vmmov %vm11560_vm0 }
 0x441   : > { %v10764_v33 = vpop.permute.xlu1 %4425 }
 0x442   : > { %v10762_v60 = vpop.permute.xlu0 %4423 }
 0x443   : > { %7556 = vmatprep.mubr.msk.bf16.mxu1 %vm2730_vm5, %v10762_v60 }
 0x444   : > { %7557 = vmatmul.mubr.msk.bf16.gmra.mxu1 %vm2730_vm5, %v10764_v33 }
 0x447   : > { %v10772_v57 = vpop.permute.xlu1 %4429 }
 0x44a   : > { %v10770_v26 = vpop.permute.xlu0 %4427 }
 0x44b   : > { %7560 = vmatprep.mubr.msk.bf16.mxu1 %vm2730_vm5, %v10770_v26 }
 0x44c   : > { %7561 = vmatmul.mubr.msk.bf16.gmra.mxu1 %vm2730_vm5, %v10772_v57 }
 0x44f   : > { %v10778_v45 = vpop.permute.xlu1 %4433 }
 0x450   : > { %v10780_v47 = vpop.permute.xlu0 %4431 }
 0x451   : > { %7564 = vmatprep.mubr.msk.bf16.mxu1 %vm2730_vm5, %v10780_v47 }
 0x454   : > { %7565 = vmatmul.mubr.msk.bf16.gmra.mxu1 %vm2730_vm5, %v10778_v45  ;;  %v4331_v40 = vpop.permute.xlu1 %4330 }
 0x455   : > { %v4329_v11 = vpop.permute.xlu0 %4328  ;;  %v4359_v36 = vsel %vm8307_vm3, 0, %v4331_v40 }
 0x456   : > { %v4358_v19 = vsel %vm8307_vm3, 0, %v4329_v11 }
 0x457   : > { %7570 = vmatprep.mubr.msk.bf16.mxu0 %vm2730_vm5, %v4358_v19 }
 0x458   : > { %v10792_v59 = vpop.permute.xlu1 %4695  ;;  %7571 = vmatmul.mubr.msk.bf16.vlgmr.msra.gmra.mxu0 %vm2730_vm5, %v4359_v36 }
 0x459   : > { %v4694_v42 = vpop.permute.xlu0 %4693  ;;  %7605 = vmatpush3.bf16.msra.mxu0 %v4855_v48 }
 0x45a   : > { %7588 = vmatprep.mubr.msk.bf16.mxu1 %vm2730_vm5, %v4694_v42  ;;  %7780 = vmatprep.subr.msk.bf16.mxu0 %vm11565_vm4, %v6615_v8 }
 0x45c   : > { %v4335_v6 = vpop.permute.xlu1 %4334  ;;  %7589 = vmatmul.mubr.msk.bf16.vlgmr.msra.gmra.mxu1 %vm2730_vm5, %v10792_v59 }
 0x45d   : > { %7623 = vmatpush3.bf16.msra.mxu1 %v4979_v27  ;;  %v4333_v3 = vpop.permute.xlu0 %4332  ;;  %v10812_v4 = vsel %vm8307_vm3, 0, %v4335_v6 }
 0x45e   : > { %7781 = vmatprep.subr.msk.bf16.mxu1 %vm11566_vm13, %v6624_v23  ;;  %v4360_v34 = vsel %vm8307_vm3, 0, %v4333_v3 }
 0x45f   : > { %7574 = vmatprep.mubr.msk.bf16.mxu0 %vm2730_vm5, %v4360_v34 }
 0x460   : > { %v10814_v43 = vpop.permute.xlu1 %4699  ;;  %7575 = vmatmul.mubr.msk.bf16.gmra.mxu0 %vm2730_vm5, %v10812_v4 }
 0x461   : > { %v10819_v55 = vpop.permute.xlu0 %4697 }
 0x462   : > { %7592 = vmatprep.mubr.msk.bf16.mxu1 %vm2730_vm5, %v10819_v55 }
 0x464   : > { %v4339_v50 = vpop.permute.xlu1 %4338  ;;  %7593 = vmatmul.mubr.msk.bf16.gmra.mxu1 %vm2730_vm5, %v10814_v43 }
 0x465   : > { %v4337_v2 = vpop.permute.xlu0 %4336  ;;  %v4363_v1 = vsel %vm8307_vm3, 0, %v4339_v50 }
 0x466   : > { %v4362_v16 = vsel %vm8307_vm3, 0, %v4337_v2 }
 0x467   : > { %7578 = vmatprep.mubr.msk.bf16.mxu0 %vm2730_vm5, %v4362_v16 }
 0x468   : > { %v10829_v46 = vpop.permute.xlu1 %4703  ;;  %7579 = vmatmul.mubr.msk.bf16.gmra.mxu0 %vm2730_vm5, %v4363_v1 }
 0x469   : > { %v10833_v56 = vpop.permute.xlu0 %4701 }
 0x46a   : > { %7596 = vmatprep.mubr.msk.bf16.mxu1 %vm2730_vm5, %v10833_v56 }
 0x46c   : > { %7597 = vmatmul.mubr.msk.bf16.gmra.mxu1 %vm2730_vm5, %v10829_v46  ;;  %v4343_v37 = vpop.permute.xlu1 %4342 }
 0x46d   : > { %v4341_v61 = vpop.permute.xlu0 %4340  ;;  %v4365_v7 = vsel %vm8307_vm3, 0, %v4343_v37 }
 0x46e   : > { %v4364_v0 = vsel %vm8307_vm3, 0, %v4341_v61 }
 0x46f   : > { %7582 = vmatprep.mubr.msk.bf16.mxu0 %vm2730_vm5, %v4364_v0 }
 0x470   : > { %7583 = vmatmul.mubr.msk.bf16.gmra.mxu0 %vm2730_vm5, %v4365_v7  ;;  %v10848_v13 = vpop.permute.xlu1 %4707 }
 0x471   : > { %7606 = vmatprep.mubr.msk.bf16.mxu0 %vm2730_vm5, %v4359_v36  ;;  %v10846_v30 = vpop.permute.xlu0 %4705 }
 0x472   : > { %7600 = vmatprep.mubr.msk.bf16.mxu1 %vm2730_vm5, %v10846_v30 }
 0x474   : > { %7601 = vmatmul.mubr.msk.bf16.gmra.mxu1 %vm2730_vm5, %v10848_v13  ;;  %v4974_v62 = vpop.permute.xlu1 %4973 }
 0x475   : > { %7624 = vmatprep.mubr.msk.bf16.mxu1 %vm2730_vm5, %v10753_v15  ;;  %v4345_v10 = vpop.permute.xlu0 %4344  ;;  %v11577_v15 = vld [vmem:[#allocation34_spill] sm:$0xff] }
 0x476   : > { %v4366_v5 = vsel %vm8307_vm3, 0, %v4345_v10 }
 0x478   : > { %7607 = vmatmul.mubr.msk.bf16.vlgmr.msra.gmra.mxu0 %vm2730_vm5, %v4360_v34  ;;  %v4347_v49 = vpop.permute.xlu1 %4346 }
 0x479   : > { %7610 = vmatprep.mubr.msk.bf16.mxu0 %vm2730_vm5, %v10812_v4  ;;  %7641 = vmatpush3.bf16.msra.mxu0 %v5103_v41  ;;  %v5098_v58 = vpop.permute.xlu0 %5097  ;;  %v4367_v9 = vsel %vm8307_vm3, 0, %v4347_v49  ;;  %vm5815_vm3 = vcmask 130048  }
 0x47a   : > { %7782 = vmatprep.subr.msk.bf16.mxu0 %vm11569_vm8, %v6633_v63 }
 0x47c   : > { %7625 = vmatmul.mubr.msk.bf16.vlgmr.msra.gmra.mxu1 %vm2730_vm5, %v10762_v60  ;;  %v5467_v51 = vpop.permute.xlu1 %5466 }
 0x47d   : > { %7628 = vmatprep.mubr.msk.bf16.mxu1 %vm2730_vm5, %v10764_v33  ;;  %7659 = vmatpush3.bf16.msra.mxu1 %v5224_v31  ;;  %v5343_v38 = vpop.permute.xlu0 %5342 }
 0x47e   : > { %7783 = vmatprep.subr.msk.bf16.mxu1 %vm11570_vm10, %v6642_v14 }
 0x480   : > { %7611 = vmatmul.mubr.msk.bf16.gmra.mxu0 %vm2730_vm5, %v4362_v16 }
 0x481   : > { %7614 = vmatprep.mubr.msk.bf16.mxu0 %vm2730_vm5, %v4363_v1 }
 0x484   : > { %7629 = vmatmul.mubr.msk.bf16.gmra.mxu1 %vm2730_vm5, %v10770_v26 }
 0x485   : > { %7632 = vmatprep.mubr.msk.bf16.mxu1 %vm2730_vm5, %v10772_v57 }
 0x488   : > { %7615 = vmatmul.mubr.msk.bf16.gmra.mxu0 %vm2730_vm5, %v4364_v0 }
 0x489   : > { %7618 = vmatprep.mubr.msk.bf16.mxu0 %vm2730_vm5, %v4365_v7 }
 0x48c   : > { %7633 = vmatmul.mubr.msk.bf16.gmra.mxu1 %vm2730_vm5, %v10780_v47 }
 0x48d   : > { %7636 = vmatprep.mubr.msk.bf16.mxu1 %vm2730_vm5, %v10778_v45 }
 0x490   : > { %7619 = vmatmul.mubr.msk.bf16.gmra.mxu0 %vm2730_vm5, %v4366_v5 }
 0x491   : > { %7642 = vmatprep.mubr.msk.bf16.mxu0 %vm2730_vm5, %v10792_v59 }
 0x494   : > { %7637 = vmatmul.mubr.msk.bf16.gmra.mxu1 %vm2730_vm5, %v4974_v62 }
 0x495   : > { %7660 = vmatprep.mubr.msk.bf16.mxu1 %vm2730_vm5, %v4360_v34 }
 0x498   : > { %7643 = vmatmul.mubr.msk.bf16.vlgmr.msra.gmra.mxu0 %vm2730_vm5, %v10819_v55 }
 0x499   : > { %7646 = vmatprep.mubr.msk.bf16.mxu0 %vm2730_vm5, %v10814_v43  ;;  %7677 = vmatpush3.bf16.msra.mxu0 %v5348_v32 }
 0x49a   : > { %7784 = vmatprep.subr.msk.bf16.mxu0 %vm11573_vm12, %v5684_v53 }
 0x49c   : > { %7661 = vmatmul.mubr.msk.bf16.vlgmr.msra.gmra.mxu1 %vm2730_vm5, %v10812_v4 }
 0x49d   : > { %7664 = vmatprep.mubr.msk.bf16.mxu1 %vm2730_vm5, %v4362_v16  ;;  %7695 = vmatpush3.bf16.msra.mxu1 %v5472_v24 }
 0x49e   : > { %7730 = vmatprep.subr.bf16.mxu1 %v7929_v20 }
 0x4a0   : > { %7647 = vmatmul.mubr.msk.bf16.gmra.mxu0 %vm2730_vm5, %v10833_v56 }
 0x4a1   : > { %7650 = vmatprep.mubr.msk.bf16.mxu0 %vm2730_vm5, %v10829_v46 }
 0x4a4   : > { %7665 = vmatmul.mubr.msk.bf16.gmra.mxu1 %vm2730_vm5, %v4363_v1 }
 0x4a5   : > { %7668 = vmatprep.mubr.msk.bf16.mxu1 %vm2730_vm5, %v4364_v0 }
 0x4a8   : > { %7651 = vmatmul.mubr.msk.bf16.gmra.mxu0 %vm2730_vm5, %v10846_v30 }
 0x4a9   : > { %7654 = vmatprep.mubr.msk.bf16.mxu0 %vm2730_vm5, %v10848_v13 }
 0x4ac   : > { %7669 = vmatmul.mubr.msk.bf16.gmra.mxu1 %vm2730_vm5, %v4365_v7 }
 0x4ad   : > { %7672 = vmatprep.mubr.msk.bf16.mxu1 %vm2730_vm5, %v4366_v5 }
 0x4b0   : > { %7655 = vmatmul.mubr.msk.bf16.gmra.mxu0 %vm2730_vm5, %v5098_v58 }
 0x4b1   : > { %7678 = vmatprep.mubr.msk.bf16.mxu0 %vm2730_vm5, %v10762_v60 }
 0x4b4   : > { %7673 = vmatmul.mubr.msk.bf16.gmra.mxu1 %vm2730_vm5, %v4367_v9 }
 0x4b5   : > { %7696 = vmatprep.mubr.msk.bf16.mxu1 %vm2730_vm5, %v10819_v55 }
 0x4b8   : > { %7679 = vmatmul.mubr.msk.bf16.vlgmr.msra.gmra.mxu0 %vm2730_vm5, %v10764_v33 }
 0x4b9   : > { %7682 = vmatprep.mubr.msk.bf16.mxu0 %vm2730_vm5, %v10770_v26  ;;  %7713 = vmatpush3.bf16.msra.mxu0 %v5710_v52 }
 0x4bc   : > { %7697 = vmatmul.mubr.msk.bf16.vlgmr.msra.gmra.mxu1 %vm2730_vm5, %v10814_v43 }
 0x4bd   : > { %7700 = vmatprep.mubr.msk.bf16.mxu1 %vm2730_vm5, %v10833_v56  ;;  %7731 = vmatpush3.bf16.msra.mxu1 %v7929_v20 }
 0x4c0   : > { %7683 = vmatmul.mubr.msk.bf16.gmra.mxu0 %vm2730_vm5, %v10772_v57 }
 0x4c1   : > { %7686 = vmatprep.mubr.msk.bf16.mxu0 %vm2730_vm5, %v10780_v47 }
 0x4c4   : > { %7701 = vmatmul.mubr.msk.bf16.gmra.mxu1 %vm2730_vm5, %v10829_v46 }
 0x4c5   : > { %7704 = vmatprep.mubr.msk.bf16.mxu1 %vm2730_vm5, %v10846_v30 }
 0x4c8   : > { %7687 = vmatmul.mubr.msk.bf16.gmra.mxu0 %vm2730_vm5, %v10778_v45 }
 0x4c9   : > { %7690 = vmatprep.mubr.msk.bf16.mxu0 %vm2730_vm5, %v4974_v62 }
 0x4cc   : > { %7705 = vmatmul.mubr.msk.bf16.gmra.mxu1 %vm2730_vm5, %v10848_v13 }
 0x4cd   : > { %7708 = vmatprep.mubr.msk.bf16.mxu1 %vm2730_vm5, %v5098_v58 }
 0x4d0   : > { %7691 = vmatmul.mubr.msk.bf16.gmra.mxu0 %vm2730_vm5, %v5343_v38 }
 0x4d1   : > { %7714 = vmatprep.mubr.msk.bf16.mxu0 %vm2730_vm5, %v10419_v12  ;;  %v11578_v12 = vld [vmem:[#allocation24_spill] sm:$0xff] }
 0x4d4   : > { %7709 = vmatmul.mubr.msk.bf16.gmra.mxu1 %vm2730_vm5, %v5467_v51 }
 0x4d5   : > { %7732 = vmatprep.mubr.msk.bf16.mxu1 %vm5815_vm3, %v11575_v28 }
 0x4d8   : > { %7715 = vmatmul.mubr.msk.bf16.vlgmr.msra.gmra.mxu0 %vm2730_vm5, %v10475_v54  ;;  %v11580_v54 = vld [vmem:[#allocation23_spill] sm:$0xff] }
 0x4d9   : > { %7718 = vmatprep.mubr.msk.bf16.mxu0 %vm2730_vm5, %v10709_v21  ;;  %v11581_v21 = vld [vmem:[#allocation27_spill] sm:$0xff] }
 0x4dc   : > { %7733 = vmatmul.mubr.msk.bf16.vlgmr.msra.gmra.mxu1 %vm5815_vm3, %v11576_v25 }
 0x4dd   : > { %7736 = vmatprep.mubr.msk.bf16.mxu1 %vm5815_vm3, %v11577_v15 }
 0x4e0   : > { %7719 = vmatmul.mubr.msk.bf16.gmra.mxu0 %vm2730_vm5, %v10692_v17  ;;  %v5937_v17 = vld [vmem:[%s11332_s9] sm:$0xf] }
 0x4e1   : > { %7722 = vmatprep.mubr.msk.bf16.mxu0 %vm2730_vm5, %v10713_v29  ;;  %7785 = vmatprep.subr.msk.bf16.mxu0 %vm11560_vm0, %v5937_v17  ;;  %v5963_v29 = vsel %vm11582_vm6, %v5937_v17, 0 }
 0x4e2   : > { %7749 = vmatpush3.bf16.msra.mxu0 %v5963_v29 }
 0x4e4   : > { %7737 = vmatmul.mubr.msk.bf16.gmra.mxu1 %vm5815_vm3, %v11578_v12 }
 0x4e5   : > { %7740 = vmatprep.mubr.msk.bf16.mxu1 %vm5815_vm3, %v11579_v44 }
 0x4e8   : > { %7723 = vmatmul.mubr.msk.bf16.gmra.mxu0 %vm2730_vm5, %v10697_v35  ;;  %v11583_v35 = vld [vmem:[#allocation25_spill] sm:$0xff] }
 0x4e9   : > { %7726 = vmatprep.mubr.msk.bf16.mxu0 %vm2730_vm5, %v10724_v22 }
 0x4ec   : > { %7741 = vmatmul.mubr.msk.bf16.gmra.mxu1 %vm5815_vm3, %v11580_v54 }
 0x4ed   : > { %7744 = vmatprep.mubr.msk.bf16.mxu1 %vm5815_vm3, %v11581_v21 }
 0x4f0   : > { %7727 = vmatmul.mubr.msk.bf16.gmra.mxu0 %vm2730_vm5, %v10718_v39 }
 0x4f4   : > { %7745 = vmatmul.mubr.msk.bf16.gmra.mxu1 %vm5815_vm3, %v11583_v35 }
 0x4fb   : > { %v7554_v22 = vpop.f32.mrf.mxu1 }
 0x4fd   : > { %v4496_v60 = vpop.f32.mrf.mxu1 }
 0x4ff   : > { %v7555_v33 = vpop.f32.mrf.mxu1 }
 0x501   : > { %v4499_v26 = vpop.f32.mrf.mxu1 }
 0x504   : > { %v7558_v57 = vpop.f32.mrf.mxu1 }
 0x506   : > { %v4512_v45 = vpop.f32.mrf.mxu1 }
 0x508   : > { %v7559_v47 = vpop.f32.mrf.mxu1 }
 0x50a   : > { %v4515_v40 = vpop.f32.mrf.mxu1 }
 0x50c   : > { %v7562_v11 = vpop.f32.mrf.mxu1 }
 0x50e   : > { %v4528_v18 = vpop.f32.mrf.mxu1 }
 0x510   : > { %v7563_v19 = vpop.f32.mrf.mxu1 }
 0x512   : > { %v4531_v48 = vpop.f32.mrf.mxu1 }
 0x514   : > { %v7566_v36 = vpop.f32.mrf.mxu1 }
 0x516   : > { %v4544_v59 = vpop.f32.mrf.mxu1 }
 0x518   : > { %v7567_v8 = vpop.f32.mrf.mxu1  ;;  %v7572_v42 = vpop.f32.mrf.mxu0 }
 0x519   : > { %v4629_v27 = vadd.f32 %v7572_v42, %v7554_v22 }
 0x51a   : > { %v4547_v39 = vpop.f32.mrf.mxu1  ;;  %v4620_v23 = vpop.f32.mrf.mxu0 }
 0x51b   : > { %v4621_v6 = vadd.f32 %v4620_v23, %v4496_v60 }
 0x51c   : > { %v7590_v3 = vpop.f32.mrf.mxu1  ;;  %v7573_v4 = vpop.f32.mrf.mxu0 }
 0x51d   : > { %v10990_v34 = vadd.f32 %v7590_v3, %v4629_v27  ;;  %v4632_v43 = vadd.f32 %v7573_v4, %v7555_v33 }
 0x51e   : > { %v4770_v55 = vpop.f32.mrf.mxu1  ;;  %v4623_v2 = vpop.f32.mrf.mxu0 }
 0x51f   : > { %v10992_v50 = vadd.f32 %v4770_v55, %v4621_v6  ;;  %v4624_v16 = vadd.f32 %v4623_v2, %v4499_v26 }
 0x520   : > { %v7591_v1 = vpop.f32.mrf.mxu1  ;;  %v7576_v56 = vpop.f32.mrf.mxu0 }
 0x521   : > { %v10994_v46 = vadd.f32 %v7591_v1, %v4632_v43  ;;  %v4645_v37 = vadd.f32 %v7576_v56, %v7558_v57 }
 0x522   : > { %v4773_v61 = vpop.f32.mrf.mxu1  ;;  %v4636_v7 = vpop.f32.mrf.mxu0 }
 0x523   : > { %v10996_v0 = vadd.f32 %v4773_v61, %v4624_v16  ;;  %v4637_v30 = vadd.f32 %v4636_v7, %v4512_v45 }
 0x524   : > { %v7594_v13 = vpop.f32.mrf.mxu1  ;;  %v7577_v63 = vpop.f32.mrf.mxu0 }
 0x525   : > { %v10998_v41 = vadd.f32 %v7594_v13, %v4645_v37  ;;  %v4648_v31 = vadd.f32 %v7577_v63, %v7559_v47 }
 0x526   : > { %v4786_v14 = vpop.f32.mrf.mxu1  ;;  %v4639_v5 = vpop.f32.mrf.mxu0 }
 0x527   : > { %v11000_v10 = vadd.f32 %v4786_v14, %v4637_v30  ;;  %v4640_v62 = vadd.f32 %v4639_v5, %v4515_v40 }
 0x528   : > { %v7595_v32 = vpop.f32.mrf.mxu1  ;;  %v7580_v24 = vpop.f32.mrf.mxu0 }
 0x529   : > { %v11002_v53 = vadd.f32 %v7595_v32, %v4648_v31  ;;  %v4661_v20 = vadd.f32 %v7580_v24, %v7562_v11 }
 0x52a   : > { %v4789_v49 = vpop.f32.mrf.mxu1  ;;  %v4652_v9 = vpop.f32.mrf.mxu0 }
 0x52b   : > { %v11004_v58 = vadd.f32 %v4789_v49, %v4640_v62  ;;  %v4653_v52 = vadd.f32 %v4652_v9, %v4528_v18 }
 0x52c   : > { %v7598_v38 = vpop.f32.mrf.mxu1  ;;  %v7581_v28 = vpop.f32.mrf.mxu0 }
 0x52d   : > { %v11006_v51 = vadd.f32 %v7598_v38, %v4661_v20  ;;  %v4664_v25 = vadd.f32 %v7581_v28, %v7563_v19 }
 0x52e   : > { %v4802_v15 = vpop.f32.mrf.mxu1  ;;  %v4655_v44 = vpop.f32.mrf.mxu0 }
 0x52f   : > { %v11008_v12 = vadd.f32 %v4802_v15, %v4653_v52  ;;  %v4656_v54 = vadd.f32 %v4655_v44, %v4531_v48 }
 0x530   : > { %v7599_v21 = vpop.f32.mrf.mxu1  ;;  %v7584_v29 = vpop.f32.mrf.mxu0 }
 0x531   : > { %v11010_v17 = vadd.f32 %v7599_v21, %v4664_v25  ;;  %v4677_v35 = vadd.f32 %v7584_v29, %v7566_v36 }
 0x532   : > { %v4805_v22 = vpop.f32.mrf.mxu1  ;;  %v4668_v33 = vpop.f32.mrf.mxu0 }
 0x533   : > { %v11012_v60 = vadd.f32 %v4805_v22, %v4656_v54  ;;  %v4669_v26 = vadd.f32 %v4668_v33, %v4544_v59 }
 0x534   : > { %v7602_v57 = vpop.f32.mrf.mxu1  ;;  %v7585_v47 = vpop.f32.mrf.mxu0 }
 0x535   : > { %v11014_v45 = vadd.f32 %v7602_v57, %v4677_v35  ;;  %v4680_v40 = vadd.f32 %v7585_v47, %v7567_v8 }
 0x536   : > { %v4818_v11 = vpop.f32.mrf.mxu1  ;;  %v4671_v19 = vpop.f32.mrf.mxu0 }
 0x537   : > { %v11016_v18 = vadd.f32 %v4818_v11, %v4669_v26  ;;  %v4672_v48 = vadd.f32 %v4671_v19, %v4547_v39 }
 0x538   : > { %v7603_v42 = vpop.f32.mrf.mxu1  ;;  %v7608_v23 = vpop.f32.mrf.mxu0 }
 0x539   : > { %11584 = vst [vmem:[#allocation46_spill] sm:$0xff] %v11016_v18  ;;  %v11018_v27 = vadd.f32 %v7603_v42, %v4680_v40 }
 0x53a   : > { %v4821_v36 = vpop.f32.mrf.mxu1  ;;  %v4891_v3 = vpop.f32.mrf.mxu0 }
 0x53b   : > { %11585 = vst [vmem:[#allocation51_spill] sm:$0xff] %v11018_v27  ;;  %v11020_v6 = vadd.f32 %v4821_v36, %v4672_v48 }
 0x53c   : > { %v7626_v4 = vpop.f32.mrf.mxu1  ;;  %v7609_v59 = vpop.f32.mrf.mxu0 }
 0x53d   : > { %11586 = vst [vmem:[#allocation47_spill] sm:$0xff] %v11020_v6 }
 0x53e   : > { %v5015_v43 = vpop.f32.mrf.mxu1  ;;  %v4894_v55 = vpop.f32.mrf.mxu0 }
 0x540   : > { %v7627_v2 = vpop.f32.mrf.mxu1  ;;  %v7612_v16 = vpop.f32.mrf.mxu0 }
 0x542   : > { %v11022_v8 = vpop.f32.mrf.mxu1  ;;  %v4907_v1 = vpop.f32.mrf.mxu0 }
 0x544   : > { %v11024_v56 = vpop.f32.mrf.mxu1  ;;  %v11026_v39 = vpop.f32.mrf.mxu0 }
 0x546   : > { %v11028_v37 = vpop.f32.mrf.mxu1  ;;  %v11030_v61 = vpop.f32.mrf.mxu0 }
 0x548   : > { %v11032_v7 = vpop.f32.mrf.mxu1  ;;  %v11034_v30 = vpop.f32.mrf.mxu0 }
 0x54a   : > { %v11036_v13 = vpop.f32.mrf.mxu1  ;;  %v11038_v63 = vpop.f32.mrf.mxu0 }
 0x54c   : > { %v11040_v31 = vpop.f32.mrf.mxu1  ;;  %v11042_v14 = vpop.f32.mrf.mxu0 }
 0x54e   : > { %v11044_v5 = vpop.f32.mrf.mxu1  ;;  %v11046_v62 = vpop.f32.mrf.mxu0 }
 0x550   : > { %v11048_v32 = vpop.f32.mrf.mxu1  ;;  %v11050_v24 = vpop.f32.mrf.mxu0 }
 0x552   : > { %v11052_v20 = vpop.f32.mrf.mxu1  ;;  %v11054_v49 = vpop.f32.mrf.mxu0 }
 0x553   : > { %11587 = vst [vmem:[#allocation49_spill] sm:$0xff] %v11052_v20  ;;  %11588 = vst [vmem:[#allocation50_spill] sm:$0xff] %v11054_v49 }
 0x554   : > { %v11056_v9 = vpop.f32.mrf.mxu1  ;;  %v11058_v52 = vpop.f32.mrf.mxu0 }
 0x555   : > { %11589 = vst [vmem:[#allocation52_spill] sm:$0xff] %v11056_v9  ;;  %11590 = vst [vmem:[#allocation53_spill] sm:$0xff] %v11058_v52  ;;  %v4954_v9 = vadd.f32 %v4891_v3, %v10992_v50 }
 0x556   : > { %v11060_v38 = vpop.f32.mrf.mxu1  ;;  %v11062_v28 = vpop.f32.mrf.mxu0 }
 0x557   : > { %11591 = vst [vmem:[#allocation54_spill] sm:$0xff] %v11060_v38  ;;  %11592 = vst [vmem:[#allocation55_spill] sm:$0xff] %v11062_v28  ;;  %v4956_v38 = vadd.f32 %v7608_v23, %v10990_v34  ;;  %v4955_v34 = vadd.f32 %v4894_v55, %v10996_v0 }
 0x558   : > { %v11064_v25 = vpop.f32.mrf.mxu1  ;;  %v7644_v15 = vpop.f32.mrf.mxu0 }
 0x559   : > { %11593 = vst [vmem:[#allocation38_spill] sm:$0xff] %v11064_v25  ;;  %v5080_v18 = vadd.f32 %v7626_v4, %v4956_v38 }
 0x55a   : > { %v11066_v44 = vpop.f32.mrf.mxu1  ;;  %v5139_v54 = vpop.f32.mrf.mxu0 }
 0x55b   : > { %11594 = vst [vmem:[#allocation56_spill] sm:$0xff] %v11066_v44  ;;  %v5204_v23 = vadd.f32 %v7644_v15, %v5080_v18 }
 0x55c   : > { %v7662_v21 = vpop.f32.mrf.mxu1  ;;  %v7645_v29 = vpop.f32.mrf.mxu0 }
 0x55e   : > { %v5260_v35 = vpop.f32.mrf.mxu1  ;;  %v5142_v22 = vpop.f32.mrf.mxu0 }
 0x560   : > { %v7663_v33 = vpop.f32.mrf.mxu1  ;;  %v7648_v26 = vpop.f32.mrf.mxu0 }
 0x562   : > { %v5263_v57 = vpop.f32.mrf.mxu1  ;;  %v5155_v47 = vpop.f32.mrf.mxu0 }
 0x564   : > { %v11068_v40 = vpop.f32.mrf.mxu1  ;;  %v11070_v11 = vpop.f32.mrf.mxu0 }
 0x566   : > { %v11072_v19 = vpop.f32.mrf.mxu1  ;;  %v11074_v48 = vpop.f32.mrf.mxu0 }
 0x568   : > { %v11076_v42 = vpop.f32.mrf.mxu1  ;;  %v11078_v36 = vpop.f32.mrf.mxu0 }
 0x56a   : > { %v11080_v44 = vpop.f32.mrf.mxu1  ;;  %v11082_v25 = vpop.f32.mrf.mxu0 }
 0x56b   : > { %11595 = vst [vmem:[#allocation19_spill] sm:$0xff] %v11080_v44  ;;  %11596 = vst [vmem:[#allocation20_spill] sm:$0xff] %v11082_v25  ;;  %v4957_v44 = vadd.f32 %v7609_v59, %v10994_v46  ;;  %v4958_v46 = vadd.f32 %v4907_v1, %v11000_v10  ;;  %v5079_v59 = vadd.f32 %v11022_v8, %v4955_v34 }
 0x56c   : > { %v11084_v28 = vpop.f32.mrf.mxu1  ;;  %v11086_v6 = vpop.f32.mrf.mxu0  ;;  %v4959_v8 = vadd.f32 %v11030_v61, %v11004_v58  ;;  %v11133_v58 = vld [vmem:[%s11603_s20] ss:$0 sm:$0xff]  ;;  %s11255_s20 = scalar_lea.hbm %s11625_s10, %s6698_s23 }
 0x56d   : > { %11597 = vst [vmem:[#allocation40_spill] sm:$0xff] %v11084_v28  ;;  %11598 = vst [vmem:[#allocation29_spill] sm:$0xff] %v11086_v6  ;;  %v5078_v6 = vadd.f32 %v5015_v43, %v4954_v9  ;;  %v5081_v3 = vadd.f32 %v7627_v2, %v4957_v44  ;;  %v5325_v43 = vadd.f32 %v7662_v21, %v5204_v23 }
 0x56e   : > { %v11089_v52 = vpop.f32.mrf.mxu1  ;;  %v11091_v27 = vpop.f32.mrf.mxu0  ;;  %v5082_v10 = vadd.f32 %v11028_v37, %v4958_v46 }
 0x56f   : > { %11599 = vst [vmem:[#allocation45_spill] sm:$0xff] %v11089_v52  ;;  %11600 = vst [vmem:[#allocation31_spill] sm:$0xff] %v11091_v27  ;;  %v4960_v27 = vadd.f32 %v7612_v16, %v10998_v41  ;;  %v5205_v9 = vadd.f32 %v7645_v29, %v5081_v3  ;;  %v4961_v41 = vadd.f32 %v11026_v39, %v11002_v53 }
 0x570   : > { %v11094_v20 = vpop.f32.mrf.mxu1  ;;  %v11096_v49 = vpop.f32.mrf.mxu0  ;;  %v4962_v53 = vadd.f32 %v11038_v63, %v11008_v12  ;;  %v5206_v37 = vadd.f32 %v5155_v47, %v5082_v10  ;;  %v5083_v12 = vadd.f32 %v11036_v13, %v4959_v8 }
 0x571   : > { %11601 = vst [vmem:[#allocation30_spill] sm:$0xff] %v11094_v20  ;;  %11602 = vst [vmem:[#allocation41_spill] sm:$0xff] %v11096_v49  ;;  %v5202_v20 = vadd.f32 %v5139_v54, %v5078_v6  ;;  %v5084_v18 = vadd.f32 %v11024_v56, %v4960_v27  ;;  %v5203_v6 = vadd.f32 %v5142_v22, %v5079_v59 }
 0x572   : > { %v11099_v25 = vpop.f32.mrf.mxu1  ;;  %v11101_v28 = vpop.f32.mrf.mxu0  ;;  %v5326_v15 = vadd.f32 %v7663_v33, %v5205_v9  ;;  %v4964_v27 = vadd.f32 %v11034_v30, %v11006_v51  ;;  %v4965_v22 = vadd.f32 %v11042_v14, %v11010_v17  ;;  %v5086_v47 = vadd.f32 %v11044_v5, %v4962_v53  ;;  %v11608_v53 = vld [vmem:[#allocation49_spill] sm:$0xff] }
 0x573   : > { %v5323_v2 = vadd.f32 %v5260_v35, %v5202_v20  ;;  %v5208_v44 = vadd.f32 %v7648_v26, %v5084_v18  ;;  %v5085_v20 = vadd.f32 %v11032_v7, %v4961_v41  ;;  %v5324_v29 = vadd.f32 %v5263_v57, %v5203_v6  ;;  %v11604_v6 = vld [vmem:[#allocation46_spill] sm:$0xff] }
 0x574   : > { %v11104_v52 = vpop.f32.mrf.mxu1  ;;  %v11107_v50 = vpop.f32.mrf.mxu0  ;;  %v5088_v57 = vadd.f32 %v11040_v31, %v4964_v27  ;;  %v4963_v17 = vadd.f32 %v11046_v62, %v11012_v60  ;;  %v5327_v14 = vadd.f32 %v11072_v19, %v5206_v37  ;;  %v5207_v13 = vadd.f32 %v11074_v48, %v5083_v12 }
 0x575   : > { %v5329_v63 = vadd.f32 %v11068_v40, %v5208_v44  ;;  %v5209_v7 = vadd.f32 %v11070_v11, %v5085_v20  ;;  %v5089_v11 = vadd.f32 %v11048_v32, %v4965_v22  ;;  %v4968_v9 = vadd.f32 %v11050_v24, %v11014_v45  ;;  %v11611_v22 = vld [vmem:[#allocation52_spill] sm:$0xff] }
 0x576   : > { %v11109_v49 = vpop.f32.mrf.mxu1  ;;  %v11112_v4 = vpop.f32.mrf.mxu0  ;;  %v5212_v60 = vadd.f32 %v11078_v36, %v5088_v57 }
 0x577   : > { %v5330_v18 = vadd.f32 %v11076_v42, %v5209_v7 }
 0x578   : > { %v11115_v0 = vpop.f32.mrf.mxu1  ;;  %v7680_v55 = vpop.f32.mrf.mxu0 }
 0x579   : > { %v5449_v16 = vadd.f32 %v7680_v55, %v5325_v43 }
 0x57a   : > { %v11120_v38 = vpop.f32.mrf.mxu1  ;;  %v5384_v1 = vpop.f32.mrf.mxu0 }
 0x57b   : > { %v5447_v54 = vadd.f32 %v5384_v1, %v5323_v2  ;;  %v11606_v1 = vld [vmem:[#allocation19_spill] sm:$0xff] }
 0x57c   : > { %v7698_v21 = vpop.f32.mrf.mxu1  ;;  %v7681_v39 = vpop.f32.mrf.mxu0  ;;  %v5328_v8 = vadd.f32 %v11606_v1, %v5207_v13  ;;  %v11616_v13 = vld [vmem:[#allocation54_spill] sm:$0xff] }
 0x57d   : > { %v5573_v56 = vadd.f32 %v7698_v21, %v5449_v16  ;;  %v5450_v61 = vadd.f32 %v7681_v39, %v5326_v15  ;;  %v11605_v16 = vld [vmem:[#allocation50_spill] sm:$0xff]  ;;  %v11607_v15 = vld [vmem:[#allocation20_spill] sm:$0xff] }
 0x57e   : > { %v5508_v35 = vpop.f32.mrf.mxu1  ;;  %v5387_v30 = vpop.f32.mrf.mxu0  ;;  %v4966_v10 = vadd.f32 %v11605_v16, %v11604_v6  ;;  %v5210_v44 = vadd.f32 %v11607_v15, %v5086_v47  ;;  %v11609_v39 = vld [vmem:[#allocation40_spill] sm:$0xff]  ;;  %v11614_v47 = vld [vmem:[#allocation45_spill] sm:$0xff] }
 0x57f   : > { %v5571_v51 = vadd.f32 %v5508_v35, %v5447_v54  ;;  %v5448_v33 = vadd.f32 %v5387_v30, %v5324_v29  ;;  %v5596_v34 = vadd.f32 %v11133_v58, %v5573_v56  ;;  %v5087_v56 = vadd.f32 %v11608_v53, %v4963_v17  ;;  %v11610_v29 = vld [vmem:[#allocation29_spill] sm:$0xff] }
 0x580   : > { %v7699_v26 = vpop.f32.mrf.mxu1  ;;  %v7684_v3 = vpop.f32.mrf.mxu0  ;;  %v5333_v20 = vadd.f32 %v11609_v39, %v5212_v60  ;;  %v5213_v37 = vadd.f32 %v11610_v29, %v5089_v11 }
 0x581   : > { %v5574_v23 = vadd.f32 %v7699_v26, %v5450_v61  ;;  %v5453_v40 = vadd.f32 %v7684_v3, %v5329_v63  ;;  %v5594_v59 = vadd.f32 %v11133_v58, %v5571_v51  ;;  %v5660_v48 = vmax.f32 %v5596_v34, 0.0  ;;  %v11613_v26 = vld [vmem:[#allocation53_spill] sm:$0xff] }
 0x582   : > { %v5511_v46 = vpop.f32.mrf.mxu1  ;;  %v5400_v43 = vpop.f32.mrf.mxu0  ;;  %v5092_v51 = vadd.f32 %v11611_v22, %v4968_v9  ;;  %v5331_v34 = vadd.f32 %v11614_v47, %v5210_v44 }
 0x583   : > { %v5597_v31 = vadd.f32 %v11133_v58, %v5574_v23  ;;  %v5572_v5 = vadd.f32 %v5511_v46, %v5448_v33  ;;  %v5451_v62 = vadd.f32 %v5400_v43, %v5327_v14  ;;  %v5658_v42 = vmax.f32 %v5594_v59, 0.0  ;;  %v11612_v33 = vld [vmem:[#allocation51_spill] sm:$0xff] }
 0x584   : > { %v7702_v19 = vpop.f32.mrf.mxu1  ;;  %v7685_v2 = vpop.f32.mrf.mxu0  ;;  %v4969_v57 = vadd.f32 %v11613_v26, %v11612_v33  ;;  %v11615_v23 = vld [vmem:[#allocation31_spill] sm:$0xff] }
 0x585   : > { %v5661_v55 = vmax.f32 %v5597_v31, 0.0  ;;  %v5595_v41 = vadd.f32 %v11133_v58, %v5572_v5  ;;  %v5577_v32 = vadd.f32 %v7702_v19, %v5453_v40  ;;  %v5454_v45 = vadd.f32 %v7685_v2, %v5330_v18  ;;  %v11617_v5 = vld [vmem:[#allocation47_spill] sm:$0xff]  ;;  %v11619_v18 = vld [vmem:[#allocation30_spill] sm:$0xff] }
 0x586   : > { %v5524_v24 = vpop.f32.mrf.mxu1  ;;  %v5403_v27 = vpop.f32.mrf.mxu0  ;;  %v5211_v3 = vadd.f32 %v11615_v23, %v5087_v56  ;;  %v5090_v40 = vadd.f32 %v11616_v13, %v4966_v10  ;;  %v11618_v43 = vld [vmem:[#allocation55_spill] sm:$0xff]  ;;  %v5334_v60 = vadd.f32 %v11619_v18, %v5213_v37  ;;  %v11621_v10 = vld [vmem:[#allocation38_spill] sm:$0xff] }
 0x587   : > { %v5675_v54 = vpack.c.bf16 %v5661_v55, %v5660_v48  ;;  %v5659_v36 = vmax.f32 %v5595_v41, 0.0  ;;  %v5575_v21 = vadd.f32 %v5524_v24, %v5451_v62  ;;  %v5452_v61 = vadd.f32 %v5403_v27, %v5328_v8  ;;  %v11620_v62 = vld [vmem:[#allocation41_spill] sm:$0xff] }
 0x588   : > { %v7703_v35 = vpop.f32.mrf.mxu1  ;;  %v5600_v12 = vadd.f32 %v11133_v58, %v5577_v32  ;;  %v7688_v7 = vpop.f32.mrf.mxu0  ;;  %v4967_v9 = vadd.f32 %v11618_v43, %v11617_v5  ;;  %v5216_v19 = vadd.f32 %v11620_v62, %v5092_v51  ;;  %v5093_v1 = vadd.f32 %v11621_v10, %v4969_v57 }
 0x589   : > { %v5674_v30 = vpack.c.bf16 %v5659_v36, %v5658_v42  ;;  %v5578_v63 = vadd.f32 %v7703_v35, %v5454_v45  ;;  %v5457_v17 = vadd.f32 %v7688_v7, %v5333_v20  ;;  %v5598_v46 = vadd.f32 %v11133_v58, %v5575_v21 }
 0x58a   : > { %v5527_v14 = vpop.f32.mrf.mxu1  ;;  %v5416_v31 = vpop.f32.mrf.mxu0  ;;  %v5664_v41 = vmax.f32 %v5600_v12, 0.0  ;;  %v5332_v8 = vadd.f32 %v11099_v25, %v5211_v3  ;;  %v5214_v15 = vadd.f32 %v11101_v28, %v5090_v40  ;;  %v5337_v56 = vadd.f32 %v11104_v52, %v5216_v19 }
 0x58b   : > { %v5601_v11 = vadd.f32 %v11133_v58, %v5578_v63  ;;  %v5576_v59 = vadd.f32 %v5527_v14, %v5452_v61  ;;  %7750 = vmatprep.mubr.msk.bf16.mxu0 %vm2730_vm5, %v5674_v30  ;;  %v5455_v48 = vadd.f32 %v5416_v31, %v5331_v34  ;;  %v5662_v24 = vmax.f32 %v5598_v46, 0.0 }
 0x58c   : > { %v7706_v55 = vpop.f32.mrf.mxu1  ;;  %7751 = vmatmul.mubr.msk.bf16.vlgmr.msra.gmra.mxu0 %vm2730_vm5, %v5675_v54  ;;  %v7689_v16 = vpop.f32.mrf.mxu0  ;;  %v11622_v54 = vld [vmem:[#allocation56_spill] sm:$0xff]  ;;  %v5217_v39 = vadd.f32 %v11107_v50, %v5093_v1  ;;  %v5335_v35 = vadd.f32 %v11109_v49, %v5214_v15 }
 0x58d   : > { %v5665_v32 = vmax.f32 %v5601_v11, 0.0  ;;  %v5599_v2 = vadd.f32 %v11133_v58, %v5576_v59  ;;  %v5581_v6 = vadd.f32 %v7706_v55, %v5457_v17  ;;  %v5458_v44 = vadd.f32 %v7689_v16, %v5334_v60 }
 0x58e   : > { %v5540_v45 = vpop.f32.mrf.mxu1  ;;  %v5419_v27 = vpop.f32.mrf.mxu0  ;;  %v5091_v53 = vadd.f32 %v11622_v54, %v4967_v9  ;;  %v5338_v50 = vadd.f32 %v11115_v0, %v5217_v39 }
 0x58f   : > { %v5677_v42 = vpack.c.bf16 %v5665_v32, %v5664_v41  ;;  %v5663_v36 = vmax.f32 %v5599_v2, 0.0  ;;  %v5579_v21 = vadd.f32 %v5540_v45, %v5455_v48  ;;  %v5456_v20 = vadd.f32 %v5419_v27, %v5332_v8 }
 0x590   : > { %v7707_v29 = vpop.f32.mrf.mxu1  ;;  %v5604_v25 = vadd.f32 %v11133_v58, %v5581_v6  ;;  %v7692_v28 = vpop.f32.mrf.mxu0  ;;  %v5215_v22 = vadd.f32 %v11112_v4, %v5091_v53 }
 0x591   : > { %v5676_v37 = vpack.c.bf16 %v5663_v36, %v5662_v24  ;;  %v5582_v61 = vadd.f32 %v7707_v29, %v5458_v44  ;;  %v5461_v51 = vadd.f32 %v7692_v28, %v5337_v56  ;;  %v5602_v12 = vadd.f32 %v11133_v58, %v5579_v21 }
 0x592   : > { %v5543_v30 = vpop.f32.mrf.mxu1  ;;  %v5432_v7 = vpop.f32.mrf.mxu0  ;;  %v5668_v57 = vmax.f32 %v5604_v25, 0.0  ;;  %v5336_v23 = vadd.f32 %v11120_v38, %v5215_v22 }
 0x593   : > { %v5605_v63 = vadd.f32 %v11133_v58, %v5582_v61  ;;  %v5580_v52 = vadd.f32 %v5543_v30, %v5456_v20  ;;  %7754 = vmatprep.mubr.msk.bf16.mxu0 %vm2730_vm5, %v5676_v37  ;;  %v5459_v33 = vadd.f32 %v5432_v7, %v5335_v35  ;;  %v5666_v14 = vmax.f32 %v5602_v12, 0.0 }
 0x594   : > { %v7710_v26 = vpop.f32.mrf.mxu1  ;;  %7755 = vmatmul.mubr.msk.bf16.gmra.mxu0 %vm2730_vm5, %v5677_v42  ;;  %v7693_v34 = vpop.f32.mrf.mxu0 }
 0x595   : > { %v5669_v49 = vmax.f32 %v5605_v63, 0.0  ;;  %v5603_v4 = vadd.f32 %v11133_v58, %v5580_v52  ;;  %v5585_v47 = vadd.f32 %v7710_v26, %v5461_v51  ;;  %v5462_v3 = vadd.f32 %v7693_v34, %v5338_v50  ;;  %v11216_v50 = vld [vmem:[%s11623_s11] ss:$0 sm:$0xff]  ;;  %s8085_s11 = smov [#allocation5]  }
 0x596   : > { %v5556_v17 = vpop.f32.mrf.mxu1  ;;  %v5435_v11 = vpop.f32.mrf.mxu0  ;;  %s7962_s26 = sshll.u32 %s8085_s11, 4  ;;  %s7963_s26 = int_to_ptr.vmem [resolvable:$false] %s7962_s26 }
 0x597   : > { %v5679_v13 = vpack.c.bf16 %v5669_v49, %v5668_v57  ;;  %v5667_v40 = vmax.f32 %v5603_v4, 0.0  ;;  %v5583_v46 = vadd.f32 %v5556_v17, %v5459_v33  ;;  %v5460_v0 = vadd.f32 %v5435_v11, %v5336_v23  ;;  %s7964_s16 = scalar_lea.vmem %s7963_s26, 2048  ;;  %p7965_p8 = scmp.lt.s32.totalorder %s11257_s19, %s7963_s26 }
 0x598   : > { %v7711_v59 = vpop.f32.mrf.mxu1  ;;  %v5608_v5 = vadd.f32 %v11133_v58, %v5585_v47  ;;  %v7716_v6 = vpop.f32.mrf.mxu0  ;;  %p7966_p9 = scmp.lt.s32.totalorder %s7964_s16, %s7958_s14 }
 0x599   : > { %v5678_v31 = vpack.c.bf16 %v5667_v40, %v5666_v14  ;;  %v5586_v43 = vadd.f32 %v7711_v59, %v5462_v3  ;;  %v5606_v18 = vadd.f32 %v11133_v58, %v5583_v46 }
 0x59a   : > { %v5559_v9 = vpop.f32.mrf.mxu1  ;;  %v5672_v38 = vmax.f32 %v5608_v5, 0.0  ;;  %v5746_v16 = vpop.f32.mrf.mxu0  ;;  %p7967_p10 = por %p7966_p9, %p7965_p8 }
 0x59b   : > { %v5609_v60 = vadd.f32 %v11133_v58, %v5586_v43  ;;  %v5584_v62 = vadd.f32 %v5559_v9, %v5460_v0  ;;  %7758 = vmatprep.mubr.msk.bf16.mxu0 %vm2730_vm5, %v5678_v31  ;;  %v5670_v55 = vmax.f32 %v5606_v18, 0.0 }
 0x59c   : > { %7759 = vmatmul.mubr.msk.bf16.gmra.mxu0 %vm2730_vm5, %v5679_v13  ;;  %v7717_v10 = vpop.f32.mrf.mxu0  ;;  %v7734_v45 = vpop.f32.mrf.mxu1  ;;  %p7968_p3 = pnand %p7967_p10, %p7961_p5 }
 0x59d   : > { %v5673_v19 = vmax.f32 %v5609_v60, 0.0  ;;  %v5607_v48 = vadd.f32 %v11133_v58, %v5584_v62  ;;  %v5883_v51 = vadd.f32 %v7734_v45, %v7716_v6 }
 0x59e   : > { %v5749_v1 = vpop.f32.mrf.mxu0  ;;  %v5874_v42 = vpop.f32.mrf.mxu1 }
 0x59f   : > { %v5681_v41 = vpack.c.bf16 %v5673_v19, %v5672_v38  ;;  %v5671_v32 = vmax.f32 %v5607_v48, 0.0  ;;  %v5875_v63 = vadd.f32 %v5874_v42, %v5746_v16 }
 0x5a0   : > { %v7720_v8 = vpop.f32.mrf.mxu0  ;;  %v7735_v58 = vpop.f32.mrf.mxu1 }
 0x5a1   : > { %v5680_v2 = vpack.c.bf16 %v5671_v32, %v5670_v55  ;;  %v5886_v52 = vadd.f32 %v7735_v58, %v7717_v10 }
 0x5a2   : > { %v5762_v15 = vpop.f32.mrf.mxu0  ;;  %v5877_v27 = vpop.f32.mrf.mxu1 }
 0x5a3   : > { %7762 = vmatprep.mubr.msk.bf16.mxu0 %vm2730_vm5, %v5680_v2  ;;  %v5878_v26 = vadd.f32 %v5877_v27, %v5749_v1 }
 0x5a4   : > { %7763 = vmatmul.mubr.msk.bf16.gmra.mxu0 %vm2730_vm5, %v5681_v41  ;;  %v7721_v44 = vpop.f32.mrf.mxu0  ;;  %v7738_v53 = vpop.f32.mrf.mxu1 }
 0x5a5   : > { %v5899_v14 = vadd.f32 %v7738_v53, %v7720_v8 }
 0x5a6   : > { %v5765_v24 = vpop.f32.mrf.mxu0  ;;  %v5890_v39 = vpop.f32.mrf.mxu1 }
 0x5a7   : > { %v5891_v59 = vadd.f32 %v5890_v39, %v5762_v15 }
 0x5a8   : > { %v7724_v36 = vpop.f32.mrf.mxu0  ;;  %v7739_v29 = vpop.f32.mrf.mxu1 }
 0x5a9   : > { %v5902_v31 = vadd.f32 %v7739_v29, %v7721_v44 }
 0x5aa   : > { %v5778_v21 = vpop.f32.mrf.mxu0  ;;  %v5893_v25 = vpop.f32.mrf.mxu1 }
 0x5ab   : > { %v5894_v18 = vadd.f32 %v5893_v25, %v5765_v24 }
 0x5ac   : > { %v7725_v54 = vpop.f32.mrf.mxu0  ;;  %v7742_v28 = vpop.f32.mrf.mxu1 }
 0x5ad   : > { %v5915_v2 = vadd.f32 %v7742_v28, %v7724_v36 }
 0x5ae   : > { %v11202_v56 = vpop.f32.mrf.mxu0  ;;  %v5906_v30 = vpop.f32.mrf.mxu1 }
 0x5af   : > { %v5907_v15 = vadd.f32 %v5906_v30, %v5778_v21 }
 0x5b0   : > { %v11204_v20 = vpop.f32.mrf.mxu0  ;;  %v7743_v4 = vpop.f32.mrf.mxu1 }
 0x5b1   : > { %v5918_v44 = vadd.f32 %v7743_v4, %v7725_v54 }
 0x5b2   : > { %v11206_v37 = vpop.f32.mrf.mxu0  ;;  %v5909_v11 = vpop.f32.mrf.mxu1 }
 0x5b3   : > { %v5910_v58 = vadd.f32 %v5909_v11, %v11202_v56 }
 0x5b4   : > { %v11208_v61 = vpop.f32.mrf.mxu0  ;;  %v7746_v38 = vpop.f32.mrf.mxu1 }
 0x5b5   : > { %v5931_v28 = vadd.f32 %v7746_v38, %v11204_v20 }
 0x5b6   : > { %v11210_v35 = vpop.f32.mrf.mxu0  ;;  %v5922_v1 = vpop.f32.mrf.mxu1 }
 0x5b8   : > { %v7747_v53 = vpop.f32.mrf.mxu1 }
 0x5ba   : > { %v5925_v30 = vpop.f32.mrf.mxu1 }
 0x5bb   : > { %v5926_v20 = vadd.f32 %v5925_v30, %v11210_v35 }
 0x64c   : > { %v7752_v22 = vpop.f32.mrf.mxu0 }
 0x64d   : > { %v6064_v7 = vadd.f32 %v7752_v22, %v5883_v51 }
 0x64e   : > { %v5999_v12 = vpop.f32.mrf.mxu0 }
 0x64f   : > { %v6062_v57 = vadd.f32 %v5999_v12, %v5875_v63  ;;  %v6087_v34 = vadd.f32 %v11216_v50, %v6064_v7  ;;  %v5923_v63 = vadd.f32 %v5922_v1, %v11206_v37 }
 0x650   : > { %v7753_v33 = vpop.f32.mrf.mxu0 }
 0x651   : > { %v6065_v49 = vadd.f32 %v7753_v33, %v5886_v52  ;;  %v6085_v13 = vadd.f32 %v11216_v50, %v6062_v57  ;;  %v5934_v52 = vadd.f32 %v7747_v53, %v11208_v61 }
 0x652   : > { %v6002_v47 = vpop.f32.mrf.mxu0 }
 0x653   : > { %v6088_v23 = vadd.f32 %v11216_v50, %v6065_v49  ;;  %v6063_v3 = vadd.f32 %v6002_v47, %v5878_v26 }
 0x654   : > { %v7756_v17 = vpop.f32.mrf.mxu0 }
 0x655   : > { %v6728_v40 = vpack.c.bf16 %v6088_v23, %v6087_v34  ;;  %v6086_v46 = vadd.f32 %v11216_v50, %v6063_v3  ;;  %v6068_v43 = vadd.f32 %v7756_v17, %v5899_v14 }
 0x656   : > { %v6015_v0 = vpop.f32.mrf.mxu0 }
 0x657   : > { %6760 = vst [vmem:[%s11224_s12 + $0x8] sm:$0xff] %v6728_v40   ;;  %v6723_v5 = vpack.c.bf16 %v6086_v46, %v6085_v13  ;;  %v6066_v60 = vadd.f32 %v6015_v0, %v5891_v59  ;;  %v6091_v48 = vadd.f32 %v11216_v50, %v6068_v43 }
 0x658   : > { %v7757_v9 = vpop.f32.mrf.mxu0 }
 0x659   : > { %6724 = vst [vmem:[%s11224_s12] sm:$0xff] %v6723_v5   ;;  %v6069_v62 = vadd.f32 %v7757_v9, %v5902_v31  ;;  %v6089_v6 = vadd.f32 %v11216_v50, %v6066_v60 }
 0x65a   : > { %v6018_v19 = vpop.f32.mrf.mxu0 }
 0x65b   : > { %v6092_v55 = vadd.f32 %v11216_v50, %v6069_v62  ;;  %v6067_v41 = vadd.f32 %v6018_v19, %v5894_v18 }
 0x65c   : > { %v7760_v32 = vpop.f32.mrf.mxu0 }
 0x65d   : > { %v6738_v16 = vpack.c.bf16 %v6092_v55, %v6091_v48  ;;  %v6090_v10 = vadd.f32 %v11216_v50, %v6067_v41  ;;  %v6072_v24 = vadd.f32 %v7760_v32, %v5915_v2 }
 0x65e   : > { %v6031_v8 = vpop.f32.mrf.mxu0 }
 0x65f   : > { %6762 = vst [vmem:[%s11224_s12 + $0x18] sm:$0xff] %v6738_v16   ;;  %v6733_v45 = vpack.c.bf16 %v6090_v10, %v6089_v6  ;;  %v6070_v27 = vadd.f32 %v6031_v8, %v5907_v15  ;;  %v6095_v29 = vadd.f32 %v11216_v50, %v6072_v24 }
 0x660   : > { %v7761_v42 = vpop.f32.mrf.mxu0 }
 0x661   : > { %6761 = vst [vmem:[%s11224_s12 + $0x10] sm:$0xff] %v6733_v45   ;;  %v6073_v36 = vadd.f32 %v7761_v42, %v5918_v44  ;;  %v6093_v22 = vadd.f32 %v11216_v50, %v6070_v27 }
 0x662   : > { %v6034_v39 = vpop.f32.mrf.mxu0 }
 0x663   : > { %v6096_v25 = vadd.f32 %v11216_v50, %v6073_v36  ;;  %v6071_v21 = vadd.f32 %v6034_v39, %v5910_v58 }
 0x664   : > { %v7764_v54 = vpop.f32.mrf.mxu0 }
 0x665   : > { %v6748_v51 = vpack.c.bf16 %v6096_v25, %v6095_v29  ;;  %v6094_v56 = vadd.f32 %v11216_v50, %v6071_v21  ;;  %v6076_v33 = vadd.f32 %v7764_v54, %v5931_v28 }
 0x666   : > { %v6047_v12 = vpop.f32.mrf.mxu0 }
 0x667   : > { %6764 = vst [vmem:[%s11224_s12 + $0x28] sm:$0xff] %v6748_v51   ;;  %v6743_v7 = vpack.c.bf16 %v6094_v56, %v6093_v22  ;;  %v6074_v57 = vadd.f32 %v6047_v12, %v5923_v63  ;;  %v6099_v47 = vadd.f32 %v11216_v50, %v6076_v33 }
 0x668   : > { %v7765_v26 = vpop.f32.mrf.mxu0 }
 0x669   : > { %6763 = vst [vmem:[%s11224_s12 + $0x20] sm:$0xff] %v6743_v7   ;;  %v6077_v49 = vadd.f32 %v7765_v26, %v5934_v52  ;;  %v6097_v34 = vadd.f32 %v11216_v50, %v6074_v57 }
 0x66a   : > { %v6050_v4 = vpop.f32.mrf.mxu0 }
 0x66b   : > { %v6100_v37 = vadd.f32 %v11216_v50, %v6077_v49  ;;  %v6075_v61 = vadd.f32 %v6050_v4, %v5926_v20 }
 0x66d   : > { %v6758_v23 = vpack.c.bf16 %v6100_v37, %v6099_v47  ;;  %v6098_v3 = vadd.f32 %v11216_v50, %v6075_v61 }
 0x66f   : > { %6766 = vst [vmem:[%s11224_s12 + $0x38] sm:$0xff] %v6758_v23   ;;  %v6753_v35 = vpack.c.bf16 %v6098_v3, %v6097_v34 }
 0x671   : > { %6765 = vst [vmem:[%s11224_s12 + $0x30] sm:$0xff] %v6753_v35  }
 0x672   : > { %7971 = shalt.err (!%p7968_p3)
}
 0x673   : > { %s7972_s13 = scalar_lea.hbm %s11255_s20, 1024  ;;  %s7976_s28 = scalar_lea.hbm %s11625_s10, 4096 }
 0x674   : > { %p7973_p11 = scmp.ne.s32.totalorder %s11255_s20, %s7972_s13  ;;  %p7977_p1 = scmp.lt.s32.totalorder %s11255_s20, %s11625_s10 }
 0x675   : > { %p7978_p6 = scmp.lt.s32.totalorder %s7976_s28, %s7972_s13 }
 0x676   : > { %p7974_p13 = pnand %p7973_p11, %p8230_p12 }
 0x677   : > { %p7979_p7 = por %p7978_p6, %p7977_p1 }
 0x678   : > { %p7975_p0 = pneg %p7974_p13 }
 0x67a   : > { %p7980_p4 = pnand %p7979_p7, %p7975_p0 }
 0x67c   : > { %7983 = shalt.err (!%p7980_p4)
}
 0x67d   : > { %s8086_s22 = smov 64   ;;  %s8087_s15 = smov 4  }
 0x67e   : > { %7791 = dma.vmem_to_hbm [thread:$0]  (%p8230_p12), %s11257_s19, 1024, %s11255_s20, %s11263_s29, %s8086_s22, %s8086_s22, %s8087_s15  }
 0x67f PF: > { %p7802_p5 = scmp.ge.s32.totalorder %s8078_s27, 2  ;;  %s6213_s14 = sand.u32 1, %s8038_s17  }
 0x680   : > { %s6214_s11 = scalar_lea.sflag [#allocation4], %s6213_s14 }
 0x681   : > { %p7798_p8 = pnand %p7802_p5, %p8243_p2 }
 0x683   : > { %p7799_p9 = pneg %p7798_p8 }
 0x685   : > { %8033 = dma.done.wait (%p7799_p9), %s6214_s11, 1024  }
 0x686   : > { %8035 = vsyncadd (%p7799_p9), %s6214_s11, 4294966272  ;;  %s27_s27 = sadd.s32 1, %s8078_s27   ;;  %s11626_s26 = sld [smem:[#allocation8_spill]] }
 0x687   : > { %p24_p10 = scmp.ge.s32.totalorder %s27_s27, 6   ;;  %s11627_s19 = sld [smem:[#allocation16_spill]] }
 0x688   : > { %s11628_s30 = sld [smem:[#allocation9_spill]]  ;;  %s11634_s17 = smov %s8042_s18 }
 0x689   : > { %s11629_s22 = sld [smem:[#allocation15_spill]]  ;;  %s11636_s20 = smov %s8054_s21 }
 0x68a   : > { %s11630_s23 = sld [smem:[#allocation11_spill]] }
 0x68b   : > { %s11631_s24 = sld [smem:[#allocation12_spill]] }
 0x68c   : > { %s11632_s25 = sld [smem:[#allocation13_spill]]  ;;  %s11635_s18 = smov %s11626_s26 }
 0x68d   : > { %s11633_s29 = sld [smem:[#allocation14_spill]] }
 0x68e   : > { %s11637_s21 = smov %s11628_s30 }
 0x68f   :  { %26 = sbr.rel (!%p24_p10) target bundleno = 13 (0xd), region = 134 }
 0x693   : > { %s11638_s26 = smov %s11633_s29 }
 0x694   :  { %6219 = vsyncpa [#allocation3], 1 }
 0x695   :  { %6221 = vsyncpa [#allocation3 + $0x1], 1 }
 0x696   :  { %6222 = vsyncpa [#allocation4], 1 }
 0x697   :  { %6224 = vsyncpa [#allocation4 + $0x1], 1 }

</bundles_post_ra>
